<compile_context>
chip_gen: v7x
topology: tpu7x:2x2x1
jax: 0.10.0
libtpu: 0.0.40
codegen_flags: <defaults>
</compile_context>

<pallas_src>
import functools

import jax
import jax.numpy as jnp
from jax import lax
from jax.experimental import pallas as pl
from jax.experimental.pallas import tpu as pltpu

EPS = 1e-5


# ----------------------------- Pallas kernel --------------------------------
def conv_stage_kernel(x_ref, wdw_ref, bdw_ref, wpw_ref, bpw_ref,
                      scale_ref, shift_ref, h_ref, stats_ref,
                      *, apply_input_affine):
    """One depthwise(3x3, dense-expanded) + pointwise(1x1) stage on a row tile.

    Writes the PRE-BatchNorm activation tile plus its per-tile (sum, sumsq)
    so the wrapper can finish the training-mode BN statistics globally.
    If `apply_input_affine`, the previous stage's folded BN (scale, shift) +
    ReLU is applied to the input slabs on the fly; the spatial halo is
    re-zeroed with an iota mask (the conv pads the *post*-ReLU activation).
    """
    n, th, wp, cout = h_ref.shape
    hp = x_ref.shape[1] - 2
    cin = x_ref.shape[3]
    cdw = wdw_ref.shape[2]
    mt = n * th * wp
    row0 = pl.program_id(0) * th

    acc = jnp.zeros((mt, cdw), jnp.float32)
    for dy in range(3):                      # 3 accumulated matmuls, K = 3*cin
        slab = x_ref[:, pl.ds(row0 + dy, th), :, :]        # (n, th, wp+2, cin)
        if apply_input_affine:
            sf = slab.astype(jnp.float32)
            sf = sf * scale_ref[...].reshape(1, 1, 1, cin) \
                 + shift_ref[...].reshape(1, 1, 1, cin)
            sf = jnp.maximum(sf, 0.0)
            w_ix = lax.broadcasted_iota(jnp.int32, (1, 1, wp + 2, 1), 2)
            h_ix = lax.broadcasted_iota(jnp.int32, (1, th, 1, 1), 1) + (row0 + dy)
            valid = ((w_ix >= 1) & (w_ix <= wp) & (h_ix >= 1) & (h_ix <= hp))
            slab = jnp.where(valid, sf, 0.0).astype(jnp.bfloat16)
        taps = jnp.concatenate([slab[:, :, 0:wp, :],
                                slab[:, :, 1:wp + 1, :],
                                slab[:, :, 2:wp + 2, :]], axis=-1)
        acc = acc + jnp.dot(taps.reshape(mt, 3 * cin), wdw_ref[dy],
                            preferred_element_type=jnp.float32)

    hdw = (acc + bdw_ref[...]).astype(jnp.bfloat16)
    hf = jnp.dot(hdw, wpw_ref[...],
                 preferred_element_type=jnp.float32) + bpw_ref[...]

    # per-tile BN partial sums (f32, pre any bf16 cast)
    stats_ref[0] = jnp.concatenate(
        [jnp.sum(hf, axis=0, keepdims=True),
         jnp.sum(hf * hf, axis=0, keepdims=True)], axis=0)
    h_ref[...] = hf.reshape(n, th, wp, cout).astype(h_ref.dtype)


# ------------------------------ helpers --------------------------------------
def _rup128(c):
    return ((c + 127) // 128) * 128


def _dpw_groups(in_ch, channels_per_seg=128):
    # mirrors depthwise_pointwise_conv.__init__
    if in_ch == 3 and channels_per_seg != 1:
        c = 3
    else:
        c = min(in_ch, channels_per_seg)
    return in_ch // c


def _expand_grouped(w, groups):
    # (O, I/g, 3, 3) grouped weight -> dense (O, I, 3, 3)
    # TODO(synk): per-group matmuls in-kernel for groups > 1 instead.
    if groups == 1:
        return w
    o, ipg, kh, kw = w.shape
    opg = o // groups
    dense = jnp.zeros((o, ipg * groups, kh, kw), w.dtype)
    for g in range(groups):
        dense = dense.at[g * opg:(g + 1) * opg,
                         g * ipg:(g + 1) * ipg].set(w[g * opg:(g + 1) * opg])
    return dense


def _prep_dw_weight(w_oihw, groups, cin_pad, cout_pad):
    # dense 3x3 weight -> (dy, dx*cin_pad + cin, cout_pad) im2col layout (bf16)
    w = _expand_grouped(w_oihw, groups)
    o, i = w.shape[0], w.shape[1]
    wp = jnp.zeros((cout_pad, cin_pad, 3, 3), w.dtype).at[:o, :i].set(w)
    wt = jnp.transpose(wp, (2, 3, 1, 0)).reshape(3, 3 * cin_pad, cout_pad)
    return wt.astype(jnp.bfloat16)


def _prep_pw_weight(w_oi11, cin_pad, cout_pad):
    w = w_oi11[:, :, 0, 0]                                   # (O, I)
    o, i = w.shape
    wp = jnp.zeros((cin_pad, cout_pad), w.dtype).at[:i, :o].set(w.T)
    return wp.astype(jnp.bfloat16)


def _pad_row(v, c_pad):
    return jnp.pad(v.astype(jnp.float32), (0, c_pad - v.shape[0])).reshape(1, c_pad)


def _bn_affine(stats_tiles, gamma, beta, count, c_pad):
    # fold training-mode BatchNorm2d into a per-channel FMA: y = x*scale + shift
    s = jnp.sum(stats_tiles, axis=0)                         # (2, c_pad)
    mean = s[0] / count
    var = jnp.maximum(s[1] / count - mean * mean, 0.0)
    scale = _pad_row(gamma, c_pad)[0] * lax.rsqrt(var + EPS)
    shift = _pad_row(beta, c_pad)[0] - mean * scale
    return scale.reshape(1, -1), shift.reshape(1, -1)


def _pick_tile_h(hp, rows_per_h, budget_rows=2048):
    # largest divisor of hp keeping the tile's matmul rows <= budget,
    # preferring >= 2 grid steps (pipelining / v7x megacore).
    divs = [d for d in range(1, hp + 1) if hp % d == 0]
    th = 1
    for d in divs:
        if d * rows_per_h <= budget_rows:
            th = d
    if th == hp and hp > 1:
        th = max(d for d in divs if d < hp)
    return th


@functools.lru_cache(maxsize=None)
def _vmem_capacity_bytes():
    try:
        return int(pltpu.get_tpu_info().vmem_capacity_bytes)
    except Exception:                       # conservative v7x-per-core fallback
        return 64 << 20


def _stage_vmem_limit(x_pad, wdw, wpw, mt, cdw, cout):
    bf2, f4 = 2, 4
    resident = 2 * x_pad.size * bf2                          # resident stage input
    weights = 2 * (wdw.size + wpw.size) * bf2
    blocks = 2 * (mt * cout * bf2 + 2 * cout * f4)           # double-buffered outs
    interm = mt * (3 * x_pad.shape[-1] * bf2 + cdw * f4 + 2 * cout * f4)
    est = resident + weights + blocks + 2 * interm + (4 << 20)
    cap = _vmem_capacity_bytes()
    return int(min(max(est, 32 << 20), int(0.85 * cap)))


def _resident_spec(arr):
    zeros = (0,) * arr.ndim
    return pl.BlockSpec(arr.shape, lambda i: zeros)


def _conv_stage(x_pad, wdw, bdw, wpw, bpw, scale, shift, *, th,
                apply_input_affine, out_dtype=jnp.bfloat16):
    n, hpad, wpad, _ = x_pad.shape
    hp, wp = hpad - 2, wpad - 2
    cdw = wdw.shape[-1]
    cout = wpw.shape[-1]
    n_tiles = hp // th
    mt = n * th * wp

    kernel = functools.partial(conv_stage_kernel,
                               apply_input_affine=apply_input_affine)
    args = (x_pad, wdw, bdw, wpw, bpw, scale, shift)

    return pl.pallas_call(
        kernel,
        grid=(n_tiles,),
        in_specs=[_resident_spec(a) for a in args],
        out_specs=(pl.BlockSpec((n, th, wp, cout), lambda i: (0, i, 0, 0)),
                   pl.BlockSpec((1, 2, cout), lambda i: (i, 0, 0))),
        out_shape=(jax.ShapeDtypeStruct((n, hp, wp, cout), out_dtype),
                   jax.ShapeDtypeStruct((n_tiles, 2, cout), jnp.float32)),
        compiler_params=pltpu.CompilerParams(
            dimension_semantics=("parallel",),
            vmem_limit_bytes=_stage_vmem_limit(x_pad, wdw, wpw, mt, cdw, cout)),
    )(*args)


# ------------------------------ wrapper --------------------------------------
@jax.jit
def down_pallas(x_nchw, params):
    n, cin, hin, win = x_nchw.shape
    hp, wp = hin // 2, win // 2
    cmid = params["w1p"].shape[0]
    cout = params["w2p"].shape[0]
    cdw1_p = _rup128(cin)            # stage-1 depthwise-out channels (padded)
    cmid_p = _rup128(cmid)
    cdw2_p = _rup128(cmid)
    cout_p = _rup128(cout)

    # MaxPool2d(2): bf16 + strided maxes in NCHW (before the relayout), so the
    # transpose only touches 1/4 of the pixels at half the bytes.
    xb = x_nchw.astype(jnp.bfloat16)[:, :, :2 * hp, :2 * wp]
    xp = jnp.maximum(xb[:, :, 0::2, :], xb[:, :, 1::2, :])
    xp = jnp.maximum(xp[:, :, :, 0::2], xp[:, :, :, 1::2])
    x = jnp.transpose(xp, (0, 2, 3, 1))                      # (n, hp, wp, cin)
    x_pad = jnp.pad(x, ((0, 0), (1, 1), (1, 1), (0, 0)))

    th = _pick_tile_h(hp, n * wp)

    g1, g2 = _dpw_groups(cin), _dpw_groups(cmid)
    w1d = _prep_dw_weight(params["w1d"], g1, cin, cdw1_p)
    b1d = _pad_row(params["b1d"], cdw1_p)
    w1p = _prep_pw_weight(params["w1p"], cdw1_p, cmid_p)
    b1p = _pad_row(params["b1p"], cmid_p)
    w2d = _prep_dw_weight(params["w2d"], g2, cmid_p, cdw2_p)
    b2d = _pad_row(params["b2d"], cdw2_p)
    w2p = _prep_pw_weight(params["w2p"], cdw2_p, cout_p)
    b2p = _pad_row(params["b2p"], cout_p)

    ones_cin = jnp.ones((1, cin), jnp.float32)               # unused (stage 1)
    zeros_cin = jnp.zeros((1, cin), jnp.float32)

    # --- stage 1: dw3x3 + pw1x1 -> pre-BN h + per-tile BN partial sums ---
    h, st1 = _conv_stage(x_pad, w1d, b1d, w1p, b1p, ones_cin, zeros_cin,
                         th=th, apply_input_affine=False)
    scale1, shift1 = _bn_affine(st1, params["g1"], params["be1"],
                                n * hp * wp, cmid_p)

    # --- stage 2: BN1+ReLU applied in-kernel to the pre-BN h tiles ---
    h_pad = jnp.pad(h, ((0, 0), (1, 1), (1, 1), (0, 0)))
    g, st2 = _conv_stage(h_pad, w2d, b2d, w2p, b2p, scale1, shift1,
                         th=th, apply_input_affine=True)
    scale2, shift2 = _bn_affine(st2, params["g2"], params["be2"],
                                n * hp * wp, cout_p)

    # final BN2 + ReLU: fused by XLA into the mandatory NHWC->NCHW transpose.
    out = jnp.maximum(g.astype(jnp.float32) * scale2 + shift2, 0.0)[..., :cout]
    return jnp.transpose(out, (0, 3, 1, 2))


# --------------------------- pure-JAX reference -------------------------------
def reference_down(x_nchw, p):
    def conv(x, w, b, pad, groups=1):
        y = lax.conv_general_dilated(
            x, w, (1, 1), ((pad, pad), (pad, pad)),
            dimension_numbers=("NCHW", "OIHW", "NCHW"),
            feature_group_count=groups)
        return y + b[None, :, None, None]

    def bn_relu(x, gamma, beta):
        mean = jnp.mean(x, axis=(0, 2, 3), keepdims=True)
        var = jnp.mean((x - mean) ** 2, axis=(0, 2, 3), keepdims=True)
        y = (x - mean) / jnp.sqrt(var + EPS)
        y = y * gamma[None, :, None, None] + beta[None, :, None, None]
        return jnp.maximum(y, 0.0)

    cin = x_nchw.shape[1]
    cmid = p["w1p"].shape[0]
    y = lax.reduce_window(x_nchw, -jnp.inf, lax.max,
                          (1, 1, 2, 2), (1, 1, 2, 2), "VALID")
    y = conv(y, p["w1d"], p["b1d"], 1, _dpw_groups(cin))
    y = conv(y, p["w1p"], p["b1p"], 0)
    y = bn_relu(y, p["g1"], p["be1"])
    y = conv(y, p["w2d"], p["b2d"], 1, _dpw_groups(cmid))
    y = conv(y, p["w2p"], p["b2p"], 0)
    y = bn_relu(y, p["g2"], p["be2"])
    return y


# ------------------------------ param init ------------------------------------
def init_params(key, in_channels, out_channels):
    mid = out_channels
    ks = jax.random.split(key, 12)
    g1_dw = _dpw_groups(in_channels)
    g2_dw = _dpw_groups(mid)
    nrm = jax.random.normal
    return {
        "w1d": 0.2 * nrm(ks[0], (in_channels, in_channels // g1_dw, 3, 3), jnp.float32),
        "b1d": 0.1 * nrm(ks[1], (in_channels,), jnp.float32),
        "w1p": 0.2 * nrm(ks[2], (mid, in_channels, 1, 1), jnp.float32),
        "b1p": 0.1 * nrm(ks[3], (mid,), jnp.float32),
        "g1": 1.0 + 0.1 * nrm(ks[4], (mid,), jnp.float32),
        "be1": 0.1 * nrm(ks[5], (mid,), jnp.float32),
        "w2d": 0.2 * nrm(ks[6], (mid, mid // g2_dw, 3, 3), jnp.float32),
        "b2d": 0.1 * nrm(ks[7], (mid,), jnp.float32),
        "w2p": 0.2 * nrm(ks[8], (out_channels, mid, 1, 1), jnp.float32),
        "b2p": 0.1 * nrm(ks[9], (out_channels,), jnp.float32),
        "g2": 1.0 + 0.1 * nrm(ks[10], (out_channels,), jnp.float32),
        "be2": 0.1 * nrm(ks[11], (out_channels,), jnp.float32),
    }


if __name__ == "__main__":
    N, Cin, H, W = 2, 4, 16, 16
    Cout = 8

    key = jax.random.PRNGKey(0)
    kx, kp = jax.random.split(key)
    x = jax.random.normal(kx, (N, Cin, H, W), jnp.float32)
    params = init_params(kp, Cin, Cout)

    out = jax.block_until_ready(down_pallas(x, params))
    ref = reference_down(x, params)

    assert out.shape == (N, Cout, H // 2, W // 2), out.shape
    max_err = float(jnp.max(jnp.abs(out - ref)))
    # tolerance reflects bf16 matmul operands / activations vs an f32 reference
    if max_err < 1e-1:
        print("KERNEL_OK")
    else:
        print(f"MISMATCH max_abs_err={max_err}")
</pallas_src>

<mosaic_0001>
module attributes {stable_mosaic.version = 11 : i64} {
  func.func @conv_stage_kernel(%arg0: i32, %arg1: memref<2x10x10x4xbf16, #tpu.memory_space<vmem>>, %arg2: memref<3x12x128xbf16, #tpu.memory_space<vmem>>, %arg3: memref<1x128xf32, #tpu.memory_space<vmem>>, %arg4: memref<128x128xbf16, #tpu.memory_space<vmem>>, %arg5: memref<1x128xf32, #tpu.memory_space<vmem>>, %arg6: memref<1x4xf32, #tpu.memory_space<vmem>>, %arg7: memref<1x4xf32, #tpu.memory_space<vmem>>, %arg8: memref<2x4x8x128xbf16, #tpu.memory_space<vmem>>, %arg9: memref<1x2x128xf32, #tpu.memory_space<vmem>>) attributes {dimension_semantics = [#tpu.dimension_semantics<parallel>], iteration_bounds = array<i64: 2>, scalar_prefetch = 0 : i64, scratch_operands = 0 : i64, tpu.core_type = #tpu.core_type<tc>, window_params = [{pipeline_mode = #tpu.pipeline_mode<synchronous>, transform_indices = @transform_0, window_bounds = array<i64: 2, 10, 10, 4>}, {pipeline_mode = #tpu.pipeline_mode<synchronous>, transform_indices = @transform_1, window_bounds = array<i64: 3, 12, 128>}, {pipeline_mode = #tpu.pipeline_mode<synchronous>, transform_indices = @transform_2, window_bounds = array<i64: 1, 128>}, {pipeline_mode = #tpu.pipeline_mode<synchronous>, transform_indices = @transform_3, window_bounds = array<i64: 128, 128>}, {pipeline_mode = #tpu.pipeline_mode<synchronous>, transform_indices = @transform_4, window_bounds = array<i64: 1, 128>}, {pipeline_mode = #tpu.pipeline_mode<synchronous>, transform_indices = @transform_5, window_bounds = array<i64: 1, 4>}, {pipeline_mode = #tpu.pipeline_mode<synchronous>, transform_indices = @transform_6, window_bounds = array<i64: 1, 4>}, {transform_indices = @transform_7, window_bounds = array<i64: 2, 4, 8, 128>}, {transform_indices = @transform_8, window_bounds = array<i64: 1, 2, 128>}]} {
    %c4_i32 = arith.constant 4 : i32
    %0 = arith.muli %arg0, %c4_i32 : i32
    %cst = arith.constant 0.000000e+00 : f32
    %1 = vector.broadcast %cst : f32 to vector<64x128xf32>
    %c0_i32 = arith.constant 0 : i32
    %2 = arith.addi %0, %c0_i32 : i32
    %c0 = arith.constant 0 : index
    %3 = arith.index_cast %2 : i32 to index
    %c0_0 = arith.constant 0 : index
    %c0_1 = arith.constant 0 : index
    %4 = vector.load %arg1[%c0, %3, %c0_0, %c0_1] : memref<2x10x10x4xbf16, #tpu.memory_space<vmem>>, vector<2x4x10x4xbf16>
    %5 = vector.extract_strided_slice %4 {offsets = [0, 0, 0, 0], sizes = [2, 4, 8, 4], strides = [1, 1, 1, 1]} : vector<2x4x10x4xbf16> to vector<2x4x8x4xbf16>
    %6 = vector.extract_strided_slice %4 {offsets = [0, 0, 1, 0], sizes = [2, 4, 8, 4], strides = [1, 1, 1, 1]} : vector<2x4x10x4xbf16> to vector<2x4x8x4xbf16>
    %7 = vector.extract_strided_slice %4 {offsets = [0, 0, 2, 0], sizes = [2, 4, 8, 4], strides = [1, 1, 1, 1]} : vector<2x4x10x4xbf16> to vector<2x4x8x4xbf16>
    %8 = tpu.concatenate %5, %6, %7 in 3 : vector<2x4x8x4xbf16>, vector<2x4x8x4xbf16>, vector<2x4x8x4xbf16> -> vector<2x4x8x12xbf16>
    %9 = vector.shape_cast %8 : vector<2x4x8x12xbf16> to vector<64x12xbf16>
    %c0_2 = arith.constant 0 : index
    %c0_3 = arith.constant 0 : index
    %c0_4 = arith.constant 0 : index
    %10 = vector.load %arg2[%c0_2, %c0_3, %c0_4] : memref<3x12x128xbf16, #tpu.memory_space<vmem>>, vector<1x12x128xbf16>
    %11 = vector.shape_cast %10 : vector<1x12x128xbf16> to vector<12x128xbf16>
    %cst_5 = arith.constant dense<0.000000e+00> : vector<64x128xf32>
    %12 = tpu.matmul %9, %11, %cst_5 {dimension_numbers = #tpu.dot_dimension_numbers<[1], [0], [0], [1], [0, 0, 1, 1], [], []>} : vector<64x12xbf16>, vector<12x128xbf16>, vector<64x128xf32> -> vector<64x128xf32>
    %13 = arith.addf %1, %12 : vector<64x128xf32>
    %c1_i32 = arith.constant 1 : i32
    %14 = arith.addi %0, %c1_i32 : i32
    %c0_6 = arith.constant 0 : index
    %15 = arith.index_cast %14 : i32 to index
    %c0_7 = arith.constant 0 : index
    %c0_8 = arith.constant 0 : index
    %16 = vector.load %arg1[%c0_6, %15, %c0_7, %c0_8] : memref<2x10x10x4xbf16, #tpu.memory_space<vmem>>, vector<2x4x10x4xbf16>
    %17 = vector.extract_strided_slice %16 {offsets = [0, 0, 0, 0], sizes = [2, 4, 8, 4], strides = [1, 1, 1, 1]} : vector<2x4x10x4xbf16> to vector<2x4x8x4xbf16>
    %18 = vector.extract_strided_slice %16 {offsets = [0, 0, 1, 0], sizes = [2, 4, 8, 4], strides = [1, 1, 1, 1]} : vector<2x4x10x4xbf16> to vector<2x4x8x4xbf16>
    %19 = vector.extract_strided_slice %16 {offsets = [0, 0, 2, 0], sizes = [2, 4, 8, 4], strides = [1, 1, 1, 1]} : vector<2x4x10x4xbf16> to vector<2x4x8x4xbf16>
    %20 = tpu.concatenate %17, %18, %19 in 3 : vector<2x4x8x4xbf16>, vector<2x4x8x4xbf16>, vector<2x4x8x4xbf16> -> vector<2x4x8x12xbf16>
    %21 = vector.shape_cast %20 : vector<2x4x8x12xbf16> to vector<64x12xbf16>
    %c1 = arith.constant 1 : index
    %c0_9 = arith.constant 0 : index
    %c0_10 = arith.constant 0 : index
    %22 = vector.load %arg2[%c1, %c0_9, %c0_10] : memref<3x12x128xbf16, #tpu.memory_space<vmem>>, vector<1x12x128xbf16>
    %23 = vector.shape_cast %22 : vector<1x12x128xbf16> to vector<12x128xbf16>
    %cst_11 = arith.constant dense<0.000000e+00> : vector<64x128xf32>
    %24 = tpu.matmul %21, %23, %cst_11 {dimension_numbers = #tpu.dot_dimension_numbers<[1], [0], [0], [1], [0, 0, 1, 1], [], []>} : vector<64x12xbf16>, vector<12x128xbf16>, vector<64x128xf32> -> vector<64x128xf32>
    %25 = arith.addf %13, %24 : vector<64x128xf32>
    %c2_i32 = arith.constant 2 : i32
    %26 = arith.addi %0, %c2_i32 : i32
    %c0_12 = arith.constant 0 : index
    %27 = arith.index_cast %26 : i32 to index
    %c0_13 = arith.constant 0 : index
    %c0_14 = arith.constant 0 : index
    %28 = vector.load %arg1[%c0_12, %27, %c0_13, %c0_14] : memref<2x10x10x4xbf16, #tpu.memory_space<vmem>>, vector<2x4x10x4xbf16>
    %29 = vector.extract_strided_slice %28 {offsets = [0, 0, 0, 0], sizes = [2, 4, 8, 4], strides = [1, 1, 1, 1]} : vector<2x4x10x4xbf16> to vector<2x4x8x4xbf16>
    %30 = vector.extract_strided_slice %28 {offsets = [0, 0, 1, 0], sizes = [2, 4, 8, 4], strides = [1, 1, 1, 1]} : vector<2x4x10x4xbf16> to vector<2x4x8x4xbf16>
    %31 = vector.extract_strided_slice %28 {offsets = [0, 0, 2, 0], sizes = [2, 4, 8, 4], strides = [1, 1, 1, 1]} : vector<2x4x10x4xbf16> to vector<2x4x8x4xbf16>
    %32 = tpu.concatenate %29, %30, %31 in 3 : vector<2x4x8x4xbf16>, vector<2x4x8x4xbf16>, vector<2x4x8x4xbf16> -> vector<2x4x8x12xbf16>
    %33 = vector.shape_cast %32 : vector<2x4x8x12xbf16> to vector<64x12xbf16>
    %c2 = arith.constant 2 : index
    %c0_15 = arith.constant 0 : index
    %c0_16 = arith.constant 0 : index
    %34 = vector.load %arg2[%c2, %c0_15, %c0_16] : memref<3x12x128xbf16, #tpu.memory_space<vmem>>, vector<1x12x128xbf16>
    %35 = vector.shape_cast %34 : vector<1x12x128xbf16> to vector<12x128xbf16>
    %cst_17 = arith.constant dense<0.000000e+00> : vector<64x128xf32>
    %36 = tpu.matmul %33, %35, %cst_17 {dimension_numbers = #tpu.dot_dimension_numbers<[1], [0], [0], [1], [0, 0, 1, 1], [], []>} : vector<64x12xbf16>, vector<12x128xbf16>, vector<64x128xf32> -> vector<64x128xf32>
    %37 = arith.addf %25, %36 : vector<64x128xf32>
    %c0_18 = arith.constant 0 : index
    %c0_19 = arith.constant 0 : index
    %38 = vector.load %arg3[%c0_18, %c0_19] : memref<1x128xf32, #tpu.memory_space<vmem>>, vector<1x128xf32>
    %39 = vector.broadcast %38 : vector<1x128xf32> to vector<64x128xf32>
    %40 = arith.addf %37, %39 : vector<64x128xf32>
    %41 = arith.truncf %40 : vector<64x128xf32> to vector<64x128xbf16>
    %c0_20 = arith.constant 0 : index
    %c0_21 = arith.constant 0 : index
    %42 = vector.load %arg4[%c0_20, %c0_21] : memref<128x128xbf16, #tpu.memory_space<vmem>>, vector<128x128xbf16>
    %cst_22 = arith.constant dense<0.000000e+00> : vector<64x128xf32>
    %43 = tpu.matmul %41, %42, %cst_22 {dimension_numbers = #tpu.dot_dimension_numbers<[1], [0], [0], [1], [0, 0, 1, 1], [], []>} : vector<64x128xbf16>, vector<128x128xbf16>, vector<64x128xf32> -> vector<64x128xf32>
    %c0_23 = arith.constant 0 : index
    %c0_24 = arith.constant 0 : index
    %44 = vector.load %arg5[%c0_23, %c0_24] : memref<1x128xf32, #tpu.memory_space<vmem>>, vector<1x128xf32>
    %45 = vector.broadcast %44 : vector<1x128xf32> to vector<64x128xf32>
    %46 = arith.addf %43, %45 : vector<64x128xf32>
    %cst_25 = arith.constant dense<0.000000e+00> : vector<128xf32>
    %47 = vector.multi_reduction <add>, %46, %cst_25 [0] : vector<64x128xf32> to vector<128xf32>
    %48 = vector.shape_cast %47 : vector<128xf32> to vector<1x128xf32>
    %49 = arith.mulf %46, %46 : vector<64x128xf32>
    %cst_26 = arith.constant dense<0.000000e+00> : vector<128xf32>
    %50 = vector.multi_reduction <add>, %49, %cst_26 [0] : vector<64x128xf32> to vector<128xf32>
    %51 = vector.shape_cast %50 : vector<128xf32> to vector<1x128xf32>
    %52 = tpu.concatenate %48, %51 in 0 : vector<1x128xf32>, vector<1x128xf32> -> vector<2x128xf32>
    %c0_27 = arith.constant 0 : index
    %c0_28 = arith.constant 0 : index
    %c0_29 = arith.constant 0 : index
    %53 = vector.load %arg9[%c0_27, %c0_28, %c0_29] : memref<1x2x128xf32, #tpu.memory_space<vmem>>, vector<1x2x128xf32>
    %54 = vector.shape_cast %53 : vector<1x2x128xf32> to vector<2x128xf32>
    %55 = vector.shape_cast %52 : vector<2x128xf32> to vector<1x2x128xf32>
    tpu.vector_store %arg9[%c0_27, %c0_28, %c0_29], %55 {strides = array<i32>} : memref<1x2x128xf32, #tpu.memory_space<vmem>>, vector<1x2x128xf32>,
    %56 = vector.shape_cast %46 : vector<64x128xf32> to vector<2x4x8x128xf32>
    %57 = arith.truncf %56 : vector<2x4x8x128xf32> to vector<2x4x8x128xbf16>
    %c0_30 = arith.constant 0 : index
    %c0_31 = arith.constant 0 : index
    %c0_32 = arith.constant 0 : index
    %c0_33 = arith.constant 0 : index
    %58 = vector.load %arg8[%c0_30, %c0_31, %c0_32, %c0_33] : memref<2x4x8x128xbf16, #tpu.memory_space<vmem>>, vector<2x4x8x128xbf16>
    tpu.vector_store %arg8[%c0_30, %c0_31, %c0_32, %c0_33], %57 {strides = array<i32>} : memref<2x4x8x128xbf16, #tpu.memory_space<vmem>>, vector<2x4x8x128xbf16>,
    return
  }
  func.func @transform_0(%arg0: i32) -> (i32, i32, i32, i32) {
    %c0_i32 = arith.constant 0 : i32
    %c0_i32_0 = arith.constant 0 : i32
    %c0_i32_1 = arith.constant 0 : i32
    %c0_i32_2 = arith.constant 0 : i32
    %c0_i32_3 = arith.constant 0 : i32
    return %c0_i32, %c0_i32_0, %c0_i32_1, %c0_i32_2 : i32, i32, i32, i32
  }
  func.func @transform_1(%arg0: i32) -> (i32, i32, i32) {
    %c0_i32 = arith.constant 0 : i32
    %c0_i32_0 = arith.constant 0 : i32
    %c0_i32_1 = arith.constant 0 : i32
    %c0_i32_2 = arith.constant 0 : i32
    return %c0_i32, %c0_i32_0, %c0_i32_1 : i32, i32, i32
  }
  func.func @transform_2(%arg0: i32) -> (i32, i32) {
    %c0_i32 = arith.constant 0 : i32
    %c0_i32_0 = arith.constant 0 : i32
    %c0_i32_1 = arith.constant 0 : i32
    return %c0_i32, %c0_i32_0 : i32, i32
  }
  func.func @transform_3(%arg0: i32) -> (i32, i32) {
    %c0_i32 = arith.constant 0 : i32
    %c0_i32_0 = arith.constant 0 : i32
    %c0_i32_1 = arith.constant 0 : i32
    return %c0_i32, %c0_i32_0 : i32, i32
  }
  func.func @transform_4(%arg0: i32) -> (i32, i32) {
    %c0_i32 = arith.constant 0 : i32
    %c0_i32_0 = arith.constant 0 : i32
    %c0_i32_1 = arith.constant 0 : i32
    return %c0_i32, %c0_i32_0 : i32, i32
  }
  func.func @transform_5(%arg0: i32) -> (i32, i32) {
    %c0_i32 = arith.constant 0 : i32
    %c0_i32_0 = arith.constant 0 : i32
    %c0_i32_1 = arith.constant 0 : i32
    return %c0_i32, %c0_i32_0 : i32, i32
  }
  func.func @transform_6(%arg0: i32) -> (i32, i32) {
    %c0_i32 = arith.constant 0 : i32
    %c0_i32_0 = arith.constant 0 : i32
    %c0_i32_1 = arith.constant 0 : i32
    return %c0_i32, %c0_i32_0 : i32, i32
  }
  func.func @transform_7(%arg0: i32) -> (i32, i32, i32, i32) {
    %c0_i32 = arith.constant 0 : i32
    %c0_i32_0 = arith.constant 0 : i32
    %c0_i32_1 = arith.constant 0 : i32
    %c0_i32_2 = arith.constant 0 : i32
    return %c0_i32, %arg0, %c0_i32_0, %c0_i32_1 : i32, i32, i32, i32
  }
  func.func @transform_8(%arg0: i32) -> (i32, i32, i32) {
    %c0_i32 = arith.constant 0 : i32
    %c0_i32_0 = arith.constant 0 : i32
    %c0_i32_1 = arith.constant 0 : i32
    return %arg0, %c0_i32, %c0_i32_0 : i32, i32, i32
  }
}

module attributes {stable_mosaic.version = 11 : i64} {
  func.func @conv_stage_kernel(%arg0: i32, %arg1: memref<2x10x10x128xbf16, #tpu.memory_space<vmem>>, %arg2: memref<3x384x128xbf16, #tpu.memory_space<vmem>>, %arg3: memref<1x128xf32, #tpu.memory_space<vmem>>, %arg4: memref<128x128xbf16, #tpu.memory_space<vmem>>, %arg5: memref<1x128xf32, #tpu.memory_space<vmem>>, %arg6: memref<1x128xf32, #tpu.memory_space<vmem>>, %arg7: memref<1x128xf32, #tpu.memory_space<vmem>>, %arg8: memref<2x4x8x128xbf16, #tpu.memory_space<vmem>>, %arg9: memref<1x2x128xf32, #tpu.memory_space<vmem>>) attributes {dimension_semantics = [#tpu.dimension_semantics<parallel>], iteration_bounds = array<i64: 2>, scalar_prefetch = 0 : i64, scratch_operands = 0 : i64, tpu.core_type = #tpu.core_type<tc>, window_params = [{pipeline_mode = #tpu.pipeline_mode<synchronous>, transform_indices = @transform_0, window_bounds = array<i64: 2, 10, 10, 128>}, {pipeline_mode = #tpu.pipeline_mode<synchronous>, transform_indices = @transform_1, window_bounds = array<i64: 3, 384, 128>}, {pipeline_mode = #tpu.pipeline_mode<synchronous>, transform_indices = @transform_2, window_bounds = array<i64: 1, 128>}, {pipeline_mode = #tpu.pipeline_mode<synchronous>, transform_indices = @transform_3, window_bounds = array<i64: 128, 128>}, {pipeline_mode = #tpu.pipeline_mode<synchronous>, transform_indices = @transform_4, window_bounds = array<i64: 1, 128>}, {pipeline_mode = #tpu.pipeline_mode<synchronous>, transform_indices = @transform_5, window_bounds = array<i64: 1, 128>}, {pipeline_mode = #tpu.pipeline_mode<synchronous>, transform_indices = @transform_6, window_bounds = array<i64: 1, 128>}, {transform_indices = @transform_7, window_bounds = array<i64: 2, 4, 8, 128>}, {transform_indices = @transform_8, window_bounds = array<i64: 1, 2, 128>}]} {
    %c4_i32 = arith.constant 4 : i32
    %0 = arith.muli %arg0, %c4_i32 : i32
    %cst = arith.constant 0.000000e+00 : f32
    %1 = vector.broadcast %cst : f32 to vector<64x128xf32>
    %c0_i32 = arith.constant 0 : i32
    %2 = arith.addi %0, %c0_i32 : i32
    %c0 = arith.constant 0 : index
    %3 = arith.index_cast %2 : i32 to index
    %c0_0 = arith.constant 0 : index
    %c0_1 = arith.constant 0 : index
    %4 = vector.load %arg1[%c0, %3, %c0_0, %c0_1] : memref<2x10x10x128xbf16, #tpu.memory_space<vmem>>, vector<2x4x10x128xbf16>
    %5 = arith.extf %4 : vector<2x4x10x128xbf16> to vector<2x4x10x128xf32>
    %c0_2 = arith.constant 0 : index
    %c0_3 = arith.constant 0 : index
    %6 = vector.load %arg6[%c0_2, %c0_3] : memref<1x128xf32, #tpu.memory_space<vmem>>, vector<1x128xf32>
    %7 = vector.shape_cast %6 : vector<1x128xf32> to vector<1x1x1x128xf32>
    %8 = vector.broadcast %7 : vector<1x1x1x128xf32> to vector<2x4x10x128xf32>
    %9 = arith.mulf %5, %8 : vector<2x4x10x128xf32>
    %c0_4 = arith.constant 0 : index
    %c0_5 = arith.constant 0 : index
    %10 = vector.load %arg7[%c0_4, %c0_5] : memref<1x128xf32, #tpu.memory_space<vmem>>, vector<1x128xf32>
    %11 = vector.shape_cast %10 : vector<1x128xf32> to vector<1x1x1x128xf32>
    %12 = vector.broadcast %11 : vector<1x1x1x128xf32> to vector<2x4x10x128xf32>
    %13 = arith.addf %9, %12 : vector<2x4x10x128xf32>
    %cst_6 = arith.constant 0.000000e+00 : f32
    %14 = vector.broadcast %cst_6 : f32 to vector<2x4x10x128xf32>
    %15 = arith.maximumf %13, %14 : vector<2x4x10x128xf32>
    %16 = tpu.iota {dimensions = array<i32: 2>} : vector<1x1x10x1xi32>
    %17 = tpu.iota {dimensions = array<i32: 1>} : vector<1x4x1x1xi32>
    %c0_i32_7 = arith.constant 0 : i32
    %18 = arith.addi %0, %c0_i32_7 : i32
    %19 = vector.broadcast %18 : i32 to vector<1x4x1x1xi32>
    %20 = arith.addi %17, %19 : vector<1x4x1x1xi32>
    %c1_i32 = arith.constant 1 : i32
    %21 = vector.broadcast %c1_i32 : i32 to vector<1x1x10x1xi32>
    %22 = arith.cmpi sge, %16, %21 : vector<1x1x10x1xi32>
    %c8_i32 = arith.constant 8 : i32
    %23 = vector.broadcast %c8_i32 : i32 to vector<1x1x10x1xi32>
    %24 = arith.cmpi sle, %16, %23 : vector<1x1x10x1xi32>
    %25 = arith.andi %22, %24 : vector<1x1x10x1xi1>
    %c1_i32_8 = arith.constant 1 : i32
    %26 = vector.broadcast %c1_i32_8 : i32 to vector<1x4x1x1xi32>
    %27 = arith.cmpi sge, %20, %26 : vector<1x4x1x1xi32>
    %28 = vector.broadcast %25 : vector<1x1x10x1xi1> to vector<1x4x10x1xi1>
    %29 = vector.broadcast %27 : vector<1x4x1x1xi1> to vector<1x4x10x1xi1>
    %30 = arith.andi %28, %29 : vector<1x4x10x1xi1>
    %c8_i32_9 = arith.constant 8 : i32
    %31 = vector.broadcast %c8_i32_9 : i32 to vector<1x4x1x1xi32>
    %32 = arith.cmpi sle, %20, %31 : vector<1x4x1x1xi32>
    %33 = vector.broadcast %32 : vector<1x4x1x1xi1> to vector<1x4x10x1xi1>
    %34 = arith.andi %30, %33 : vector<1x4x10x1xi1>
    %cst_10 = arith.constant 0.000000e+00 : f32
    %35 = vector.shape_cast %34 : vector<1x4x10x1xi1> to vector<1x4x10x1xi1>
    %36 = vector.broadcast %35 : vector<1x4x10x1xi1> to vector<2x4x10x128xi1>
    %37 = vector.broadcast %cst_10 : f32 to vector<2x4x10x128xf32>
    %38 = arith.select %36, %15, %37 : vector<2x4x10x128xi1>, vector<2x4x10x128xf32>
    %39 = arith.truncf %38 : vector<2x4x10x128xf32> to vector<2x4x10x128xbf16>
    %40 = vector.extract_strided_slice %39 {offsets = [0, 0, 0, 0], sizes = [2, 4, 8, 128], strides = [1, 1, 1, 1]} : vector<2x4x10x128xbf16> to vector<2x4x8x128xbf16>
    %41 = vector.extract_strided_slice %39 {offsets = [0, 0, 1, 0], sizes = [2, 4, 8, 128], strides = [1, 1, 1, 1]} : vector<2x4x10x128xbf16> to vector<2x4x8x128xbf16>
    %42 = vector.extract_strided_slice %39 {offsets = [0, 0, 2, 0], sizes = [2, 4, 8, 128], strides = [1, 1, 1, 1]} : vector<2x4x10x128xbf16> to vector<2x4x8x128xbf16>
    %43 = tpu.concatenate %40, %41, %42 in 3 : vector<2x4x8x128xbf16>, vector<2x4x8x128xbf16>, vector<2x4x8x128xbf16> -> vector<2x4x8x384xbf16>
    %44 = vector.shape_cast %43 : vector<2x4x8x384xbf16> to vector<64x384xbf16>
    %c0_11 = arith.constant 0 : index
    %c0_12 = arith.constant 0 : index
    %c0_13 = arith.constant 0 : index
    %45 = vector.load %arg2[%c0_11, %c0_12, %c0_13] : memref<3x384x128xbf16, #tpu.memory_space<vmem>>, vector<1x384x128xbf16>
    %46 = vector.shape_cast %45 : vector<1x384x128xbf16> to vector<384x128xbf16>
    %cst_14 = arith.constant dense<0.000000e+00> : vector<64x128xf32>
    %47 = tpu.matmul %44, %46, %cst_14 {dimension_numbers = #tpu.dot_dimension_numbers<[1], [0], [0], [1], [0, 0, 1, 1], [], []>} : vector<64x384xbf16>, vector<384x128xbf16>, vector<64x128xf32> -> vector<64x128xf32>
    %48 = arith.addf %1, %47 : vector<64x128xf32>
    %c1_i32_15 = arith.constant 1 : i32
    %49 = arith.addi %0, %c1_i32_15 : i32
    %c0_16 = arith.constant 0 : index
    %50 = arith.index_cast %49 : i32 to index
    %c0_17 = arith.constant 0 : index
    %c0_18 = arith.constant 0 : index
    %51 = vector.load %arg1[%c0_16, %50, %c0_17, %c0_18] : memref<2x10x10x128xbf16, #tpu.memory_space<vmem>>, vector<2x4x10x128xbf16>
    %52 = arith.extf %51 : vector<2x4x10x128xbf16> to vector<2x4x10x128xf32>
    %c0_19 = arith.constant 0 : index
    %c0_20 = arith.constant 0 : index
    %53 = vector.load %arg6[%c0_19, %c0_20] : memref<1x128xf32, #tpu.memory_space<vmem>>, vector<1x128xf32>
    %54 = vector.shape_cast %53 : vector<1x128xf32> to vector<1x1x1x128xf32>
    %55 = vector.broadcast %54 : vector<1x1x1x128xf32> to vector<2x4x10x128xf32>
    %56 = arith.mulf %52, %55 : vector<2x4x10x128xf32>
    %c0_21 = arith.constant 0 : index
    %c0_22 = arith.constant 0 : index
    %57 = vector.load %arg7[%c0_21, %c0_22] : memref<1x128xf32, #tpu.memory_space<vmem>>, vector<1x128xf32>
    %58 = vector.shape_cast %57 : vector<1x128xf32> to vector<1x1x1x128xf32>
    %59 = vector.broadcast %58 : vector<1x1x1x128xf32> to vector<2x4x10x128xf32>
    %60 = arith.addf %56, %59 : vector<2x4x10x128xf32>
    %cst_23 = arith.constant 0.000000e+00 : f32
    %61 = vector.broadcast %cst_23 : f32 to vector<2x4x10x128xf32>
    %62 = arith.maximumf %60, %61 : vector<2x4x10x128xf32>
    %63 = tpu.iota {dimensions = array<i32: 2>} : vector<1x1x10x1xi32>
    %64 = tpu.iota {dimensions = array<i32: 1>} : vector<1x4x1x1xi32>
    %c1_i32_24 = arith.constant 1 : i32
    %65 = arith.addi %0, %c1_i32_24 : i32
    %66 = vector.broadcast %65 : i32 to vector<1x4x1x1xi32>
    %67 = arith.addi %64, %66 : vector<1x4x1x1xi32>
    %c1_i32_25 = arith.constant 1 : i32
    %68 = vector.broadcast %c1_i32_25 : i32 to vector<1x1x10x1xi32>
    %69 = arith.cmpi sge, %63, %68 : vector<1x1x10x1xi32>
    %c8_i32_26 = arith.constant 8 : i32
    %70 = vector.broadcast %c8_i32_26 : i32 to vector<1x1x10x1xi32>
    %71 = arith.cmpi sle, %63, %70 : vector<1x1x10x1xi32>
    %72 = arith.andi %69, %71 : vector<1x1x10x1xi1>
    %c1_i32_27 = arith.constant 1 : i32
    %73 = vector.broadcast %c1_i32_27 : i32 to vector<1x4x1x1xi32>
    %74 = arith.cmpi sge, %67, %73 : vector<1x4x1x1xi32>
    %75 = vector.broadcast %72 : vector<1x1x10x1xi1> to vector<1x4x10x1xi1>
    %76 = vector.broadcast %74 : vector<1x4x1x1xi1> to vector<1x4x10x1xi1>
    %77 = arith.andi %75, %76 : vector<1x4x10x1xi1>
    %c8_i32_28 = arith.constant 8 : i32
    %78 = vector.broadcast %c8_i32_28 : i32 to vector<1x4x1x1xi32>
    %79 = arith.cmpi sle, %67, %78 : vector<1x4x1x1xi32>
    %80 = vector.broadcast %79 : vector<1x4x1x1xi1> to vector<1x4x10x1xi1>
    %81 = arith.andi %77, %80 : vector<1x4x10x1xi1>
    %cst_29 = arith.constant 0.000000e+00 : f32
    %82 = vector.shape_cast %81 : vector<1x4x10x1xi1> to vector<1x4x10x1xi1>
    %83 = vector.broadcast %82 : vector<1x4x10x1xi1> to vector<2x4x10x128xi1>
    %84 = vector.broadcast %cst_29 : f32 to vector<2x4x10x128xf32>
    %85 = arith.select %83, %62, %84 : vector<2x4x10x128xi1>, vector<2x4x10x128xf32>
    %86 = arith.truncf %85 : vector<2x4x10x128xf32> to vector<2x4x10x128xbf16>
    %87 = vector.extract_strided_slice %86 {offsets = [0, 0, 0, 0], sizes = [2, 4, 8, 128], strides = [1, 1, 1, 1]} : vector<2x4x10x128xbf16> to vector<2x4x8x128xbf16>
    %88 = vector.extract_strided_slice %86 {offsets = [0, 0, 1, 0], sizes = [2, 4, 8, 128], strides = [1, 1, 1, 1]} : vector<2x4x10x128xbf16> to vector<2x4x8x128xbf16>
    %89 = vector.extract_strided_slice %86 {offsets = [0, 0, 2, 0], sizes = [2, 4, 8, 128], strides = [1, 1, 1, 1]} : vector<2x4x10x128xbf16> to vector<2x4x8x128xbf16>
    %90 = tpu.concatenate %87, %88, %89 in 3 : vector<2x4x8x128xbf16>, vector<2x4x8x128xbf16>, vector<2x4x8x128xbf16> -> vector<2x4x8x384xbf16>
    %91 = vector.shape_cast %90 : vector<2x4x8x384xbf16> to vector<64x384xbf16>
    %c1 = arith.constant 1 : index
    %c0_30 = arith.constant 0 : index
    %c0_31 = arith.constant 0 : index
    %92 = vector.load %arg2[%c1, %c0_30, %c0_31] : memref<3x384x128xbf16, #tpu.memory_space<vmem>>, vector<1x384x128xbf16>
    %93 = vector.shape_cast %92 : vector<1x384x128xbf16> to vector<384x128xbf16>
    %cst_32 = arith.constant dense<0.000000e+00> : vector<64x128xf32>
    %94 = tpu.matmul %91, %93, %cst_32 {dimension_numbers = #tpu.dot_dimension_numbers<[1], [0], [0], [1], [0, 0, 1, 1], [], []>} : vector<64x384xbf16>, vector<384x128xbf16>, vector<64x128xf32> -> vector<64x128xf32>
    %95 = arith.addf %48, %94 : vector<64x128xf32>
    %c2_i32 = arith.constant 2 : i32
    %96 = arith.addi %0, %c2_i32 : i32
    %c0_33 = arith.constant 0 : index
    %97 = arith.index_cast %96 : i32 to index
    %c0_34 = arith.constant 0 : index
    %c0_35 = arith.constant 0 : index
    %98 = vector.load %arg1[%c0_33, %97, %c0_34, %c0_35] : memref<2x10x10x128xbf16, #tpu.memory_space<vmem>>, vector<2x4x10x128xbf16>
    %99 = arith.extf %98 : vector<2x4x10x128xbf16> to vector<2x4x10x128xf32>
    %c0_36 = arith.constant 0 : index
    %c0_37 = arith.constant 0 : index
    %100 = vector.load %arg6[%c0_36, %c0_37] : memref<1x128xf32, #tpu.memory_space<vmem>>, vector<1x128xf32>
    %101 = vector.shape_cast %100 : vector<1x128xf32> to vector<1x1x1x128xf32>
    %102 = vector.broadcast %101 : vector<1x1x1x128xf32> to vector<2x4x10x128xf32>
    %103 = arith.mulf %99, %102 : vector<2x4x10x128xf32>
    %c0_38 = arith.constant 0 : index
    %c0_39 = arith.constant 0 : index
    %104 = vector.load %arg7[%c0_38, %c0_39] : memref<1x128xf32, #tpu.memory_space<vmem>>, vector<1x128xf32>
    %105 = vector.shape_cast %104 : vector<1x128xf32> to vector<1x1x1x128xf32>
    %106 = vector.broadcast %105 : vector<1x1x1x128xf32> to vector<2x4x10x128xf32>
    %107 = arith.addf %103, %106 : vector<2x4x10x128xf32>
    %cst_40 = arith.constant 0.000000e+00 : f32
    %108 = vector.broadcast %cst_40 : f32 to vector<2x4x10x128xf32>
    %109 = arith.maximumf %107, %108 : vector<2x4x10x128xf32>
    %110 = tpu.iota {dimensions = array<i32: 2>} : vector<1x1x10x1xi32>
    %111 = tpu.iota {dimensions = array<i32: 1>} : vector<1x4x1x1xi32>
    %c2_i32_41 = arith.constant 2 : i32
    %112 = arith.addi %0, %c2_i32_41 : i32
    %113 = vector.broadcast %112 : i32 to vector<1x4x1x1xi32>
    %114 = arith.addi %111, %113 : vector<1x4x1x1xi32>
    %c1_i32_42 = arith.constant 1 : i32
    %115 = vector.broadcast %c1_i32_42 : i32 to vector<1x1x10x1xi32>
    %116 = arith.cmpi sge, %110, %115 : vector<1x1x10x1xi32>
    %c8_i32_43 = arith.constant 8 : i32
    %117 = vector.broadcast %c8_i32_43 : i32 to vector<1x1x10x1xi32>
    %118 = arith.cmpi sle, %110, %117 : vector<1x1x10x1xi32>
    %119 = arith.andi %116, %118 : vector<1x1x10x1xi1>
    %c1_i32_44 = arith.constant 1 : i32
    %120 = vector.broadcast %c1_i32_44 : i32 to vector<1x4x1x1xi32>
    %121 = arith.cmpi sge, %114, %120 : vector<1x4x1x1xi32>
    %122 = vector.broadcast %119 : vector<1x1x10x1xi1> to vector<1x4x10x1xi1>
    %123 = vector.broadcast %121 : vector<1x4x1x1xi1> to vector<1x4x10x1xi1>
    %124 = arith.andi %122, %123 : vector<1x4x10x1xi1>
    %c8_i32_45 = arith.constant 8 : i32
    %125 = vector.broadcast %c8_i32_45 : i32 to vector<1x4x1x1xi32>
    %126 = arith.cmpi sle, %114, %125 : vector<1x4x1x1xi32>
    %127 = vector.broadcast %126 : vector<1x4x1x1xi1> to vector<1x4x10x1xi1>
    %128 = arith.andi %124, %127 : vector<1x4x10x1xi1>
    %cst_46 = arith.constant 0.000000e+00 : f32
    %129 = vector.shape_cast %128 : vector<1x4x10x1xi1> to vector<1x4x10x1xi1>
    %130 = vector.broadcast %129 : vector<1x4x10x1xi1> to vector<2x4x10x128xi1>
    %131 = vector.broadcast %cst_46 : f32 to vector<2x4x10x128xf32>
    %132 = arith.select %130, %109, %131 : vector<2x4x10x128xi1>, vector<2x4x10x128xf32>
    %133 = arith.truncf %132 : vector<2x4x10x128xf32> to vector<2x4x10x128xbf16>
    %134 = vector.extract_strided_slice %133 {offsets = [0, 0, 0, 0], sizes = [2, 4, 8, 128], strides = [1, 1, 1, 1]} : vector<2x4x10x128xbf16> to vector<2x4x8x128xbf16>
    %135 = vector.extract_strided_slice %133 {offsets = [0, 0, 1, 0], sizes = [2, 4, 8, 128], strides = [1, 1, 1, 1]} : vector<2x4x10x128xbf16> to vector<2x4x8x128xbf16>
    %136 = vector.extract_strided_slice %133 {offsets = [0, 0, 2, 0], sizes = [2, 4, 8, 128], strides = [1, 1, 1, 1]} : vector<2x4x10x128xbf16> to vector<2x4x8x128xbf16>
    %137 = tpu.concatenate %134, %135, %136 in 3 : vector<2x4x8x128xbf16>, vector<2x4x8x128xbf16>, vector<2x4x8x128xbf16> -> vector<2x4x8x384xbf16>
    %138 = vector.shape_cast %137 : vector<2x4x8x384xbf16> to vector<64x384xbf16>
    %c2 = arith.constant 2 : index
    %c0_47 = arith.constant 0 : index
    %c0_48 = arith.constant 0 : index
    %139 = vector.load %arg2[%c2, %c0_47, %c0_48] : memref<3x384x128xbf16, #tpu.memory_space<vmem>>, vector<1x384x128xbf16>
    %140 = vector.shape_cast %139 : vector<1x384x128xbf16> to vector<384x128xbf16>
    %cst_49 = arith.constant dense<0.000000e+00> : vector<64x128xf32>
    %141 = tpu.matmul %138, %140, %cst_49 {dimension_numbers = #tpu.dot_dimension_numbers<[1], [0], [0], [1], [0, 0, 1, 1], [], []>} : vector<64x384xbf16>, vector<384x128xbf16>, vector<64x128xf32> -> vector<64x128xf32>
    %142 = arith.addf %95, %141 : vector<64x128xf32>
    %c0_50 = arith.constant 0 : index
    %c0_51 = arith.constant 0 : index
    %143 = vector.load %arg3[%c0_50, %c0_51] : memref<1x128xf32, #tpu.memory_space<vmem>>, vector<1x128xf32>
    %144 = vector.broadcast %143 : vector<1x128xf32> to vector<64x128xf32>
    %145 = arith.addf %142, %144 : vector<64x128xf32>
    %146 = arith.truncf %145 : vector<64x128xf32> to vector<64x128xbf16>
    %c0_52 = arith.constant 0 : index
    %c0_53 = arith.constant 0 : index
    %147 = vector.load %arg4[%c0_52, %c0_53] : memref<128x128xbf16, #tpu.memory_space<vmem>>, vector<128x128xbf16>
    %cst_54 = arith.constant dense<0.000000e+00> : vector<64x128xf32>
    %148 = tpu.matmul %146, %147, %cst_54 {dimension_numbers = #tpu.dot_dimension_numbers<[1], [0], [0], [1], [0, 0, 1, 1], [], []>} : vector<64x128xbf16>, vector<128x128xbf16>, vector<64x128xf32> -> vector<64x128xf32>
    %c0_55 = arith.constant 0 : index
    %c0_56 = arith.constant 0 : index
    %149 = vector.load %arg5[%c0_55, %c0_56] : memref<1x128xf32, #tpu.memory_space<vmem>>, vector<1x128xf32>
    %150 = vector.broadcast %149 : vector<1x128xf32> to vector<64x128xf32>
    %151 = arith.addf %148, %150 : vector<64x128xf32>
    %cst_57 = arith.constant dense<0.000000e+00> : vector<128xf32>
    %152 = vector.multi_reduction <add>, %151, %cst_57 [0] : vector<64x128xf32> to vector<128xf32>
    %153 = vector.shape_cast %152 : vector<128xf32> to vector<1x128xf32>
    %154 = arith.mulf %151, %151 : vector<64x128xf32>
    %cst_58 = arith.constant dense<0.000000e+00> : vector<128xf32>
    %155 = vector.multi_reduction <add>, %154, %cst_58 [0] : vector<64x128xf32> to vector<128xf32>
    %156 = vector.shape_cast %155 : vector<128xf32> to vector<1x128xf32>
    %157 = tpu.concatenate %153, %156 in 0 : vector<1x128xf32>, vector<1x128xf32> -> vector<2x128xf32>
    %c0_59 = arith.constant 0 : index
    %c0_60 = arith.constant 0 : index
    %c0_61 = arith.constant 0 : index
    %158 = vector.load %arg9[%c0_59, %c0_60, %c0_61] : memref<1x2x128xf32, #tpu.memory_space<vmem>>, vector<1x2x128xf32>
    %159 = vector.shape_cast %158 : vector<1x2x128xf32> to vector<2x128xf32>
    %160 = vector.shape_cast %157 : vector<2x128xf32> to vector<1x2x128xf32>
    tpu.vector_store %arg9[%c0_59, %c0_60, %c0_61], %160 {strides = array<i32>} : memref<1x2x128xf32, #tpu.memory_space<vmem>>, vector<1x2x128xf32>,
    %161 = vector.shape_cast %151 : vector<64x128xf32> to vector<2x4x8x128xf32>
    %162 = arith.truncf %161 : vector<2x4x8x128xf32> to vector<2x4x8x128xbf16>
    %c0_62 = arith.constant 0 : index
    %c0_63 = arith.constant 0 : index
    %c0_64 = arith.constant 0 : index
    %c0_65 = arith.constant 0 : index
    %163 = vector.load %arg8[%c0_62, %c0_63, %c0_64, %c0_65] : memref<2x4x8x128xbf16, #tpu.memory_space<vmem>>, vector<2x4x8x128xbf16>
    tpu.vector_store %arg8[%c0_62, %c0_63, %c0_64, %c0_65], %162 {strides = array<i32>} : memref<2x4x8x128xbf16, #tpu.memory_space<vmem>>, vector<2x4x8x128xbf16>,
    return
  }
  func.func @transform_0(%arg0: i32) -> (i32, i32, i32, i32) {
    %c0_i32 = arith.constant 0 : i32
    %c0_i32_0 = arith.constant 0 : i32
    %c0_i32_1 = arith.constant 0 : i32
    %c0_i32_2 = arith.constant 0 : i32
    %c0_i32_3 = arith.constant 0 : i32
    return %c0_i32, %c0_i32_0, %c0_i32_1, %c0_i32_2 : i32, i32, i32, i32
  }
  func.func @transform_1(%arg0: i32) -> (i32, i32, i32) {
    %c0_i32 = arith.constant 0 : i32
    %c0_i32_0 = arith.constant 0 : i32
    %c0_i32_1 = arith.constant 0 : i32
    %c0_i32_2 = arith.constant 0 : i32
    return %c0_i32, %c0_i32_0, %c0_i32_1 : i32, i32, i32
  }
  func.func @transform_2(%arg0: i32) -> (i32, i32) {
    %c0_i32 = arith.constant 0 : i32
    %c0_i32_0 = arith.constant 0 : i32
    %c0_i32_1 = arith.constant 0 : i32
    return %c0_i32, %c0_i32_0 : i32, i32
  }
  func.func @transform_3(%arg0: i32) -> (i32, i32) {
    %c0_i32 = arith.constant 0 : i32
    %c0_i32_0 = arith.constant 0 : i32
    %c0_i32_1 = arith.constant 0 : i32
    return %c0_i32, %c0_i32_0 : i32, i32
  }
  func.func @transform_4(%arg0: i32) -> (i32, i32) {
    %c0_i32 = arith.constant 0 : i32
    %c0_i32_0 = arith.constant 0 : i32
    %c0_i32_1 = arith.constant 0 : i32
    return %c0_i32, %c0_i32_0 : i32, i32
  }
  func.func @transform_5(%arg0: i32) -> (i32, i32) {
    %c0_i32 = arith.constant 0 : i32
    %c0_i32_0 = arith.constant 0 : i32
    %c0_i32_1 = arith.constant 0 : i32
    return %c0_i32, %c0_i32_0 : i32, i32
  }
  func.func @transform_6(%arg0: i32) -> (i32, i32) {
    %c0_i32 = arith.constant 0 : i32
    %c0_i32_0 = arith.constant 0 : i32
    %c0_i32_1 = arith.constant 0 : i32
    return %c0_i32, %c0_i32_0 : i32, i32
  }
  func.func @transform_7(%arg0: i32) -> (i32, i32, i32, i32) {
    %c0_i32 = arith.constant 0 : i32
    %c0_i32_0 = arith.constant 0 : i32
    %c0_i32_1 = arith.constant 0 : i32
    %c0_i32_2 = arith.constant 0 : i32
    return %c0_i32, %arg0, %c0_i32_0, %c0_i32_1 : i32, i32, i32, i32
  }
  func.func @transform_8(%arg0: i32) -> (i32, i32, i32) {
    %c0_i32 = arith.constant 0 : i32
    %c0_i32_0 = arith.constant 0 : i32
    %c0_i32_1 = arith.constant 0 : i32
    return %arg0, %c0_i32, %c0_i32_0 : i32, i32, i32
  }
}

</mosaic_0001>

<bundles_post_ra>
// kernel: down_pallas.2
= control target key start
LH: loop header
LB: loop body
LE: loop exit
PB: predicated region body
PF: predicated region fallthrough
CT: control target
= control target key end

     0   :  { %s1955_s27 = smov 0   ;;  %s1957_s28 = smov 0   ;;  %s2333_s0 = inlined_call_operand.vmem [shape: bf16[2,10,10,4], index: 0, kind: input, shape index: {}]   ;;  %s2334_s1 = inlined_call_operand.vmem [shape: bf16[3,12,128], index: 1, kind: input, shape index: {}]   ;;  %s2335_s2 = inlined_call_operand.vmem [shape: f32[1,128], index: 2, kind: input, shape index: {}]   ;;  %s2336_s3 = inlined_call_operand.vmem [shape: bf16[128,128], index: 3, kind: input, shape index: {}]   ;;  %s2337_s4 = inlined_call_operand.vmem [shape: f32[1,128], index: 4, kind: input, shape index: {}]   ;;  %s2338_s5 = inlined_call_operand.vmem [shape: f32[1,4], index: 5, kind: input, shape index: {}]   ;;  %s2339_s6 = inlined_call_operand.vmem [shape: f32[1,4], index: 6, kind: input, shape index: {}]   ;;  %s2340_s7 = inlined_call_operand.vmem [shape: bf16[2,8,8,128], index: 7, kind: output, shape index: {0}]   ;;  %s2341_s8 = inlined_call_operand.vmem [shape: f32[2,2,128], index: 8, kind: output, shape index: {1}]  }
   0x1   :  { %s1959_s29 = smov 0  }
   0x2 LB: > { %s1968_s5 = sadd.s32 4294967295, %s1906_s29   ;;  %s1970_s6 = sadd.s32 1, %s1906_s29   ;;  %s1906_s29 = sphi %s1959_s29, %s2345_s29   ;;  %s1902_s28 = sphi %s1957_s28, %s2344_s28   ;;  %s1898_s27 = sphi %s1955_s27, %s2343_s27  }
   0x3   : > { %s170_s30 = ssub.s32 %s1906_s29, %s1970_s6  ;;  %s173_s9 = sadd.s32 1, %s1902_s28 }
   0x4   : > { %p171_p0 = scmp.eq.s32.totalorder %s170_s30, 0  ;;  %p183_p1 = scmp.ne.s32.totalorder %s1902_s28, %s1898_s27 }
   0x5   : > { %p184_p2 = scmp.eq.s32.totalorder %s1968_s5, 1  ;;  %p1583_p3 = scmp.ge.s32.totalorder %s1906_s29, 1 }
   0x6   : > { %s1978_s10 = scalar_select %p171_p0, %s1902_s28, %s173_s9  }
   0x7   : > { %p1980_p4 = por %p184_p2, %p183_p1  ;;  %p255_p5 = scmp.lt.s32.totalorder %s1906_s29, 3 }
   0x9   : > { %p256_p6 = pnand %p1583_p3, %p255_p5 }
   0xa   : > { %s1696_s12 = sshll.u32 (!%p256_p6), %s1968_s5, 5  ;;  %s1908_s16 = smov (!%p256_p6), 8   ;;  %vm730_vm0 = vcmask (!%p256_p6), 1045504   ;;  %vm449_vm1 = vcmask (!%p256_p6), 31744   ;;  %vm474_vm2 = vcmask (!%p256_p6), 64512   ;;  %vm717_vm3 = vcmask (!%p256_p6), 97280  }
   0xb   : > { %259 = sbr.rel (%p256_p6) target bundleno = 688 (0x2b0), region = 48  ;;  %s1988_s15 = scalar_lea.vmem (!%p256_p6), %s2333_s0, %s1696_s12  ;;  %vm1405_vm4 = vcmask (!%p256_p6), 1040384  }
   0xc   : > { %v1991_v0 = vld [vmem:[%s1988_s15 + $0x10] sm:$0xf] (!%p256_p6)  ;;  %v1602_v1 = vld [vmem:[%s1988_s15 + $0x14] sm:$0x1] (!%p256_p6)  ;;  %v1995_v2 = vld [vmem:[%s1988_s15 + $0x8] sm:$0xf] (!%p256_p6) }
   0xd   : > { %v1616_v3 = vcombine.low (!%p256_p6), %v1991_v0, %v1602_v1  ;;  %v1600_v4 = vld [vmem:[%s1988_s15 + $0xc] sm:$0x1] (!%p256_p6)  ;;  %v2000_v5 = vld [vmem:[%s1988_s15 + $0x18] sm:$0xf] (!%p256_p6)  ;;  %v1604_v6 = vld [vmem:[%s1988_s15 + $0x1c] sm:$0x1] (!%p256_p6) }
   0xe   : > { %v1615_v7 = vcombine.low (!%p256_p6), %v1995_v2, %v1600_v4  ;;  %v1617_v8 = vcombine.low (!%p256_p6), %v2000_v5, %v1604_v6  ;;  %v2006_v9 = vld [vmem:[%s1988_s15 + $0x20] sm:$0xf] (!%p256_p6)  ;;  %v1606_v10 = vld [vmem:[%s1988_s15 + $0x24] sm:$0x1] (!%p256_p6)  ;;  %v2015_v19 = vld [vmem:[%s1988_s15 + $0x58] sm:$0xf] (!%p256_p6) }
   0xf   : > { %v626_v11 = vrot.slane (!%p256_p6), %v1616_v3, 1  ;;  %v1618_v12 = vcombine.low (!%p256_p6), %v2006_v9, %v1606_v10  ;;  %v563_v13 = vshll.u32 (!%p256_p6), %v1616_v3, 16  ;;  %v2011_v14 = vld [vmem:[%s1988_s15 + $0x60] sm:$0xf] (!%p256_p6)  ;;  %v1610_v15 = vld [vmem:[%s1988_s15 + $0x64] sm:$0x1] (!%p256_p6) }
  0x10   : > { %v625_v16 = vrot.slane (!%p256_p6), %v1615_v7, 1  ;;  %v568_v17 = vshrl.u32 (!%p256_p6), %v1617_v8, 16  ;;  %v570_v18 = vshll.u32 (!%p256_p6), %v1617_v8, 16  ;;  %v554_v20 = vshrl.u32 (!%p256_p6), %v1615_v7, 16  ;;  %v1608_v24 = vld [vmem:[%s1988_s15 + $0x5c] sm:$0x1] (!%p256_p6) }
  0x11   : > { %635 = vrot.lane.b32.xlu1 (!%p256_p6), %v626_v11, %s1908_s16  ;;  %v556_v21 = vshll.u32 (!%p256_p6), %v1615_v7, 16  ;;  %v577_v22 = vshll.u32 (!%p256_p6), %v1618_v12, 16  ;;  %v561_v23 = vshrl.u32 (!%p256_p6), %v1616_v3, 16  ;;  %v575_v26 = vshrl.u32 (!%p256_p6), %v1618_v12, 16  ;;  %v2023_v32 = vld [vmem:[%s1988_s15 + $0x70] sm:$0xf] (!%p256_p6) }
  0x12   : > { %633 = vrot.lane.b32.xlu0 %v625_v16, %s1908_s16  ;;  %v572_v25 = vrot.slane %v570_v18, 1  ;;  %v565_v27 = vrot.slane %v563_v13, 1  ;;  %v1620_v28 = vcombine.low %v2011_v14, %v1610_v15  ;;  %v1619_v31 = vcombine.low %v2015_v19, %v1608_v24  ;;  %v1614_v33 = vld [vmem:[%s1988_s15 + $0x74] sm:$0x1]  ;;  %v2027_v35 = vld [vmem:[%s1988_s15 + $0x68] sm:$0xf] }
  0x13   : > { %v558_v29 = vrot.slane %v556_v21, 1  ;;  %v579_v30 = vrot.slane %v577_v22, 1  ;;  %v1612_v36 = vld [vmem:[%s1988_s15 + $0x6c] sm:$0x1]  ;;  %s1909_s17 = smov 4   ;;  %v1622_v40 = vcombine.low %v2023_v32, %v1614_v33  ;;  %v628_v44 = vrot.slane %v1618_v12, 1 }
  0x14   : > { %v573_v34 = vor.u32 %v572_v25, %v568_v17  ;;  %v591_v39 = vshll.u32 %v1620_v28, 16  ;;  %v566_v41 = vor.u32 %v565_v27, %v561_v23  ;;  %v584_v42 = vshll.u32 %v1619_v31, 16  ;;  %v2039_v58 = vld [vmem:[%s1988_s15 + $0x8] sm:$0xf]  ;;  %v300_v59 = vld [vmem:[%s1988_s15 + $0xc] sm:$0x1] }
  0x15   : > { %v559_v37 = vor.u32 %v558_v29, %v554_v20  ;;  %v580_v38 = vor.u32 %v579_v30, %v575_v26  ;;  %v1621_v43 = vcombine.low %v2027_v35, %v1612_v36  ;;  %v589_v45 = vshrl.u32 %v1620_v28, 16  ;;  %v2043_v60 = vld [vmem:[%s1988_s15] sm:$0xf]  ;;  %v298_v61 = vld [vmem:[%s1988_s15 + $0x4] sm:$0x1]  ;;  %s278_s24 = sand.u32 1, %s1898_s27  }
  0x16   : > { %613 = vrot.lane.b32.xlu1 %v573_v34, %s1909_s17  ;;  %v593_v46 = vrot.slane %v591_v39, 1  ;;  %v605_v47 = vshll.u32 %v1622_v40, 16  ;;  %v627_v48 = vrot.slane %v1617_v8, 1  ;;  %v582_v49 = vshrl.u32 %v1619_v31, 16  ;;  %v2055_v4 = vld [vmem:[%s1988_s15 + $0x18] sm:$0xf] }
  0x17   : > { %609 = vrot.lane.b32.xlu0 %v559_v37, %s1909_s17  ;;  %v586_v50 = vrot.slane %v584_v42, 1  ;;  %v598_v51 = vshll.u32 %v1621_v43, 16  ;;  %v603_v53 = vshrl.u32 %v1622_v40, 16  ;;  %v596_v56 = vshrl.u32 %v1621_v43, 16  ;;  %v304_v6 = vld [vmem:[%s1988_s15 + $0x1c] sm:$0x1] }
  0x18   : > { %v594_v52 = vor.u32 %v593_v46, %v589_v45  ;;  %v607_v54 = vrot.slane %v605_v47, 1  ;;  %v2048_v63 = vcombine.low %v2039_v58, %v300_v59  ;;  %v2052_v3 = vcombine.low %v2043_v60, %v298_v61  ;;  %v2059_v7 = vld [vmem:[%s1988_s15 + $0x10] sm:$0xf]  ;;  %v302_v8 = vld [vmem:[%s1988_s15 + $0x14] sm:$0x1]  ;;  %s1584_s29 = sshll.u32 %s278_s24, 5 }
  0x19   : > { %v587_v55 = vor.u32 %v586_v50, %v582_v49  ;;  %v600_v57 = vrot.slane %v598_v51, 1  ;;  %v630_v10 = vrot.slane %v1620_v28, 1  ;;  %v1592_v12 = vcombine.low %v2055_v4, %v304_v6  ;;  %v2073_v26 = vld [vmem:[%s1988_s15 + $0x58] sm:$0xf]  ;;  %v1873_v30 = vld [vmem:[%s2334_s1 + $0x8] sm:$0x3f]  }
  0x1a   : > { %615 = vrot.lane.b32.xlu1 %v580_v38, %s1909_s17  ;;  %v608_v62 = vor.u32 %v607_v54, %v603_v53  ;;  %v363_v11 = vshll.u32 %v2048_v63, 16  ;;  %v629_v13 = vrot.slane %v1619_v31, 1  ;;  %v356_v15 = vshll.u32 %v2052_v3, 16  ;;  %v308_v36 = vld [vmem:[%s1988_s15 + $0x5c] sm:$0x1]  ;;  %1820 = vmatprep.subr.msk.bf16.mxu0 %vm730_vm0, %v1873_v30  ;;  %s2302_s30 = scalar_lea.vmem [#allocation2], %s1584_s29 }
  0x1b   : > { %611 = vrot.lane.b32.xlu0 %v566_v41, %s1909_s17  ;;  %v601_v1 = vor.u32 %v600_v57, %v596_v56  ;;  %v1591_v16 = vcombine.low %v2059_v7, %v302_v8  ;;  %v632_v17 = vrot.slane %v1622_v40, 1  ;;  %v361_v18 = vshrl.u32 %v2048_v63, 16  ;;  %v2082_v37 = vld [vmem:[%s1988_s15 + $0x50] sm:$0xf]  ;;  %v306_v38 = vld [vmem:[%s1988_s15 + $0x54] sm:$0x1] }
  0x1c   : > { %v365_v20 = vrot.slane %v363_v11, 1  ;;  %v377_v21 = vshll.u32 %v1592_v12, 16  ;;  %v631_v22 = vrot.slane %v1621_v43, 1  ;;  %v354_v23 = vshrl.u32 %v2052_v3, 16  ;;  %v2088_v39 = vld [vmem:[%s2334_s1] sm:$0x3f]  }
  0x1d   : > { %v358_v24 = vrot.slane %v356_v15, 1  ;;  %v370_v25 = vshll.u32 %v1591_v16, 16  ;;  %v375_v28 = vshrl.u32 %v1592_v12, 16  ;;  %v368_v33 = vshrl.u32 %v1591_v16, 16  ;;  %v2091_v40 = vld [vmem:[%s1988_s15 + $0x68] sm:$0xf] }
  0x1e   : > { %639 = vrot.lane.b32.xlu1 %v628_v44, %s1908_s16  ;;  %v366_v27 = vor.u32 %v365_v20, %v361_v18  ;;  %v379_v29 = vrot.slane %v377_v21, 1  ;;  %v312_v41 = vld [vmem:[%s1988_s15 + $0x6c] sm:$0x1]  ;;  %v1594_v43 = vcombine.low %v2073_v26, %v308_v36  ;;  %v2097_v44 = vld [vmem:[%s1988_s15 + $0x60] sm:$0xf]  ;;  %v732_v46 = vsel %vm730_vm0, %v1873_v30, 0 }
  0x1f   : > { %637 = vrot.lane.b32.xlu0 %v627_v48, %s1908_s16  ;;  %v359_v31 = vor.u32 %v358_v24, %v354_v23  ;;  %v372_v34 = vrot.slane %v370_v25, 1  ;;  %v310_v45 = vld [vmem:[%s1988_s15 + $0x64] sm:$0x1]  ;;  %v1593_v48 = vcombine.low %v2082_v37, %v306_v38  ;;  %1751 = vmatpush3.bf16.msra.mxu0 %v732_v46  ;;  %v426_v49 = vrot.slane %v2048_v63, 1  ;;  %v1648_v15 = vld [vmem:[%s1988_s15 + $0x1c] sm:$0x1] }
  0x20   : > { %v380_v42 = vor.u32 %v379_v29, %v375_v28  ;;  %1821 = vmatprep.subr.msk.bf16.mxu0 %vm730_vm0, %v2088_v39  ;;  %v391_v50 = vshll.u32 %v1594_v43, 16  ;;  %v1596_v51 = vcombine.low %v2091_v40, %v312_v41  ;;  %v1595_v54 = vcombine.low %v2097_v44, %v310_v45  ;;  %v2129_v23 = vld [vmem:[%s1988_s15 + $0x28] sm:$0xf]  ;;  %v1652_v24 = vld [vmem:[%s1988_s15 + $0x2c] sm:$0x1]  ;;  %p288_p7 = scmp.lt.s32.totalorder %s1968_s5, 1 }
  0x21   : > { %v373_v47 = vor.u32 %v372_v34, %v368_v33  ;;  %v384_v53 = vshll.u32 %v1593_v48, 16  ;;  %v389_v56 = vshrl.u32 %v1594_v43, 16  ;;  %v427_v61 = vrot.slane %v1591_v16, 1  ;;  %v2121_v16 = vld [vmem:[%s1988_s15 + $0x10] sm:$0xf] }
  0x22   : > { %619 = vrot.lane.b32.xlu1 %v594_v52, %s1909_s17  ;;  %v425_v52 = vrot.slane %v2052_v3, 1  ;;  %v393_v57 = vrot.slane %v391_v50, 1  ;;  %v405_v59 = vshll.u32 %v1596_v51, 16  ;;  %v403_v6 = vshrl.u32 %v1596_v51, 16  ;;  %v2133_v25 = vld [vmem:[%s1988_s15 + $0x20] sm:$0xf] }
  0x23   : > { %617 = vrot.lane.b32.xlu0 %v587_v55, %s1909_s17  ;;  %v428_v55 = vrot.slane %v1592_v12, 1  ;;  %v386_v63 = vrot.slane %v384_v53, 1  ;;  %v396_v11 = vshrl.u32 %v1595_v54, 16  ;;  %v430_v28 = vrot.slane %v1594_v43, 1  ;;  %s289_s27 = scalar_select %p288_p7, %s1968_s5, 1 }
  0x24   : > { %v394_v3 = vor.u32 %v393_v57, %v389_v56  ;;  %v407_v8 = vrot.slane %v405_v59, 1  ;;  %v1664_v30 = vcombine.low %v2129_v23, %v1652_v24  ;;  %v432_v36 = vrot.slane %v1596_v51, 1  ;;  %v2149_v56 = vld [vmem:[%s1988_s15 + $0x60] sm:$0xf]  ;;  %v1654_v57 = vld [vmem:[%s1988_s15 + $0x64] sm:$0x1] }
  0x25   : > { %v431_v43 = vrot.slane %v1595_v54, 1  ;;  %s1585_s9 = sshll.u32 %s289_s27, 1 }
  0x26   : > { %623 = vrot.lane.b32.xlu1 %v608_v62, %s1909_s17  ;;  %v382_v62 = vshrl.u32 %v1593_v48, 16  ;;  %v408_v18 = vor.u32 %v407_v8, %v403_v6  ;;  %v2161_v6 = vld [vmem:[%s1988_s15 + $0x70] sm:$0xf]  ;;  %v1658_v8 = vld [vmem:[%s1988_s15 + $0x74] sm:$0x1]  ;;  %s291_s14 = scalar_lea.vmem %s2341_s8, %s1585_s9 }
  0x27   : > { %621 = vrot.lane.b32.xlu0 %v601_v1, %s1909_s17  ;;  %v398_v1 = vshll.u32 %v1595_v54, 16  ;;  %v1656_v54 = vld [vmem:[%s1988_s15 + $0x6c] sm:$0x1] }
  0x29   : > { %v400_v12 = vrot.slane %v398_v1, 1  ;;  %v2157_v1 = vld [vmem:[%s1988_s15 + $0x78] sm:$0xf] }
  0x2a   : > { %643 = vrot.lane.b32.xlu1 %v630_v10, %s1908_s16  ;;  %v387_v10 = vor.u32 %v386_v63, %v382_v62  ;;  %v1665_v63 = vcombine.low %v2149_v56, %v1654_v57 }
  0x2b   : > { %641 = vrot.lane.b32.xlu0 %v629_v13, %s1908_s16  ;;  %v2117_v13 = vld [vmem:[%s1988_s15 + $0x18] sm:$0xf]  ;;  %v401_v21 = vor.u32 %v400_v12, %v396_v11 }
  0x2c   : > { %v1662_v20 = vcombine.low %v2117_v13, %v1648_v15 }
  0x2e   : > { %647 = vrot.lane.b32.xlu1 %v632_v17, %s1908_s16  ;;  %v1646_v17 = vld [vmem:[%s1988_s15 + $0x14] sm:$0x1]  ;;  %v974_v29 = vshll.u32 %v1662_v20, 16  ;;  %v972_v38 = vshrl.u32 %v1662_v20, 16 }
  0x2f   : > { %645 = vrot.lane.b32.xlu0 %v631_v22, %s1908_s16  ;;  %v1661_v22 = vcombine.low %v2121_v16, %v1646_v17  ;;  %v995_v17 = vshll.u32 %v1665_v63, 16 }
  0x30   : > { %v976_v41 = vrot.slane %v974_v29, 1 }
  0x31   : > { %v967_v33 = vshll.u32 %v1661_v22, 16  ;;  %v965_v45 = vshrl.u32 %v1661_v22, 16  ;;  %v1036_v15 = vrot.slane %v1661_v22, 1 }
  0x32   : > { %411 = vrot.lane.b32.xlu1 %v366_v27, %s1909_s17  ;;  %v1650_v27 = vld [vmem:[%s1988_s15 + $0x24] sm:$0x1] }
  0x33   : > { %409 = vrot.lane.b32.xlu0 %v359_v31, %s1909_s17  ;;  %v429_v31 = vrot.slane %v1593_v48, 1  ;;  %v1663_v34 = vcombine.low %v2133_v25, %v1650_v27  ;;  %v969_v46 = vrot.slane %v967_v33, 1  ;;  %v977_v48 = vor.u32 %v976_v41, %v972_v38 }
  0x35   : > { %v970_v51 = vor.u32 %v969_v46, %v965_v45  ;;  %v1038_v29 = vrot.slane %v1663_v34, 1  ;;  %v1877_v46 = vld [vmem:[%s2336_s3 + $0x8] sm:$0xff]  }
  0x36   : > { %415 = vrot.lane.b32.xlu1 %v380_v42, %s1909_s17  ;;  %v988_v42 = vshll.u32 %v1664_v30, 16 }
  0x37   : > { %413 = vrot.lane.b32.xlu0 %v373_v47, %s1909_s17  ;;  %v981_v47 = vshll.u32 %v1663_v34, 16 }
  0x38   : > { %v990_v50 = vrot.slane %v988_v42, 1 }
  0x39   : > { %v983_v53 = vrot.slane %v981_v47, 1 }
  0x3a   : > { %435 = vrot.lane.b32.xlu1 %v426_v49, %s1908_s16  ;;  %v986_v49 = vshrl.u32 %v1664_v30, 16 }
  0x3b   : > { %433 = vrot.lane.b32.xlu0 %v425_v52, %s1908_s16  ;;  %v979_v52 = vshrl.u32 %v1663_v34, 16  ;;  %v1876_v34 = vld [vmem:[%s2336_s3] sm:$0xff]  }
  0x3c   : > { %v991_v59 = vor.u32 %v990_v50, %v986_v49  ;;  %1780 = vmatprep.subr.bf16.mxu1 %v1876_v34  ;;  %v1878_v49 = vld [vmem:[%s2336_s3 + $0x10] sm:$0xff]  }
  0x3d   : > { %v984_v62 = vor.u32 %v983_v53, %v979_v52  ;;  %1781 = vmatpush3.bf16.msra.mxu1 %v1876_v34  ;;  %v1879_v52 = vld [vmem:[%s2336_s3 + $0x18] sm:$0xff]   ;;  %v1880_v53 = vld [vmem:[%s2336_s3 + $0x20] sm:$0xff]  }
  0x3e   : > { %439 = vrot.lane.b32.xlu1 %v428_v55, %s1908_s16  ;;  %v2145_v55 = vld [vmem:[%s1988_s15 + $0x68] sm:$0xf]  ;;  %1782 = vmatprep.subr.bf16.mxu1 %v1877_v46 }
  0x3f   : > { %437 = vrot.lane.b32.xlu0 %v427_v61, %s1908_s16  ;;  %v1666_v61 = vcombine.low %v2145_v55, %v1656_v54  ;;  %v1881_v54 = vld [vmem:[%s2336_s3 + $0x28] sm:$0xff]  }
  0x41   : > { %v1002_v11 = vshll.u32 %v1666_v61, 16  ;;  %v1000_v24 = vshrl.u32 %v1666_v61, 16  ;;  %v1041_v47 = vrot.slane %v1666_v61, 1  ;;  %1783 = vmatpush3.bf16.msra.mxu1 %v1877_v46 }
  0x42   : > { %419 = vrot.lane.b32.xlu1 %v394_v3, %s1909_s17  ;;  %v1660_v3 = vld [vmem:[%s1988_s15 + $0x7c] sm:$0x1]  ;;  %1784 = vmatprep.subr.bf16.mxu1 %v1878_v49  ;;  %s1699_s15 = sshll.u32 (%p1980_p4), %s1968_s5, 4 }
  0x43   : > { %417 = vrot.lane.b32.xlu0 %v387_v10, %s1909_s17  ;;  %v1037_v10 = vrot.slane %v1662_v20, 1  ;;  %v1668_v12 = vcombine.low %v2157_v1, %v1660_v3  ;;  %v1004_v27 = vrot.slane %v1002_v11, 1  ;;  %v997_v20 = vrot.slane %v995_v17, 1  ;;  %s1437_s18 = scalar_lea.vmem (%p1980_p4), %s2340_s7, %s1699_s15 }
  0x45   : > { %v1014_v38 = vshrl.u32 %v1668_v12, 16  ;;  %v1043_v50 = vrot.slane %v1668_v12, 1  ;;  %1785 = vmatpush3.bf16.msra.mxu1 %v1878_v49 }
  0x46   : > { %423 = vrot.lane.b32.xlu1 %v408_v18, %s1909_s17  ;;  %v1667_v18 = vcombine.low %v2161_v6, %v1658_v8  ;;  %1786 = vmatprep.subr.bf16.mxu1 %v1879_v52 }
  0x47   : > { %421 = vrot.lane.b32.xlu0 %v401_v21, %s1909_s17  ;;  %v1039_v21 = vrot.slane %v1664_v30, 1 }
  0x48   : > { %v1009_v33 = vshll.u32 %v1667_v18, 16  ;;  %v1007_v42 = vshrl.u32 %v1667_v18, 16 }
  0x49   : > { %1787 = vmatpush3.bf16.msra.mxu1 %v1879_v52 }
  0x4a   : > { %443 = vrot.lane.b32.xlu1 %v430_v28, %s1908_s16  ;;  %v1016_v28 = vshll.u32 %v1668_v12, 16  ;;  %1788 = vmatprep.subr.bf16.mxu1 %v1880_v53 }
  0x4b   : > { %441 = vrot.lane.b32.xlu0 %v429_v31, %s1908_s16  ;;  %v993_v31 = vshrl.u32 %v1665_v63, 16 }
  0x4c   : > { %v1018_v22 = vrot.slane %v1016_v28, 1  ;;  %v837_v28 = vsel %vm730_vm0, %v2088_v39, 0 }
  0x4d   : > { %v998_v41 = vor.u32 %v997_v20, %v993_v31  ;;  %1789 = vmatpush3.bf16.msra.mxu1 %v1880_v53 }
  0x4e   : > { %447 = vrot.lane.b32.xlu1 %v432_v36, %s1908_s16  ;;  %v1005_v36 = vor.u32 %v1004_v27, %v1000_v24  ;;  %v1019_v30 = vor.u32 %v1018_v22, %v1014_v38  ;;  %1790 = vmatprep.subr.bf16.mxu1 %v1881_v54 }
  0x4f   : > { %445 = vrot.lane.b32.xlu0 %v431_v43, %s1908_s16  ;;  %v1011_v43 = vrot.slane %v1009_v33, 1 }
  0x51   : > { %v1012_v45 = vor.u32 %v1011_v43, %v1007_v42  ;;  %1791 = vmatpush3.bf16.msra.mxu1 %v1881_v54 }
  0x52   : > { %1022 = vrot.lane.b32.xlu1 %v977_v48, %s1909_s17  ;;  %v1040_v48 = vrot.slane %v1665_v63, 1 }
  0x53   : > { %1020 = vrot.lane.b32.xlu0 %v970_v51, %s1909_s17  ;;  %v1042_v51 = vrot.slane %v1667_v18, 1 }
  0x56   : > { %1026 = vrot.lane.b32.xlu1 %v991_v59, %s1909_s17 }
  0x57   : > { %1024 = vrot.lane.b32.xlu0 %v984_v62, %s1909_s17 }
  0x5a   : > { %1046 = vrot.lane.b32.xlu1 %v1037_v10, %s1908_s16 }
  0x5b   : > { %1044 = vrot.lane.b32.xlu0 %v1036_v15, %s1908_s16 }
  0x5e   : > { %1050 = vrot.lane.b32.xlu1 %v1039_v21, %s1908_s16 }
  0x5f   : > { %1048 = vrot.lane.b32.xlu0 %v1038_v29, %s1908_s16 }
  0x62   : > { %1030 = vrot.lane.b32.xlu1 %v1005_v36, %s1909_s17 }
  0x63   : > { %1028 = vrot.lane.b32.xlu0 %v998_v41, %s1909_s17 }
  0x66   : > { %1034 = vrot.lane.b32.xlu1 %v1019_v30, %s1909_s17 }
  0x67   : > { %1032 = vrot.lane.b32.xlu0 %v1012_v45, %s1909_s17 }
  0x6a   : > { %1054 = vrot.lane.b32.xlu1 %v1041_v47, %s1908_s16 }
  0x6b   : > { %1052 = vrot.lane.b32.xlu0 %v1040_v48, %s1908_s16 }
  0x6e   : > { %1058 = vrot.lane.b32.xlu1 %v1043_v50, %s1908_s16 }
  0x6f   : > { %1056 = vrot.lane.b32.xlu0 %v1042_v51, %s1908_s16 }
  0x83   : > { %v636_v57 = vpop.permute.xlu1 %635 }
  0x84   : > { %v634_v59 = vpop.permute.xlu0 %633 }
  0x88   : > { %v614_v61 = vpop.permute.xlu1 %613 }
  0x89   : > { %v610_v62 = vpop.permute.xlu0 %609  ;;  %v657_v21 = vsel %vm449_vm1, %v2000_v5, %v614_v61 }
  0x8a   : > { %v651_v63 = vsel %vm449_vm1, %v1995_v2, %v610_v62 }
  0x8b   : > { %v674_v11 = vsel %vm474_vm2, %v651_v63, %v634_v59 }
  0x8c   : > { %v616_v3 = vpop.permute.xlu1 %615 }
  0x8d   : > { %v612_v8 = vpop.permute.xlu0 %611  ;;  %v660_v15 = vsel %vm449_vm1, %v2006_v9, %v616_v3  ;;  %v1875_v9 = vld [vmem:[%s2334_s1 + $0x10] sm:$0x3f]  }
  0x8e   : > { %v654_v10 = vsel %vm449_vm1, %v1991_v0, %v612_v8  ;;  %v1141_v8 = vsel %vm730_vm0, %v1875_v9, 0 }
  0x8f   : > { %v676_v12 = vsel %vm474_vm2, %v654_v10, %v636_v57 }
  0x90   : > { %v640_v17 = vpop.permute.xlu1 %639  ;;  %v1625_v18 = vcombine.low %v674_v11, %v676_v12 }
  0x91   : > { %v680_v2 = vsel %vm474_vm2, %v660_v15, %v640_v17  ;;  %v638_v24 = vpop.permute.xlu0 %637 }
  0x92   : > { %v678_v27 = vsel %vm474_vm2, %v657_v21, %v638_v24  ;;  %1752 = vmatprep.mubr.msk.bf16.mxu0 %vm717_vm3, %v1625_v18 }
  0x93   : > { %v1626_v0 = vcombine.low %v678_v27, %v680_v2 }
  0x94   : > { %v620_v29 = vpop.permute.xlu1 %619 }
  0x95   : > { %1753 = vmatmul.mubr.msk.bf16.vlgmr.msra.gmra.mrb[0].mxu0 %vm717_vm3, %v1626_v0  ;;  %v618_v31 = vpop.permute.xlu0 %617  ;;  %v666_v33 = vsel %vm449_vm1, %v2011_v14, %v620_v29 }
  0x96   : > { %1761 = vmatpush3.bf16.msra.mxu0 %v837_v28  ;;  %v663_v39 = vsel %vm449_vm1, %v2015_v19, %v618_v31 }
  0x97   : > { %1822 = vmatprep.subr.msk.bf16.mxu0 %vm730_vm0, %v1875_v9 }
  0x98   : > { %v624_v5 = vpop.permute.xlu1 %623 }
  0x99   : > { %v622_v20 = vpop.permute.xlu0 %621  ;;  %v672_v43 = vsel %vm449_vm1, %v2023_v32, %v624_v5 }
  0x9a   : > { %v669_v45 = vsel %vm449_vm1, %v2027_v35, %v622_v20 }
  0x9c   : > { %v644_v36 = vpop.permute.xlu1 %643 }
  0x9d   : > { %v684_v38 = vsel %vm474_vm2, %v666_v33, %v644_v36  ;;  %v642_v22 = vpop.permute.xlu0 %641 }
  0x9e   : > { %v682_v41 = vsel %vm474_vm2, %v663_v39, %v642_v22 }
  0x9f   : > { %v1627_v42 = vcombine.low %v682_v41, %v684_v38 }
  0xa0   : > { %v648_v30 = vpop.permute.xlu1 %647 }
  0xa1   : > { %v688_v34 = vsel %vm474_vm2, %v672_v43, %v648_v30  ;;  %1756 = vmatprep.mubr.msk.bf16.mxu0 %vm717_vm3, %v1627_v42  ;;  %v646_v14 = vpop.permute.xlu0 %645 }
  0xa2   : > { %v686_v19 = vsel %vm474_vm2, %v669_v45, %v646_v14 }
  0xa3   : > { %v1628_v46 = vcombine.low %v686_v19, %v688_v34 }
  0xa4   : > { %v412_v47 = vpop.permute.xlu1 %411 }
  0xa5   : > { %1757 = vmatmul.mubr.msk.bf16.gmra.mrb[4].mxu0 %vm717_vm3, %v1628_v46  ;;  %v410_v48 = vpop.permute.xlu0 %409  ;;  %v455_v32 = vsel %vm449_vm1, %v2039_v58, %v412_v47 }
  0xa6   : > { %v452_v35 = vsel %vm449_vm1, %v2043_v60, %v410_v48 }
  0xa8   : > { %v416_v49 = vpop.permute.xlu1 %415 }
  0xa9   : > { %v414_v50 = vpop.permute.xlu0 %413  ;;  %v461_v59 = vsel %vm449_vm1, %v2055_v4, %v416_v49 }
  0xaa   : > { %v458_v62 = vsel %vm449_vm1, %v2059_v7, %v414_v50 }
  0xac   : > { %v436_v51 = vpop.permute.xlu1 %435 }
  0xad   : > { %v478_v52 = vsel %vm474_vm2, %v455_v32, %v436_v51  ;;  %v434_v53 = vpop.permute.xlu0 %433 }
  0xae   : > { %v476_v54 = vsel %vm474_vm2, %v452_v35, %v434_v53 }
  0xaf   : > { %v1634_v57 = vcombine.low %v476_v54, %v478_v52 }
  0xb0   : > { %v440_v61 = vpop.permute.xlu1 %439 }
  0xb1   : > { %v482_v63 = vsel %vm474_vm2, %v461_v59, %v440_v61  ;;  %1762 = vmatprep.mubr.msk.bf16.mxu0 %vm717_vm3, %v1634_v57  ;;  %v438_v58 = vpop.permute.xlu0 %437  ;;  %v1882_v59 = vld [vmem:[%s2336_s3 + $0x30] sm:$0xff]   ;;  %v1680_v61 = vld [vmem:[%s2335_s2] ss:$0 sm:$0xff] }
  0xb2   : > { %v480_v60 = vsel %vm474_vm2, %v458_v62, %v438_v58  ;;  %1792 = vmatprep.subr.bf16.mxu1 %v1882_v59 }
  0xb3   : > { %v1635_v3 = vcombine.low %v480_v60, %v482_v63  ;;  %1793 = vmatpush3.bf16.msra.mxu1 %v1882_v59 }
  0xb4   : > { %v420_v10 = vpop.permute.xlu1 %419 }
  0xb5   : > { %1763 = vmatmul.mubr.msk.bf16.vlgmr.msra.gmra.mrb[0].mxu0 %vm717_vm3, %v1635_v3  ;;  %v418_v11 = vpop.permute.xlu0 %417  ;;  %v467_v7 = vsel %vm449_vm1, %v2073_v26, %v420_v10 }
  0xb6   : > { %1771 = vmatpush3.bf16.msra.mxu0 %v1141_v8  ;;  %v464_v17 = vsel %vm449_vm1, %v2082_v37, %v418_v11 }
  0xb8   : > { %v424_v4 = vpop.permute.xlu1 %423 }
  0xb9   : > { %v422_v12 = vpop.permute.xlu0 %421  ;;  %v473_v27 = vsel %vm449_vm1, %v2091_v40, %v424_v4 }
  0xba   : > { %v470_v28 = vsel %vm449_vm1, %v2097_v44, %v422_v12 }
  0xbc   : > { %v444_v15 = vpop.permute.xlu1 %443 }
  0xbd   : > { %v486_v18 = vsel %vm474_vm2, %v467_v7, %v444_v15  ;;  %v442_v21 = vpop.permute.xlu0 %441 }
  0xbe   : > { %v484_v2 = vsel %vm474_vm2, %v464_v17, %v442_v21 }
  0xbf   : > { %v1636_v24 = vcombine.low %v484_v2, %v486_v18 }
  0xc0   : > { %v448_v0 = vpop.permute.xlu1 %447 }
  0xc1   : > { %v490_v9 = vsel %vm474_vm2, %v473_v27, %v448_v0  ;;  %1766 = vmatprep.mubr.msk.bf16.mxu0 %vm717_vm3, %v1636_v24  ;;  %v446_v26 = vpop.permute.xlu0 %445 }
  0xc2   : > { %v488_v37 = vsel %vm474_vm2, %v470_v28, %v446_v26  ;;  %v1681_v28 = vld [vmem:[%s2337_s4] ss:$0 sm:$0xff] }
  0xc3   : > { %v1637_v29 = vcombine.low %v488_v37, %v490_v9 }
  0xc4   : > { %v1023_v31 = vpop.permute.xlu1 %1022 }
  0xc5   : > { %1767 = vmatmul.mubr.msk.bf16.gmra.mrb[4].mxu0 %vm717_vm3, %v1637_v29  ;;  %v1021_v5 = vpop.permute.xlu0 %1020  ;;  %v1065_v40 = vsel %vm449_vm1, %v2117_v13, %v1023_v31 }
  0xc6   : > { %v1062_v44 = vsel %vm449_vm1, %v2121_v16, %v1021_v5 }
  0xc8   : > { %v1027_v20 = vpop.permute.xlu1 %1026 }
  0xc9   : > { %v1025_v33 = vpop.permute.xlu0 %1024  ;;  %v1071_v42 = vsel %vm449_vm1, %v2129_v23, %v1027_v20 }
  0xca   : > { %v1068_v30 = vsel %vm449_vm1, %v2133_v25, %v1025_v33 }
  0xcc   : > { %v1047_v36 = vpop.permute.xlu1 %1046 }
  0xcd   : > { %v1087_v39 = vsel %vm474_vm2, %v1065_v40, %v1047_v36  ;;  %v1045_v38 = vpop.permute.xlu0 %1044 }
  0xce   : > { %v1085_v22 = vsel %vm474_vm2, %v1062_v44, %v1045_v38 }
  0xcf   : > { %v1671_v41 = vcombine.low %v1085_v22, %v1087_v39 }
  0xd0   : > { %v1051_v43 = vpop.permute.xlu1 %1050 }
  0xd1   : > { %v1091_v45 = vsel %vm474_vm2, %v1071_v42, %v1051_v43  ;;  %1772 = vmatprep.mubr.msk.bf16.mxu0 %vm717_vm3, %v1671_v41  ;;  %v1049_v13 = vpop.permute.xlu0 %1048 }
  0xd2   : > { %v1089_v16 = vsel %vm474_vm2, %v1068_v30, %v1049_v13 }
  0xd3   : > { %v1672_v34 = vcombine.low %v1089_v16, %v1091_v45 }
  0xd4   : > { %v1031_v14 = vpop.permute.xlu1 %1030 }
  0xd5   : > { %1773 = vmatmul.mubr.msk.bf16.vlgmr.msra.gmra.mrb[0].mxu0 %vm717_vm3, %v1672_v34  ;;  %v1029_v19 = vpop.permute.xlu0 %1028  ;;  %v1077_v23 = vsel %vm449_vm1, %v2145_v55, %v1031_v14 }
  0xd6   : > { %v1074_v25 = vsel %vm449_vm1, %v2149_v56, %v1029_v19 }
  0xd8   : > { %v1035_v46 = vpop.permute.xlu1 %1034 }
  0xd9   : > { %v1033_v47 = vpop.permute.xlu0 %1032  ;;  %v1083_v35 = vsel %vm449_vm1, %v2157_v1, %v1035_v46  ;;  %v1883_v1 = vld [vmem:[%s2336_s3 + $0x38] sm:$0xff]  }
  0xda   : > { %v1080_v53 = vsel %vm449_vm1, %v2161_v6, %v1033_v47  ;;  %1794 = vmatprep.subr.bf16.mxu1 %v1883_v1 }
  0xdb   : > { %1795 = vmatpush3.bf16.msra.mxu1 %v1883_v1 }
  0xdc   : > { %v1055_v48 = vpop.permute.xlu1 %1054 }
  0xdd   : > { %v1095_v49 = vsel %vm474_vm2, %v1077_v23, %v1055_v48  ;;  %v1053_v50 = vpop.permute.xlu0 %1052 }
  0xde   : > { %v1093_v32 = vsel %vm474_vm2, %v1074_v25, %v1053_v50 }
  0xdf   : > { %v1673_v51 = vcombine.low %v1093_v32, %v1095_v49 }
  0xe0   : > { %v1059_v52 = vpop.permute.xlu1 %1058 }
  0xe1   : > { %v1099_v54 = vsel %vm474_vm2, %v1083_v35, %v1059_v52  ;;  %1776 = vmatprep.mubr.msk.bf16.mxu0 %vm717_vm3, %v1673_v51  ;;  %v1057_v55 = vpop.permute.xlu0 %1056 }
  0xe2   : > { %v1097_v56 = vsel %vm474_vm2, %v1080_v53, %v1057_v55 }
  0xe3   : > { %v1674_v57 = vcombine.low %v1097_v56, %v1099_v54 }
  0xe5   : > { %1777 = vmatmul.mubr.msk.bf16.gmra.mrb[4].mxu0 %vm717_vm3, %v1674_v57 }
 0x1a8   : > { %v1774_v6 = vpop.f32.mrb[0].mxu0 }
 0x1a9   : > { %v1177_v62 = vpop.f32.mrb[1].mxu0  ;;  %v1225_v58 = vadd.f32 %v1774_v6, %v1680_v61 }
 0x1aa   : > { %v1775_v63 = vpop.f32.mrb[2].mxu0  ;;  %v1223_v8 = vadd.f32 %v1680_v61, %v1177_v62 }
 0x1ab   : > { %v1226_v60 = vadd.f32 %v1775_v63, %v1680_v61  ;;  %v1180_v3 = vpop.f32.mrb[3].mxu0 }
 0x1ac   : > { %v1224_v10 = vadd.f32 %v1680_v61, %v1180_v3 }
 0x1ad   : > { %v1232_v11 = vpack.c.bf16 %v1226_v60, %v1225_v58 }
 0x1ae   : > { %v1231_v4 = vpack.c.bf16 %v1224_v10, %v1223_v8 }
 0x1b0   : > { %1796 = vmatprep.mubr.bf16.mxu1 %v1231_v4 }
 0x1b1   : > { %1797 = vmatmul.mubr.bf16.vlgmr.msra.gmra.mrb[0].mxu1 %v1232_v11 }
 0x1b8   : > { %v1778_v12 = vpop.f32.mrb[4].mxu0 }
 0x1b9   : > { %v1193_v7 = vpop.f32.mrb[5].mxu0  ;;  %v1229_v17 = vadd.f32 %v1778_v12, %v1680_v61 }
 0x1ba   : > { %v1779_v15 = vpop.f32.mrb[6].mxu0  ;;  %v1227_v2 = vadd.f32 %v1680_v61, %v1193_v7 }
 0x1bb   : > { %v1230_v18 = vadd.f32 %v1779_v15, %v1680_v61  ;;  %v1196_v21 = vpop.f32.mrb[7].mxu0 }
 0x1bc   : > { %v1228_v24 = vadd.f32 %v1680_v61, %v1196_v21 }
 0x1bd   : > { %v1234_v27 = vpack.c.bf16 %v1230_v18, %v1229_v17 }
 0x1be   : > { %v1233_v0 = vpack.c.bf16 %v1228_v24, %v1227_v2 }
 0x1c0   : > { %1800 = vmatprep.mubr.bf16.mxu1 %v1233_v0 }
 0x1c1   : > { %1801 = vmatmul.mubr.bf16.gmra.mrb[4].mxu1 %v1234_v27 }
 0x284   : > { %v1798_v9 = vpop.f32.mrb[0].mxu1 }
 0x285   : > { %v1340_v26 = vpop.f32.mrb[1].mxu1  ;;  %v1349_v31 = vadd.f32 %v1798_v9, %v1681_v28 }
 0x286   : > { %v1341_v37 = vadd.f32 %v1681_v28, %v1340_v26  ;;  %v1799_v29 = vpop.f32.mrb[2].mxu1 }
 0x287   : > { %v1352_v5 = vadd.f32 %v1799_v29, %v1681_v28  ;;  %v1343_v20 = vpop.f32.mrb[3].mxu1  ;;  %v1386_v22 = vmul.f32 %v1349_v31, %v1349_v31 }
 0x288   : > { %v1344_v33 = vadd.f32 %v1681_v28, %v1343_v20  ;;  %v1384_v36 = vmul.f32 %v1341_v37, %v1341_v37 }
 0x289   : > { %v1708_v40 = vpack.c.bf16 %v1352_v5, %v1349_v31  ;;  %v1387_v43 = vmul.f32 %v1352_v5, %v1352_v5 }
 0x28a   : > { %v1371_v44 = vadd.f32 %v1344_v33, %v1341_v37  ;;  %v1385_v39 = vmul.f32 %v1344_v33, %v1344_v33  ;;  %v1703_v38 = vpack.c.bf16 %v1344_v33, %v1341_v37 }
 0x28b   : > { %1720 = vst [vmem:[%s2302_s30 + $0x8] sm:$0xff] %v1708_v40  }
 0x28c   : > { %v1372_v41 = vadd.f32 %v1371_v44, %v1349_v31  ;;  %v1392_v42 = vadd.f32 %v1385_v39, %v1384_v36  ;;  %1704 = vst [vmem:[%s2302_s30] sm:$0xff] %v1703_v38  }
 0x28e   : > { %v1393_v30 = vadd.f32 %v1392_v42, %v1386_v22  ;;  %v1373_v45 = vadd.f32 %v1372_v41, %v1352_v5 }
 0x290   : > { %v1394_v13 = vadd.f32 %v1393_v30, %v1387_v43 }
 0x292   : > { %v1457_v17 = vld [vmem:[%s2302_s30 + $0x8] sm:$0xff] (%p1980_p4)  }
 0x293   : > { %v1453_v15 = vld [vmem:[%s2302_s30] sm:$0xff] (%p1980_p4)   ;;  %1458 = vst [vmem:[%s1437_s18 + $0x8] sm:$0xff] (%p1980_p4), %v1457_v17  }
 0x294   : > { %v1802_v16 = vpop.f32.mrb[4].mxu1  ;;  %1454 = vst [vmem:[%s1437_s18] sm:$0xff] (%p1980_p4), %v1453_v15  }
 0x295   : > { %v1356_v34 = vpop.f32.mrb[5].mxu1  ;;  %v1365_v46 = vadd.f32 %v1802_v16, %v1681_v28 }
 0x296   : > { %v1357_v14 = vadd.f32 %v1681_v28, %v1356_v34  ;;  %v1803_v19 = vpop.f32.mrb[6].mxu1 }
 0x297   : > { %v1368_v47 = vadd.f32 %v1803_v19, %v1681_v28  ;;  %v1359_v23 = vpop.f32.mrb[7].mxu1  ;;  %v1390_v53 = vmul.f32 %v1365_v46, %v1365_v46 }
 0x298   : > { %v1374_v48 = vadd.f32 %v1373_v45, %v1357_v14  ;;  %v1388_v25 = vmul.f32 %v1357_v14, %v1357_v14  ;;  %v1360_v49 = vadd.f32 %v1681_v28, %v1359_v23 }
 0x299   : > { %v1718_v50 = vpack.c.bf16 %v1368_v47, %v1365_v46  ;;  %v1391_v56 = vmul.f32 %v1368_v47, %v1368_v47 }
 0x29a   : > { %v1395_v32 = vadd.f32 %v1394_v13, %v1388_v25  ;;  %v1375_v51 = vadd.f32 %v1374_v48, %v1360_v49  ;;  %v1389_v35 = vmul.f32 %v1360_v49, %v1360_v49  ;;  %v1713_v52 = vpack.c.bf16 %v1360_v49, %v1357_v14 }
 0x29b   : > { %1722 = vst [vmem:[%s2302_s30 + $0x18] sm:$0xff] %v1718_v50  }
 0x29c   : > { %v1376_v54 = vadd.f32 %v1375_v51, %v1365_v46  ;;  %v1396_v55 = vadd.f32 %v1395_v32, %v1389_v35  ;;  %1721 = vst [vmem:[%s2302_s30 + $0x10] sm:$0xff] %v1713_v52  }
 0x29e   : > { %v1377_v57 = vadd.f32 %v1376_v54, %v1368_v47  ;;  %v1397_v59 = vadd.f32 %v1396_v55, %v1390_v53 }
 0x2a0   : > { %v1378_v1 = vrot.slane %v1377_v57, 4  ;;  %v1398_v6 = vadd.f32 %v1397_v59, %v1391_v56 }
 0x2a2   : > { %v1379_v61 = vadd.f32 %v1378_v1, %v1377_v57  ;;  %v1399_v62 = vrot.slane %v1398_v6, 4  ;;  %v1465_v21 = vld [vmem:[%s2302_s30 + $0x18] sm:$0xff] (%p1980_p4)  }
 0x2a3   : > { %v1461_v18 = vld [vmem:[%s2302_s30 + $0x10] sm:$0xff] (%p1980_p4)   ;;  %1466 = vst [vmem:[%s1437_s18 + $0x28] sm:$0xff] (%p1980_p4), %v1465_v21  }
 0x2a4   : > { %v1380_v63 = vrot.slane %v1379_v61, 2  ;;  %v1400_v58 = vadd.f32 %v1399_v62, %v1398_v6  ;;  %1462 = vst [vmem:[%s1437_s18 + $0x20] sm:$0xff] (%p1980_p4), %v1461_v18  }
 0x2a6   : > { %v1381_v60 = vadd.f32 %v1380_v63, %v1379_v61  ;;  %v1401_v3 = vrot.slane %v1400_v58, 2 }
 0x2a8   : > { %v1382_v8 = vrot.slane %v1381_v60, 1  ;;  %v1402_v10 = vadd.f32 %v1401_v3, %v1400_v58 }
 0x2a9   : > { %1434 = sbr.rel (!%p1980_p4) target bundleno = 688 (0x2b0), region = 52 }
 0x2aa   : > { %v1403_v11 = vrot.slane %v1402_v10, 1  ;;  %v1383_v4 = vadd.f32 %v1382_v8, %v1381_v60 }
 0x2ac   : > { %v1404_v12 = vadd.f32 %v1403_v11, %v1402_v10 }
 0x2ae   : > { %v1406_v7 = vsel %vm1405_vm4, %v1383_v4, %v1404_v12 }
 0x2af   : > { %1407 = vst [vmem:[%s291_s14] sm:$0x3] %v1406_v7 }
 0x2b0 PF: > { %p16_p8 = scmp.ge.s32.totalorder %s1970_s6, 4   ;;  %s2343_s27 = smov %s1902_s28 }
 0x2b1   : > { %s2344_s28 = smov %s1978_s10  ;;  %s2345_s29 = smov %s1970_s6 }
 0x2b2   :  { %18 = sbr.rel (!%p16_p8) target bundleno = 2 (0x2), region = 133 }

// kernel: down_pallas.3
= control target key start
LH: loop header
LB: loop body
LE: loop exit
PB: predicated region body
PF: predicated region fallthrough
CT: control target
= control target key end

     0   :  { %s3361_s27 = smov 0   ;;  %s3363_s28 = smov 0   ;;  %s4535_s0 = inlined_call_operand.vmem [shape: bf16[2,10,10,128], index: 0, kind: input, shape index: {}]   ;;  %s4536_s1 = inlined_call_operand.vmem [shape: bf16[3,384,128], index: 1, kind: input, shape index: {}]   ;;  %s4537_s2 = inlined_call_operand.vmem [shape: f32[1,128], index: 2, kind: input, shape index: {}]   ;;  %s4538_s3 = inlined_call_operand.vmem [shape: bf16[128,128], index: 3, kind: input, shape index: {}]   ;;  %s4539_s4 = inlined_call_operand.vmem [shape: f32[1,128], index: 4, kind: input, shape index: {}]   ;;  %s4540_s5 = inlined_call_operand.vmem [shape: f32[1,128], index: 5, kind: input, shape index: {}]   ;;  %s4541_s6 = inlined_call_operand.vmem [shape: f32[1,128], index: 6, kind: input, shape index: {}]   ;;  %s4542_s7 = inlined_call_operand.vmem [shape: bf16[2,8,8,128], index: 7, kind: output, shape index: {0}]   ;;  %s4543_s8 = inlined_call_operand.vmem [shape: f32[2,2,128], index: 8, kind: output, shape index: {1}]  }
   0x1   :  { %s3365_s29 = smov 0  }
   0x2 LB: > { %s3374_s30 = sadd.s32 4294967295, %s3314_s29   ;;  %s3376_s9 = sadd.s32 1, %s3314_s29   ;;  %s3314_s29 = sphi %s3365_s29, %s4654_s29   ;;  %s3310_s28 = sphi %s3363_s28, %s4653_s28   ;;  %s3306_s27 = sphi %s3361_s27, %s4652_s27  }
   0x3   : > { %s170_s10 = ssub.s32 %s3314_s29, %s3376_s9  ;;  %s173_s11 = sadd.s32 1, %s3310_s28 }
   0x4   : > { %p171_p0 = scmp.eq.s32.totalorder %s170_s10, 0  ;;  %p183_p1 = scmp.ne.s32.totalorder %s3310_s28, %s3306_s27 }
   0x5   : > { %p184_p2 = scmp.eq.s32.totalorder %s3374_s30, 1  ;;  %p2527_p3 = scmp.ge.s32.totalorder %s3314_s29, 1 }
   0x6   : > { %s3384_s12 = scalar_select %p171_p0, %s3310_s28, %s173_s11  }
   0x7   : > { %p3386_p4 = por %p184_p2, %p183_p1  ;;  %p255_p5 = scmp.lt.s32.totalorder %s3314_s29, 3 }
   0x9   : > { %p256_p6 = pnand %p2527_p3, %p255_p5 }
   0xa   : > { %v3210_v0 = vld [vmem:[%s4536_s1 + $0x100] sm:$0xff] (!%p256_p6)   ;;  %v3213_v3 = vld [vmem:[%s4536_s1 + $0x108] sm:$0xff] (!%p256_p6)   ;;  %v3216_v6 = vld [vmem:[%s4536_s1 + $0x110] sm:$0xff] (!%p256_p6)   ;;  %v391_v8 = vlaneseq (!%p256_p6)  ;;  %s3421_s18 = sshll.u32 (!%p256_p6), %s3374_s30, 2  ;;  %s2791_s19 = sshll.u32 (!%p256_p6), %s3374_s30, 5 }
   0xb   : > { %259 = sbr.rel (%p256_p6) target bundleno = 612 (0x264), region = 48  ;;  %v3211_v1 = vld [vmem:[%s4536_s1 + $0x140] sm:$0xff] (!%p256_p6)   ;;  %2866 = vmatprep.subr.bf16.mxu0 (!%p256_p6), %v3210_v0  ;;  %v3214_v4 = vld [vmem:[%s4536_s1 + $0x148] sm:$0xff] (!%p256_p6)   ;;  %v3217_v7 = vld [vmem:[%s4536_s1 + $0x150] sm:$0xff] (!%p256_p6)   ;;  %s632_s25 = sadd.s32 (!%p256_p6), 1, %s3421_s18  ;;  %v3540_v51 = vstv (!%p256_p6), %s3421_s18 }
   0xc   : > { %v3212_v2 = vld [vmem:[%s4536_s1 + $0xc0] sm:$0xff] (!%p256_p6)   ;;  %3034 = vmatprep.subr.bf16.mxu1 (!%p256_p6), %v3211_v1  ;;  %v3215_v5 = vld [vmem:[%s4536_s1 + $0xc8] sm:$0xff] (!%p256_p6)   ;;  %v3218_v9 = vld [vmem:[%s4536_s1 + $0xd0] sm:$0xff] (!%p256_p6)   ;;  %v3429_v13 = vshrl.u32 (!%p256_p6), %v391_v8, 7  ;;  %v3441_v17 = vstv (!%p256_p6), %s632_s25  ;;  %s3470_s10 = scalar_lea.vmem (!%p256_p6), %s4535_s0, %s2791_s19  ;;  %s1541_s24 = sadd.s32 (!%p256_p6), 2, %s3421_s18 }
   0xd   : > { %2867 = vmatpush3.bf16.msra.mxu0 (!%p256_p6), %v3212_v2  ;;  %3035 = vmatpush3.bf16.msra.mxu1 (!%p256_p6), %v3211_v1  ;;  %v3219_v10 = vld [vmem:[%s4536_s1 + $0x118] sm:$0xff] (!%p256_p6)   ;;  %v3222_v14 = vld [vmem:[%s4536_s1 + $0x120] sm:$0xff] (!%p256_p6)   ;;  %v3225_v18 = vld [vmem:[%s4536_s1 + $0x128] sm:$0xff] (!%p256_p6)   ;;  %v3454_v21 = vadd.s32 (!%p256_p6), 1, %v3441_v17  ;;  %vm720_vm2 = vcmp.ge.s32.totalorder (!%p256_p6), %v3441_v17, 1  ;;  %v3484_v28 = vadd.s32 (!%p256_p6), 2, %v3441_v17 }
   0xe   : > { %2868 = vmatprep.subr.bf16.mxu0 (!%p256_p6), %v3213_v3  ;;  %3036 = vmatprep.subr.bf16.mxu1 (!%p256_p6), %v3214_v4  ;;  %v3220_v11 = vld [vmem:[%s4536_s1 + $0x158] sm:$0xff] (!%p256_p6)   ;;  %v3223_v15 = vld [vmem:[%s4536_s1 + $0x160] sm:$0xff] (!%p256_p6)   ;;  %v3447_v19 = vadd.s32 (!%p256_p6), 8, %v3429_v13  ;;  %v3226_v20 = vld [vmem:[%s4536_s1 + $0x168] sm:$0xff] (!%p256_p6)   ;;  %vm4546_vm0 = vcmp.ge.s32.totalorder (!%p256_p6), %v3429_v13, 1  ;;  %v3513_v42 = vadd.s32 (!%p256_p6), 3, %v3441_v17 }
   0xf   : > { %v3221_v12 = vld [vmem:[%s4536_s1 + $0xd8] sm:$0xff] (!%p256_p6)   ;;  %v3224_v16 = vld [vmem:[%s4536_s1 + $0xe0] sm:$0xff] (!%p256_p6)   ;;  %v3227_v22 = vld [vmem:[%s4536_s1 + $0xe8] sm:$0xff] (!%p256_p6)   ;;  %vm721_vm3 = vcmp.ge.s32.totalorder (!%p256_p6), %v3454_v21, 1  ;;  %vm740_vm6 = vcmp.le.s32.totalorder (!%p256_p6), %v3441_v17, 8  ;;  %vm741_vm9 = vcmp.le.s32.totalorder (!%p256_p6), %v3454_v21, 8 }
  0x10   : > { %v3228_v23 = vld [vmem:[%s4536_s1 + $0x130] sm:$0xff] (!%p256_p6)   ;;  %vm401_vm1 = vcmp.le.s32.totalorder (!%p256_p6), %v3447_v19, 8  ;;  %v3231_v26 = vld [vmem:[%s4536_s1 + $0x138] sm:$0xff] (!%p256_p6)   ;;  %v3489_v29 = vld [vmem:[%s4540_s5] ss:$0 sm:$0xff] (!%p256_p6)  ;;  %vm722_vm10 = vcmp.ge.s32.totalorder (!%p256_p6), %v3484_v28, 1 }
  0x11   : > { %2869 = vmatpush3.bf16.msra.mxu0 (!%p256_p6), %v3215_v5  ;;  %3037 = vmatpush3.bf16.msra.mxu1 (!%p256_p6), %v3214_v4  ;;  %v3229_v24 = vld [vmem:[%s4536_s1 + $0x170] sm:$0xff] (!%p256_p6)   ;;  %v3232_v27 = vld [vmem:[%s4536_s1 + $0x178] sm:$0xff] (!%p256_p6)   ;;  %v3494_v30 = vld [vmem:[%s4541_s6] ss:$0 sm:$0xff] (!%p256_p6)  ;;  %vm723_vm12 = vcmp.ge.s32.totalorder (!%p256_p6), %v3513_v42, 1  ;;  %s278_s25 = sand.u32 (!%p256_p6), 1, %s3306_s27  }
  0x12   : > { %2870 = vmatprep.subr.bf16.mxu0 %v3216_v6  ;;  %3038 = vmatprep.subr.bf16.mxu1 %v3217_v7  ;;  %v3230_v25 = vld [vmem:[%s4536_s1 + $0xf0] sm:$0xff]   ;;  %v2538_v32 = vld [vmem:[%s3470_s10 + $0xc] sm:$0x1]  ;;  %v2546_v34 = vld [vmem:[%s3470_s10 + $0x5c] sm:$0x1]  ;;  %s2528_s11 = sshll.u32 %s278_s25, 5 }
  0x13   : > { %v2537_v31 = vld [vmem:[%s3470_s10 + $0x8] ss:$8 sps:$4 sm:$0xff]   ;;  %v2540_v33 = vld [vmem:[%s3470_s10 + $0x14] sm:$0x1]  ;;  %v3233_v37 = vld [vmem:[%s4536_s1 + $0xf8] sm:$0xff]   ;;  %v653_v39 = vunpack.c.l.bf16 %v2538_v32  ;;  %v661_v43 = vunpack.c.l.bf16 %v2546_v34  ;;  %s4504_s14 = scalar_lea.vmem [#allocation2], %s2528_s11 }
  0x14   : > { %v652_v35 = vunpack.c.l.bf16 %v2537_v31  ;;  %v654_v36 = vunpack.c.h.bf16 %v2537_v31  ;;  %v2548_v38 = vld [vmem:[%s3470_s10 + $0x64] sm:$0x1]  ;;  %v655_v40 = vunpack.c.l.bf16 %v2540_v33  ;;  %vm3508_vm4 = vmand %vm4546_vm0, %vm720_vm2  ;;  %v2541_v56 = vld [vmem:[%s3470_s10 + $0x18] ss:$8 sps:$4 sm:$0xff]   ;;  %p288_p7 = scmp.lt.s32.totalorder %s3374_s30, 1  ;;  %s2842_s20 = sshll.u32 (%p3386_p4), %s3374_s30, 4 }
  0x15   : > { %2871 = vmatpush3.bf16.msra.mxu0 %v3218_v9  ;;  %3039 = vmatpush3.bf16.msra.mxu1 %v3217_v7  ;;  %vm3521_vm5 = vmand %vm401_vm1, %vm720_vm2  ;;  %v3234_v47 = vld [vmem:[%s4536_s1 + $0x40] sm:$0xff]   ;;  %v669_v48 = vmul.f32 %v3489_v29, %v653_v39  ;;  %v663_v57 = vunpack.c.l.bf16 %v2548_v38  ;;  %v2542_v61 = vld [vmem:[%s3470_s10 + $0x1c] sm:$0x1]  ;;  %v677_v63 = vmul.f32 %v3489_v29, %v661_v43  ;;  %v656_v3 = vunpack.c.l.bf16 %v2541_v56  ;;  %s2381_s22 = scalar_lea.vmem (%p3386_p4), %s4542_s7, %s2842_s20 }
  0x16   : > { %2872 = vmatprep.subr.bf16.mxu0 %v3219_v10  ;;  %3040 = vmatprep.subr.bf16.mxu1 %v3220_v11  ;;  %v668_v44 = vmul.f32 %v3489_v29, %v652_v35  ;;  %v670_v45 = vmul.f32 %v3489_v29, %v654_v36  ;;  %v671_v49 = vmul.f32 %v3489_v29, %v655_v40  ;;  %vm3535_vm7 = vmand %vm4546_vm0, %vm721_vm3  ;;  %v3560_v55 = vld [vmem:[%s4536_s1 + $0x80] sm:$0xff]   ;;  %v657_v7 = vunpack.c.l.bf16 %v2542_v61  ;;  %v3241_v35 = vld [vmem:[%s4536_s1 + $0x90] sm:$0xff]   ;;  %s289_s27 = scalar_select %p288_p7, %s3374_s30, 1 }
  0x17   : > { %vm3552_vm8 = vmand %vm401_vm1, %vm721_vm3  ;;  %v685_v58 = vadd.f32 %v3494_v30, %v669_v48  ;;  %v2544_v62 = vld [vmem:[%s3470_s10 + $0x24] sm:$0x1]  ;;  %v658_v8 = vunpack.c.h.bf16 %v2541_v56  ;;  %vm742_vm2 = vcmp.le.s32.totalorder %v3484_v28, 8  ;;  %vm743_vm3 = vcmp.le.s32.totalorder %v3513_v42, 8  ;;  %v3244_v9 = vld [vmem:[%s4536_s1 + $0x98] sm:$0xff]  }
  0x18   : > { %v3543_v52 = vadd.f32 %v3494_v30, %v668_v44  ;;  %v3546_v53 = vadd.f32 %v3494_v30, %v670_v45  ;;  %v687_v59 = vadd.f32 %v3494_v30, %v671_v49  ;;  %vm3570_vm11 = vmand %vm3508_vm4, %vm740_vm6  ;;  %v679_v17 = vmul.f32 %v3489_v29, %v663_v57  ;;  %v3285_v19 = vld [vmem:[%s4538_s3 + $0x18] sm:$0xff]   ;;  %s2529_s15 = sshll.u32 %s289_s27, 1 }
  0x19   : > { %2873 = vmatpush3.bf16.msra.mxu0 %v3221_v12  ;;  %3041 = vmatpush3.bf16.msra.mxu1 %v3220_v11  ;;  %vm3584_vm13 = vmand %vm3521_vm5, %vm740_vm6  ;;  %v701_v4 = vmax.f32 %v685_v58, 0.0  ;;  %v672_v21 = vmul.f32 %v3489_v29, %v656_v3  ;;  %v3236_v3 = vld [vmem:[%s4536_s1] sm:$0xff]   ;;  %s291_s18 = scalar_lea.vmem %s4543_s8, %s2529_s15 }
  0x1a   : > { %2874 = vmatprep.subr.bf16.mxu0 %v3222_v14  ;;  %3042 = vmatprep.subr.bf16.mxu1 %v3223_v15  ;;  %v700_v0 = vmax.f32 %v3543_v52, 0.0  ;;  %v702_v1 = vmax.f32 %v3546_v53, 0.0  ;;  %v703_v5 = vmax.f32 %v687_v59, 0.0  ;;  %vm3592_vm14 = vmand %vm3535_vm7, %vm741_vm9  ;;  %v3251_v52 = vld [vmem:[%s4536_s1 + $0x28] sm:$0xff]  }
  0x1b   : > { %vm3600_vm15 = vmand %vm3552_vm8, %vm741_vm9  ;;  %v777_v12 = vsel %vm3584_vm13, %v701_v4, 0.0  ;;  %v3651_v38 = vadd.f32 %v3494_v30, %v672_v21  ;;  %v3239_v21 = vld [vmem:[%s4536_s1 + $0x8] sm:$0xff]  }
  0x1c   : > { %v776_v10 = vsel %vm3570_vm11, %v700_v0, 0.0  ;;  %v778_v11 = vsel %vm3592_vm14, %v702_v1, 0.0  ;;  %v779_v14 = vsel %vm3600_vm15, %v703_v5, 0.0  ;;  %vm3624_vm4 = vmand %vm4546_vm0, %vm722_vm10  ;;  %v2798_v59 = vpack.c.bf16 %v702_v1, %v700_v0 }
  0x1d   : > { %2875 = vmatpush3.bf16.msra.mxu0 %v3224_v16  ;;  %3043 = vmatpush3.bf16.msra.mxu1 %v3223_v15  ;;  %v659_v15 = vunpack.c.l.bf16 %v2544_v62  ;;  %v3616_v16 = vadd.s32 1, %v3540_v51  ;;  %vm3638_vm5 = vmand %vm401_vm1, %vm722_vm10  ;;  %v704_v49 = vmax.f32 %v3651_v38, 0.0 }
  0x1e   : > { %2876 = vmatprep.subr.bf16.mxu0 %v3225_v18  ;;  %3044 = vmatprep.subr.bf16.mxu1 %v3226_v20  ;;  %v792_v18 = vpack.c.bf16 %v777_v12, %v776_v10  ;;  %vm3646_vm6 = vmand %vm4546_vm0, %vm723_vm12 }
  0x1f   : > { %vm3658_vm7 = vmand %vm401_vm1, %vm723_vm12 }
  0x20   : > { %v801_v31 = vshrl.u32 %v792_v18, 16  ;;  %v803_v32 = vshll.u32 %v792_v18, 16  ;;  %v864_v36 = vrot.slane %v792_v18, 1  ;;  %vm3668_vm8 = vmand %vm3624_vm4, %vm742_vm2 }
  0x21   : > { %2877 = vmatpush3.bf16.msra.mxu0 %v3227_v22  ;;  %3045 = vmatpush3.bf16.msra.mxu1 %v3226_v20  ;;  %v793_v20 = vpack.c.bf16 %v779_v14, %v778_v11  ;;  %vm3678_vm9 = vmand %vm3638_vm5, %vm742_vm2  ;;  %v780_v61 = vsel %vm3668_vm8, %v704_v49, 0.0  ;;  %vm429_vm5 = vcmp.le.s32.totalorder %v3616_v16, 8 }
  0x22   : > { %2878 = vmatprep.subr.bf16.mxu0 %v3228_v23  ;;  %3046 = vmatprep.subr.bf16.mxu1 %v3229_v24  ;;  %v3629_v23 = vadd.f32 %v3494_v30, %v677_v63  ;;  %v805_v41 = vrot.slane %v803_v32, 1  ;;  %vm3686_vm10 = vmand %vm3646_vm6, %vm743_vm3 }
  0x23   : > { %v808_v33 = vshrl.u32 %v793_v20, 16  ;;  %v810_v34 = vshll.u32 %v793_v20, 16  ;;  %vm3694_vm12 = vmand %vm3658_vm7, %vm743_vm3  ;;  %vm404_vm3 = vcmp.ge.s32.totalorder %v3540_v51, 1 }
  0x24   : > { %v806_v53 = vor.u32 %v805_v41, %v801_v31  ;;  %vm2797_vm2 = vmpackc.low %vm3592_vm14, %vm3570_vm11  ;;  %v709_v4 = vmax.f32 %v3629_v23, 0.0 }
  0x25   : > { %2879 = vmatpush3.bf16.msra.mxu0 %v3230_v25  ;;  %3047 = vmatpush3.bf16.msra.mxu1 %v3229_v24  ;;  %v673_v24 = vmul.f32 %v3489_v29, %v657_v7  ;;  %v674_v25 = vmul.f32 %v3489_v29, %v658_v8  ;;  %v812_v43 = vrot.slane %v810_v34, 1  ;;  %v3237_v7 = vld [vmem:[%s4536_s1 + $0x48] sm:$0xff]   ;;  %vm4544_vm4 = vmpackc.low %vm3686_vm10, %vm3668_vm8 }
  0x26   : > { %2880 = vmatprep.subr.bf16.mxu0 %v3231_v26  ;;  %3048 = vmatprep.subr.bf16.mxu1 %v3232_v27  ;;  %v675_v26 = vmul.f32 %v3489_v29, %v659_v15  ;;  %v3238_v15 = vld [vmem:[%s4536_s1 + $0x88] sm:$0xff]   ;;  %vm3819_vm6 = vmand %vm4546_vm0, %vm404_vm3 }
  0x27   : > { %v689_v39 = vadd.f32 %v3494_v30, %v673_v24  ;;  %v690_v44 = vadd.f32 %v3494_v30, %v674_v25  ;;  %v813_v54 = vor.u32 %v812_v43, %v808_v33  ;;  %v2549_v43 = vld [vmem:[%s3470_s10 + $0x68] ss:$8 sps:$4 sm:$0xff]  }
  0x28   : > { %v691_v45 = vadd.f32 %v3494_v30, %v675_v26 }
  0x29   : > { %2881 = vmatpush3.bf16.msra.mxu0 %v3233_v37  ;;  %3049 = vmatpush3.bf16.msra.mxu1 %v3232_v27  ;;  %v865_v37 = vrot.slane %v793_v20, 1  ;;  %v705_v50 = vmax.f32 %v689_v39, 0.0  ;;  %v706_v56 = vmax.f32 %v690_v44, 0.0  ;;  %v2602_v63 = vcombine.low %v806_v53, %v813_v54  ;;  %v2545_v20 = vld [vmem:[%s3470_s10 + $0x58] ss:$8 sps:$4 sm:$0xff]   ;;  %v3240_v27 = vld [vmem:[%s4536_s1 + $0x50] sm:$0xff]  }
  0x2a   : > { %2918 = vmatprep.subr.bf16.mxu0 %v3234_v47  ;;  %3058 = vmatprep.subr.bf16.mxu1 %v3560_v55  ;;  %v695_v47 = vadd.f32 %v3494_v30, %v679_v17  ;;  %v707_v57 = vmax.f32 %v691_v45, 0.0  ;;  %v660_v23 = vunpack.c.l.bf16 %v2545_v20  ;;  %v662_v24 = vunpack.c.h.bf16 %v2545_v20 }
  0x2b   : > { %v2603_v48 = vcombine.low %v864_v36, %v865_v37  ;;  %v781_v62 = vsel %vm3678_vm9, %v705_v50, 0.0  ;;  %v782_v42 = vsel %vm3686_vm10, %v706_v56, 0.0  ;;  %1145 = vmatprep.mubr.bf16.mxu0 %v2602_v63  ;;  %v3242_v36 = vld [vmem:[%s4536_s1 + $0x10] sm:$0xff]   ;;  %v785_v37 = vsel %vm3584_vm13, %v709_v4, 0.0 }
  0x2c   : > { %v783_v0 = vsel %vm3694_vm12, %v707_v57, 0.0  ;;  %v794_v1 = vpack.c.bf16 %v781_v62, %v780_v61  ;;  %v711_v8 = vmax.f32 %v695_v47, 0.0  ;;  %2799 = vmatmul.mubr.msk.bf16.vlgmr.msra.gmra.mrb[0].mxu0 %vm2797_vm2, %v2798_v59  ;;  %v676_v32 = vmul.f32 %v3489_v29, %v660_v23  ;;  %v2550_v47 = vld [vmem:[%s3470_s10 + $0x6c] sm:$0x1]  ;;  %v3245_v62 = vld [vmem:[%s4536_s1 + $0x18] sm:$0xff]  }
  0x2d   : > { %3050 = vmatprep.mubr.bf16.mxu1 %v2603_v48  ;;  %v795_v5 = vpack.c.bf16 %v783_v0, %v782_v42  ;;  %2919 = vmatpush3.bf16.msra.mxu0 %v3236_v3  ;;  %v678_v33 = vmul.f32 %v3489_v29, %v662_v24  ;;  %v2801_v38 = vpack.c.bf16 %v706_v56, %v704_v49  ;;  %v2552_v48 = vld [vmem:[%s3470_s10 + $0x74] sm:$0x1]  ;;  %v664_v49 = vunpack.c.l.bf16 %v2549_v43  ;;  %v3246_v3 = vld [vmem:[%s4536_s1 + $0x60] sm:$0xff]  }
  0x2e   : > { %v866_v10 = vrot.slane %v794_v1, 1  ;;  %v815_v11 = vshrl.u32 %v794_v1, 16  ;;  %v817_v12 = vshll.u32 %v794_v1, 16  ;;  %2920 = vmatprep.subr.bf16.mxu0 %v3237_v7  ;;  %v3749_v39 = vadd.f32 %v3494_v30, %v676_v32 }
  0x2f   : > { %v867_v14 = vrot.slane %v795_v5, 1  ;;  %v822_v17 = vshrl.u32 %v795_v5, 16  ;;  %v824_v18 = vshll.u32 %v795_v5, 16  ;;  %v3752_v40 = vadd.f32 %v3494_v30, %v678_v33 }
  0x30   : > { %v819_v22 = vrot.slane %v817_v12, 1  ;;  %v787_v2 = vsel %vm3600_vm15, %v711_v8, 0.0  ;;  %v708_v44 = vmax.f32 %v3749_v39, 0.0  ;;  %v666_v50 = vunpack.c.h.bf16 %v2549_v43 }
  0x31   : > { %v2606_v25 = vcombine.low %v866_v10, %v867_v14  ;;  %v826_v26 = vrot.slane %v824_v18, 1  ;;  %2921 = vmatpush3.bf16.msra.mxu0 %v3239_v21  ;;  %v710_v45 = vmax.f32 %v3752_v40, 0.0  ;;  %v665_v53 = vunpack.c.l.bf16 %v2550_v47  ;;  %v3247_v14 = vld [vmem:[%s4536_s1 + $0xa0] sm:$0xff]   ;;  %v3250_v47 = vld [vmem:[%s4536_s1 + $0xa8] sm:$0xff]  }
  0x32   : > { %v820_v31 = vor.u32 %v819_v22, %v815_v11  ;;  %2922 = vmatprep.subr.bf16.mxu0 %v3240_v27  ;;  %v667_v54 = vunpack.c.l.bf16 %v2552_v48  ;;  %vm405_vm13 = vcmp.ge.s32.totalorder %v3616_v16, 1  ;;  %v3769_v56 = vadd.s32 2, %v3540_v51 }
  0x33   : > { %3051 = vmatmul.mubr.bf16.vlgmr.msra.gmra.mrb[0].mxu1 %v2606_v25  ;;  %v827_v34 = vor.u32 %v826_v26, %v822_v17  ;;  %v784_v57 = vsel %vm3570_vm11, %v708_v44, 0.0  ;;  %v786_v59 = vsel %vm3592_vm14, %v710_v45, 0.0  ;;  %v680_v61 = vmul.f32 %v3489_v29, %v664_v49  ;;  %v3249_v17 = vld [vmem:[%s4536_s1 + $0x68] sm:$0xff]  }
  0x34   : > { %3059 = vmatpush3.bf16.msra.mxu1 %v3560_v55  ;;  %v3243_v55 = vld [vmem:[%s4536_s1 + $0x58] sm:$0xff]   ;;  %v796_v63 = vpack.c.bf16 %v785_v37, %v784_v57  ;;  %v797_v42 = vpack.c.bf16 %v787_v2, %v786_v59  ;;  %v681_v0 = vmul.f32 %v3489_v29, %v665_v53  ;;  %vm428_vm15 = vcmp.le.s32.totalorder %v3540_v51, 8  ;;  %v298_v2 = vld [vmem:[%s3470_s10 + $0x4] sm:$0x1]  ;;  %v3252_v53 = vld [vmem:[%s4536_s1 + $0x70] sm:$0xff]  }
  0x35   : > { %3060 = vmatprep.subr.bf16.mxu1 %v3238_v15  ;;  %v2605_v41 = vcombine.low %v820_v31, %v827_v34  ;;  %2923 = vmatpush3.bf16.msra.mxu0 %v3242_v36  ;;  %v3791_v1 = vadd.s32 3, %v3540_v51  ;;  %v682_v4 = vmul.f32 %v3489_v29, %v666_v50  ;;  %v683_v5 = vmul.f32 %v3489_v29, %v667_v54  ;;  %v3255_v51 = vld [vmem:[%s4536_s1 + $0x78] sm:$0xff]  }
  0x36   : > { %2924 = vmatprep.subr.bf16.mxu0 %v3243_v55  ;;  %v696_v7 = vadd.f32 %v3494_v30, %v680_v61  ;;  %v829_v8 = vshrl.u32 %v796_v63, 16  ;;  %v831_v10 = vshll.u32 %v796_v63, 16  ;;  %v836_v11 = vshrl.u32 %v797_v42, 16  ;;  %v3256_v34 = vld [vmem:[%s4536_s1 + $0xb8] sm:$0xff]  }
  0x37   : > { %1153 = vmatprep.mubr.bf16.mxu0 %v2605_v41  ;;  %v838_v12 = vshll.u32 %v797_v42, 16  ;;  %v697_v18 = vadd.f32 %v3494_v30, %v681_v0  ;;  %v698_v20 = vadd.f32 %v3494_v30, %v682_v4  ;;  %v699_v21 = vadd.f32 %v3494_v30, %v683_v5  ;;  %v300_v41 = vld [vmem:[%s3470_s10 + $0xc] sm:$0x1]  ;;  %v301_v5 = vld [vmem:[%s3470_s10 + $0x10] ss:$8 sps:$4 sm:$0xff]  }
  0x38   : > { %3061 = vmatpush3.bf16.msra.mxu1 %v3238_v15  ;;  %2802 = vmatmul.mubr.msk.bf16.gmra.mrb[4].mxu0 %vm4544_vm4, %v2801_v38  ;;  %v3248_v15 = vld [vmem:[%s4536_s1 + $0x20] sm:$0xff]   ;;  %v712_v22 = vmax.f32 %v696_v7, 0.0  ;;  %v833_v23 = vrot.slane %v831_v10, 1  ;;  %v868_v25 = vrot.slane %v796_v63, 1  ;;  %v869_v26 = vrot.slane %v797_v42, 1  ;;  %vm3848_vm4 = vmand %vm401_vm1, %vm404_vm3  ;;  %v3254_v10 = vld [vmem:[%s4536_s1 + $0x30] sm:$0xff]  }
  0x39   : > { %3062 = vmatprep.subr.bf16.mxu1 %v3241_v35  ;;  %2925 = vmatpush3.bf16.msra.mxu0 %v3245_v62  ;;  %v840_v24 = vrot.slane %v838_v12, 1  ;;  %v713_v27 = vmax.f32 %v697_v18, 0.0  ;;  %v714_v31 = vmax.f32 %v698_v20, 0.0  ;;  %v715_v32 = vmax.f32 %v699_v21, 0.0  ;;  %v297_v38 = vld [vmem:[%s3470_s10] ss:$8 sps:$4 sm:$0xff]   ;;  %vm3877_vm3 = vmand %vm401_vm1, %vm405_vm13 }
  0x3a   : > { %2926 = vmatprep.subr.bf16.mxu0 %v3246_v3  ;;  %v788_v33 = vsel %vm3668_vm8, %v712_v22, 0.0  ;;  %v2609_v37 = vcombine.low %v868_v25, %v869_v26  ;;  %v3829_v55 = vstv %s1541_s24  ;;  %v2804_v43 = vpack.c.bf16 %v710_v45, %v708_v44  ;;  %v3253_v3 = vld [vmem:[%s4536_s1 + $0xb0] sm:$0xff]   ;;  %vm3906_vm11 = vmand %vm3848_vm4, %vm428_vm15 }
  0x3b   : > { %v841_v36 = vor.u32 %v840_v24, %v836_v11  ;;  %v789_v48 = vsel %vm3678_vm9, %v713_v27, 0.0  ;;  %v790_v49 = vsel %vm3686_vm10, %v714_v31, 0.0  ;;  %v791_v50 = vsel %vm3694_vm12, %v715_v32, 0.0  ;;  %vm3865_vm9 = vmand %vm4546_vm0, %vm405_vm13  ;;  %v302_v20 = vld [vmem:[%s3470_s10 + $0x14] sm:$0x1] }
  0x3c   : > { %3063 = vmatpush3.bf16.msra.mxu1 %v3241_v35  ;;  %v834_v35 = vor.u32 %v833_v23, %v829_v8  ;;  %vm407_vm7 = vcmp.ge.s32.totalorder %v3791_v1, 1  ;;  %v798_v44 = vpack.c.bf16 %v789_v48, %v788_v33  ;;  %v799_v28 = vpack.c.bf16 %v791_v50, %v790_v49  ;;  %3054 = vmatprep.mubr.bf16.mxu1 %v2609_v37  ;;  %vm3896_vm13 = vmand %vm3819_vm6, %vm428_vm15  ;;  %v304_v24 = vld [vmem:[%s3470_s10 + $0x1c] sm:$0x1]  ;;  %v2682_v33 = vld [vmem:[%s3470_s10 + $0x2c] sm:$0x1] }
  0x3d   : > { %3064 = vmatprep.subr.bf16.mxu1 %v3244_v9  ;;  %2927 = vmatpush3.bf16.msra.mxu0 %v3248_v15  ;;  %v313_v45 = vunpack.c.l.bf16 %v297_v38  ;;  %v314_v54 = vunpack.c.l.bf16 %v298_v2  ;;  %v315_v57 = vunpack.c.h.bf16 %v297_v38  ;;  %v316_v59 = vunpack.c.l.bf16 %v300_v41  ;;  %vm3927_vm14 = vmand %vm3865_vm9, %vm429_vm5  ;;  %v3257_v49 = vld [vmem:[%s4536_s1 + $0x38] sm:$0xff]  }
  0x3e   : > { %v2608_v40 = vcombine.low %v834_v35, %v841_v36  ;;  %2928 = vmatprep.subr.bf16.mxu0 %v3249_v17  ;;  %vm430_vm12 = vcmp.le.s32.totalorder %v3769_v56, 8  ;;  %v843_v62 = vshrl.u32 %v798_v44, 16  ;;  %v845_v63 = vshll.u32 %v798_v44, 16  ;;  %vm3982_vm9 = vmand %vm4546_vm0, %vm407_vm7 }
  0x3f   : > { %v850_v42 = vshrl.u32 %v799_v28, 16  ;;  %v852_v0 = vshll.u32 %v799_v28, 16  ;;  %v870_v7 = vrot.slane %v798_v44, 1  ;;  %v871_v8 = vrot.slane %v799_v28, 1 }
  0x40   : > { %3065 = vmatpush3.bf16.msra.mxu1 %v3244_v9  ;;  %v3856_v9 = vpack.c.bf16 %v714_v31, %v712_v22  ;;  %1161 = vmatprep.mubr.bf16.mxu0 %v2608_v40  ;;  %v336_v11 = vmul.f32 %v3489_v29, %v313_v45  ;;  %v337_v12 = vmul.f32 %v3489_v29, %v314_v54  ;;  %v847_v6 = vrot.slane %v845_v63, 1  ;;  %v3258_v54 = vld [vmem:[%s4536_s1 + $0x1c0] sm:$0xff]  }
  0x41   : > { %3066 = vmatprep.subr.bf16.mxu1 %v3247_v14  ;;  %2805 = vmatmul.mubr.msk.bf16.gmra.mrb[8].mxu0 %vm2797_vm2, %v2804_v43  ;;  %v338_v15 = vmul.f32 %v3489_v29, %v315_v57  ;;  %v339_v17 = vmul.f32 %v3489_v29, %v316_v59  ;;  %v2612_v21 = vcombine.low %v870_v7, %v871_v8  ;;  %v317_v25 = vunpack.c.l.bf16 %v301_v5  ;;  %vm3939_vm2 = vmand %vm3877_vm3, %vm429_vm5  ;;  %v3263_v57 = vld [vmem:[%s4536_s1 + $0x188] sm:$0xff]  }
  0x42   : > { %2929 = vmatpush3.bf16.msra.mxu0 %v3251_v52  ;;  %v3912_v22 = vadd.f32 %v3494_v30, %v336_v11  ;;  %v360_v23 = vadd.f32 %v3494_v30, %v337_v12  ;;  %v848_v26 = vor.u32 %v847_v6, %v843_v62  ;;  %v318_v38 = vunpack.c.l.bf16 %v302_v20 }
  0x43   : > { %2930 = vmatprep.subr.bf16.mxu0 %v3252_v53  ;;  %v3920_v31 = vadd.f32 %v3494_v30, %v338_v15  ;;  %v362_v32 = vadd.f32 %v3494_v30, %v339_v17  ;;  %v319_v2 = vunpack.c.h.bf16 %v301_v5  ;;  %3055 = vmatmul.mubr.bf16.gmra.mrb[4].mxu1 %v2612_v21  ;;  %v320_v48 = vunpack.c.l.bf16 %v304_v24 }
  0x44   : > { %3067 = vmatpush3.bf16.msra.mxu1 %v3247_v14  ;;  %v854_v14 = vrot.slane %v852_v0, 1  ;;  %v375_v35 = vmax.f32 %v3912_v22, 0.0  ;;  %v376_v36 = vmax.f32 %v360_v23, 0.0  ;;  %vm4596_vm4 = vcmp.ge.s32.totalorder %v3769_v56, 1  ;;  %v4009_v0 = vld [vmem:[%s4536_s1 + $0x200] sm:$0xff]   ;;  %v3261_v22 = vld [vmem:[%s4536_s1 + $0x1c8] sm:$0xff]  }
  0x45   : > { %3068 = vmatprep.subr.bf16.mxu1 %v3250_v47  ;;  %v377_v43 = vmax.f32 %v3920_v31, 0.0  ;;  %vm3948_vm15 = vmand %vm4546_vm0, %vm4596_vm4  ;;  %v340_v40 = vmul.f32 %v3489_v29, %v317_v25  ;;  %v341_v52 = vmul.f32 %v3489_v29, %v318_v38  ;;  %vm431_vm3 = vcmp.le.s32.totalorder %v3791_v1, 8  ;;  %v305_v31 = vld [vmem:[%s3470_s10 + $0x50] ss:$8 sps:$4 sm:$0xff]   ;;  %v3274_v23 = vld [vmem:[%s4536_s1 + $0x228] sm:$0xff]  }
  0x46   : > { %v855_v27 = vor.u32 %v854_v14, %v850_v42  ;;  %2931 = vmatpush3.bf16.msra.mxu0 %v3254_v10  ;;  %v464_v50 = vsel %vm3896_vm13, %v375_v35, 0.0  ;;  %v465_v39 = vsel %vm3906_vm11, %v376_v36, 0.0  ;;  %vm4599_vm5 = vmmov %vm4596_vm4  ;;  %v342_v61 = vmul.f32 %v3489_v29, %v319_v2 }
  0x47   : > { %vm3967_vm6 = vmand %vm401_vm1, %vm4599_vm5  ;;  %2932 = vmatprep.subr.bf16.mxu0 %v3255_v51  ;;  %v466_v28 = vsel %vm3927_vm14, %v377_v43, 0.0  ;;  %v480_v53 = vpack.c.bf16 %v465_v39, %v464_v50  ;;  %v343_v62 = vmul.f32 %v3489_v29, %v320_v48  ;;  %v4004_v58 = vadd.s32 1, %v3829_v55 }
  0x48   : > { %3069 = vmatpush3.bf16.msra.mxu1 %v3250_v47  ;;  %v2611_v41 = vcombine.low %v848_v26, %v855_v27  ;;  %v378_v47 = vmax.f32 %v362_v32, 0.0  ;;  %vm4604_vm4 = vmpackc.low %vm3686_vm10, %vm3668_vm8  ;;  %v364_v10 = vadd.f32 %v3494_v30, %v341_v52  ;;  %v4032_v6 = vadd.f32 %v3494_v30, %v342_v61 }
  0x49   : > { %3070 = vmatprep.subr.bf16.mxu1 %v3253_v3  ;;  %vm3999_vm5 = vmand %vm401_vm1, %vm407_vm7  ;;  %v489_v46 = vshrl.u32 %v480_v53, 16  ;;  %v552_v42 = vrot.slane %v480_v53, 1  ;;  %v366_v14 = vadd.f32 %v3494_v30, %v343_v62  ;;  %v4060_v32 = vadd.s32 2, %v3829_v55 }
  0x4a   : > { %1169 = vmatprep.mubr.bf16.mxu0 %v2611_v41  ;;  %v467_v45 = vsel %vm3939_vm2, %v378_v47, 0.0  ;;  %vm4018_vm8 = vmand %vm3948_vm15, %vm430_vm12  ;;  %2933 = vmatpush3.bf16.msra.mxu0 %v3257_v49  ;;  %v380_v21 = vmax.f32 %v364_v10, 0.0  ;;  %v381_v25 = vmax.f32 %v4032_v6, 0.0  ;;  %v306_v41 = vld [vmem:[%s3470_s10 + $0x54] sm:$0x1]  ;;  %v3260_v49 = vld [vmem:[%s4536_s1 + $0x180] sm:$0xff]   ;;  %v321_v50 = vunpack.c.l.bf16 %v305_v31 }
  0x4b   : > { %2808 = vmatmul.mubr.msk.bf16.gmra.mrb[12].mxu0 %vm4604_vm4, %v3856_v9  ;;  %v481_v59 = vpack.c.bf16 %v467_v45, %v466_v28  ;;  %v491_v9 = vshll.u32 %v480_v53, 16  ;;  %vm4027_vm10 = vmand %vm3967_vm6, %vm430_vm12  ;;  %2970 = vmatprep.subr.bf16.mxu0 %v3258_v54  ;;  %v382_v26 = vmax.f32 %v366_v14, 0.0  ;;  %v308_v47 = vld [vmem:[%s3470_s10 + $0x5c] sm:$0x1]  ;;  %v322_v39 = vunpack.c.l.bf16 %v306_v41  ;;  %v3262_v28 = vld [vmem:[%s4536_s1 + $0x208] sm:$0xff]  }
  0x4c   : > { %3071 = vmatpush3.bf16.msra.mxu1 %v3253_v3  ;;  %v4012_v3 = vadd.f32 %v3494_v30, %v340_v40  ;;  %vm4040_vm7 = vmand %vm3982_vm9, %vm431_vm3  ;;  %v469_v1 = vsel %vm4027_vm10, %v380_v21, 0.0  ;;  %v323_v52 = vunpack.c.h.bf16 %v305_v31  ;;  %v324_v54 = vunpack.c.l.bf16 %v308_v47  ;;  %v3268_v41 = vld [vmem:[%s4536_s1 + $0x218] sm:$0xff]  }
  0x4d   : > { %3072 = vmatprep.subr.bf16.mxu1 %v3256_v34  ;;  %v496_v5 = vshrl.u32 %v481_v59, 16  ;;  %v498_v7 = vshll.u32 %v481_v59, 16  ;;  %v553_v8 = vrot.slane %v481_v59, 1  ;;  %v493_v12 = vrot.slane %v491_v9, 1  ;;  %vm4048_vm12 = vmand %vm3999_vm5, %vm431_vm3  ;;  %v3269_v47 = vld [vmem:[%s4536_s1 + $0x198] sm:$0xff]  }
  0x4e   : > { %v379_v15 = vmax.f32 %v4012_v3, 0.0  ;;  %vm2813_vm15 = vmpackc.low %vm3927_vm14, %vm3896_vm13  ;;  %v470_v36 = vsel %vm4040_vm7, %v381_v25, 0.0  ;;  %v471_v38 = vsel %vm4048_vm12, %v382_v26, 0.0  ;;  %v344_v61 = vmul.f32 %v3489_v29, %v321_v50  ;;  %v3266_v26 = vld [vmem:[%s4536_s1 + $0x190] sm:$0xff]  }
  0x4f   : > { %v500_v17 = vrot.slane %v498_v7, 1  ;;  %v2639_v20 = vcombine.low %v552_v42, %v553_v8  ;;  %v494_v24 = vor.u32 %v493_v12, %v489_v46  ;;  %v483_v16 = vpack.c.bf16 %v471_v38, %v470_v36  ;;  %v3264_v42 = vld [vmem:[%s4536_s1 + $0x1d0] sm:$0xff]   ;;  %vm4545_vm3 = vmpackc.low %vm4040_vm7, %vm4018_vm8 }
  0x50   : > { %3073 = vmatpush3.bf16.msra.mxu1 %v3256_v34  ;;  %v468_v27 = vsel %vm4018_vm8, %v379_v15, 0.0  ;;  %v2814_v34 = vpack.c.bf16 %v377_v43, %v375_v35  ;;  %v345_v62 = vmul.f32 %v3489_v29, %v322_v39  ;;  %v346_v63 = vmul.f32 %v3489_v29, %v323_v52  ;;  %v4165_v52 = vld [vmem:[%s4541_s6] ss:$0 sm:$0xff] }
  0x51   : > { %3082 = vmatprep.subr.bf16.mxu1 %v4009_v0  ;;  %v501_v51 = vor.u32 %v500_v17, %v496_v5  ;;  %3074 = vmatprep.mubr.bf16.mxu1 %v2639_v20  ;;  %v482_v2 = vpack.c.bf16 %v469_v1, %v468_v27  ;;  %v555_v44 = vrot.slane %v483_v16, 1  ;;  %v510_v45 = vshrl.u32 %v483_v16, 16  ;;  %v309_v17 = vld [vmem:[%s3470_s10 + $0x60] ss:$8 sps:$4 sm:$0xff]   ;;  %v3265_v20 = vld [vmem:[%s4536_s1 + $0x210] sm:$0xff]  }
  0x52   : > { %v512_v53 = vshll.u32 %v483_v16, 16  ;;  %vm1629_vm6 = vcmp.ge.s32.totalorder %v3829_v55, 1  ;;  %v347_v3 = vmul.f32 %v3489_v29, %v324_v54  ;;  %v4100_v7 = vadd.f32 %v3494_v30, %v344_v61  ;;  %v4177_v61 = vld [vmem:[%s4536_s1 + $0x220] sm:$0xff]  }
  0x53   : > { %v2638_v48 = vcombine.low %v494_v24, %v501_v51  ;;  %v554_v40 = vrot.slane %v482_v2, 1  ;;  %v503_v35 = vshrl.u32 %v482_v2, 16  ;;  %v505_v43 = vshll.u32 %v482_v2, 16  ;;  %v310_v24 = vld [vmem:[%s3470_s10 + $0x64] sm:$0x1] }
  0x54   : > { %v514_v9 = vrot.slane %v512_v53, 1  ;;  %v368_v8 = vadd.f32 %v3494_v30, %v345_v62  ;;  %v4104_v10 = vadd.f32 %v3494_v30, %v346_v63  ;;  %vm1630_vm9 = vcmp.ge.s32.totalorder %v4004_v58, 1  ;;  %v312_v51 = vld [vmem:[%s3470_s10 + $0x6c] sm:$0x1]  ;;  %v3270_v53 = vld [vmem:[%s4536_s1 + $0x1e0] sm:$0xff]  }
  0x55   : > { %1443 = vmatprep.mubr.bf16.mxu0 %v2638_v48  ;;  %v507_v59 = vrot.slane %v505_v43, 1  ;;  %v2642_v46 = vcombine.low %v554_v40, %v555_v44  ;;  %v2817_v6 = vpack.c.bf16 %v381_v25, %v379_v15  ;;  %v370_v14 = vadd.f32 %v3494_v30, %v347_v3  ;;  %v3272_v62 = vld [vmem:[%s4536_s1 + $0x1a0] sm:$0xff]  }
  0x56   : > { %2815 = vmatmul.mubr.msk.bf16.vlgmr.msra.gmra.mrb[16].mxu0 %vm2813_vm15, %v2814_v34  ;;  %v515_v12 = vor.u32 %v514_v9, %v510_v45  ;;  %v4110_v29 = vadd.s32 3, %v3829_v55  ;;  %v383_v15 = vmax.f32 %v4100_v7, 0.0  ;;  %v384_v21 = vmax.f32 %v368_v8, 0.0  ;;  %v3267_v34 = vld [vmem:[%s4536_s1 + $0x1d8] sm:$0xff]   ;;  %v3273_v7 = vld [vmem:[%s4536_s1 + $0x1e8] sm:$0xff]  }
  0x57   : > { %2971 = vmatpush3.bf16.msra.mxu0 %v3260_v49  ;;  %v508_v5 = vor.u32 %v507_v59, %v503_v35  ;;  %3075 = vmatmul.mubr.bf16.vlgmr.msra.gmra.mrb[0].mxu1 %v2642_v46  ;;  %v385_v30 = vmax.f32 %v4104_v10, 0.0  ;;  %v325_v25 = vunpack.c.l.bf16 %v309_v17  ;;  %vm1649_vm4 = vcmp.le.s32.totalorder %v3829_v55, 8  ;;  %v4151_v49 = vld [vmem:[%s4540_s5] ss:$0 sm:$0xff] }
  0x58   : > { %2972 = vmatprep.subr.bf16.mxu0 %v3261_v22  ;;  %3083 = vmatpush3.bf16.msra.mxu1 %v4009_v0  ;;  %v386_v27 = vmax.f32 %v370_v14, 0.0  ;;  %v326_v1 = vunpack.c.l.bf16 %v310_v24  ;;  %v327_v31 = vunpack.c.h.bf16 %v309_v17  ;;  %v472_v36 = vsel %vm3896_vm13, %v383_v15, 0.0  ;;  %v2676_v24 = vld [vmem:[%s3470_s10 + $0x14] sm:$0x1]  ;;  %v3282_v55 = vld [vmem:[%s4538_s3] sm:$0xff]  }
  0x59   : > { %3084 = vmatprep.subr.bf16.mxu1 %v3262_v28  ;;  %v2641_v0 = vcombine.low %v508_v5, %v515_v12  ;;  %v473_v38 = vsel %vm3906_vm11, %v384_v21, 0.0  ;;  %v474_v2 = vsel %vm3927_vm14, %v385_v30, 0.0  ;;  %vm1650_vm5 = vcmp.le.s32.totalorder %v4004_v58, 8  ;;  %v2675_v21 = vld [vmem:[%s3470_s10 + $0x10] ss:$8 sps:$4 sm:$0xff]  }
  0x5a   : > { %v475_v48 = vsel %vm3939_vm2, %v386_v27, 0.0  ;;  %v484_v16 = vpack.c.bf16 %v473_v38, %v472_v36  ;;  %v328_v18 = vunpack.c.l.bf16 %v312_v51  ;;  %v348_v50 = vmul.f32 %v4151_v49, %v325_v25  ;;  %vm4187_vm2 = vmand %vm4546_vm0, %vm1629_vm6  ;;  %v2678_v27 = vld [vmem:[%s3470_s10 + $0x1c] sm:$0x1]  ;;  %v3278_v58 = vld [vmem:[%s4536_s1 + $0x1b0] sm:$0xff]  }
  0x5b   : > { %2973 = vmatpush3.bf16.msra.mxu0 %v3263_v57  ;;  %1451 = vmatprep.mubr.bf16.mxu0 %v2641_v0  ;;  %v485_v39 = vpack.c.bf16 %v475_v48, %v474_v2  ;;  %v349_v37 = vmul.f32 %v4151_v49, %v326_v1  ;;  %v350_v40 = vmul.f32 %v4151_v49, %v327_v31  ;;  %vm1632_vm11 = vcmp.ge.s32.totalorder %v4110_v29, 1  ;;  %v3283_v36 = vld [vmem:[%s4538_s3 + $0x8] sm:$0xff]  }
  0x5c   : > { %2974 = vmatprep.subr.bf16.mxu0 %v3264_v42  ;;  %3085 = vmatpush3.bf16.msra.mxu1 %v3262_v28  ;;  %v517_v22 = vshrl.u32 %v484_v16, 16  ;;  %v519_v35 = vshll.u32 %v484_v16, 16  ;;  %v351_v43 = vmul.f32 %v4151_v49, %v328_v18  ;;  %v371_v44 = vadd.f32 %v4165_v52, %v348_v50 }
  0x5d   : > { %3086 = vmatprep.subr.bf16.mxu1 %v3265_v20  ;;  %v524_v28 = vshrl.u32 %v485_v39, 16  ;;  %v526_v45 = vshll.u32 %v485_v39, 16  ;;  %v372_v54 = vadd.f32 %v4165_v52, %v349_v37  ;;  %v373_v57 = vadd.f32 %v4165_v52, %v350_v40  ;;  %v2679_v40 = vld [vmem:[%s3470_s10 + $0x20] ss:$8 sps:$4 sm:$0xff]  }
  0x5e   : > { %2818 = vmatmul.mubr.msk.bf16.gmra.mrb[20].mxu0 %vm4545_vm3, %v2817_v6  ;;  %v521_v59 = vrot.slane %v519_v35, 1  ;;  %v374_v63 = vadd.f32 %v4165_v52, %v351_v43  ;;  %v387_v46 = vmax.f32 %v371_v44, 0.0  ;;  %v556_v9 = vrot.slane %v484_v16, 1  ;;  %vm4195_vm3 = vmand %vm401_vm1, %vm1629_vm6  ;;  %v3276_v44 = vld [vmem:[%s4536_s1 + $0x1f0] sm:$0xff]  }
  0x5f   : > { %2975 = vmatpush3.bf16.msra.mxu0 %v3266_v26  ;;  %v528_v3 = vrot.slane %v526_v45, 1  ;;  %v388_v5 = vmax.f32 %v372_v54, 0.0  ;;  %v389_v8 = vmax.f32 %v373_v57, 0.0  ;;  %v557_v10 = vrot.slane %v485_v39, 1  ;;  %vm4209_vm6 = vmand %vm4546_vm0, %vm1630_vm9  ;;  %v3277_v57 = vld [vmem:[%s4536_s1 + $0x230] sm:$0xff]  }
  0x60   : > { %2976 = vmatprep.subr.bf16.mxu0 %v3267_v34  ;;  %3087 = vmatpush3.bf16.msra.mxu1 %v3265_v20  ;;  %v522_v6 = vor.u32 %v521_v59, %v517_v22  ;;  %v2820_v14 = vpack.c.bf16 %v385_v30, %v383_v15  ;;  %v390_v17 = vmax.f32 %v374_v63, 0.0  ;;  %v476_v20 = vsel %vm4018_vm8, %v387_v46, 0.0  ;;  %vm4226_vm0 = vmand %vm401_vm1, %vm1630_vm9 }
  0x61   : > { %3088 = vmatprep.subr.bf16.mxu1 %v3268_v41  ;;  %v529_v0 = vor.u32 %v528_v3, %v524_v28  ;;  %v477_v15 = vsel %vm4027_vm10, %v388_v5, 0.0  ;;  %v478_v30 = vsel %vm4040_vm7, %v389_v8, 0.0  ;;  %v2645_v26 = vcombine.low %v556_v9, %v557_v10  ;;  %vm4238_vm10 = vmand %vm4187_vm2, %vm1649_vm4 }
  0x62   : > { %v479_v1 = vsel %vm4048_vm12, %v390_v17, 0.0  ;;  %v486_v31 = vpack.c.bf16 %v477_v15, %v476_v20  ;;  %v4232_v34 = vpack.c.bf16 %v389_v8, %v387_v46  ;;  %v1561_v11 = vunpack.c.l.bf16 %v2675_v21  ;;  %vm4250_vm12 = vmand %vm4195_vm3, %vm1649_vm4 }
  0x63   : > { %2977 = vmatpush3.bf16.msra.mxu0 %v3269_v47  ;;  %vm1651_vm9 = vcmp.le.s32.totalorder %v4060_v32, 8  ;;  %v2644_v38 = vcombine.low %v522_v6, %v529_v0  ;;  %v487_v2 = vpack.c.bf16 %v479_v1, %v478_v30  ;;  %3078 = vmatprep.mubr.bf16.mxu1 %v2645_v26  ;;  %v1562_v47 = vunpack.c.l.bf16 %v2676_v24  ;;  %vm4262_vm3 = vmand %vm4209_vm6, %vm1650_vm5  ;;  %v3279_v6 = vld [vmem:[%s4536_s1 + $0x1f8] sm:$0xff]  }
  0x64   : > { %2978 = vmatprep.subr.bf16.mxu0 %v3270_v53  ;;  %3089 = vmatpush3.bf16.msra.mxu1 %v3268_v41  ;;  %v1563_v48 = vunpack.c.h.bf16 %v2675_v21  ;;  %v3275_v41 = vld [vmem:[%s4536_s1 + $0x1a8] sm:$0xff]   ;;  %v531_v18 = vshrl.u32 %v486_v31, 16  ;;  %v533_v50 = vshll.u32 %v486_v31, 16  ;;  %v558_v39 = vrot.slane %v486_v31, 1  ;;  %vm4275_vm4 = vmand %vm4226_vm0, %vm1650_vm5  ;;  %v2680_v53 = vld [vmem:[%s3470_s10 + $0x24] sm:$0x1] }
  0x65   : > { %3090 = vmatprep.subr.bf16.mxu1 %v4177_v61  ;;  %v1564_v37 = vunpack.c.l.bf16 %v2678_v27  ;;  %1459 = vmatprep.mubr.bf16.mxu0 %v2644_v38  ;;  %v538_v22 = vshrl.u32 %v487_v2, 16  ;;  %v540_v35 = vshll.u32 %v487_v2, 16  ;;  %v559_v43 = vrot.slane %v487_v2, 1  ;;  %v3280_v21 = vld [vmem:[%s4536_s1 + $0x238] sm:$0xff]  }
  0x66   : > { %v1577_v28 = vmul.f32 %v4151_v49, %v1561_v11  ;;  %2821 = vmatmul.mubr.msk.bf16.gmra.mrb[24].mxu0 %vm2813_vm15, %v2820_v14  ;;  %v535_v54 = vrot.slane %v533_v50, 1  ;;  %v1578_v59 = vmul.f32 %v4151_v49, %v1562_v47  ;;  %v1565_v42 = vunpack.c.l.bf16 %v2679_v40  ;;  %v3281_v24 = vld [vmem:[%s4536_s1 + $0x1b8] sm:$0xff]  }
  0x67   : > { %2979 = vmatpush3.bf16.msra.mxu0 %v3272_v62  ;;  %v1579_v62 = vmul.f32 %v4151_v49, %v1563_v48  ;;  %v1580_v63 = vmul.f32 %v4151_v49, %v1564_v37  ;;  %v542_v60 = vrot.slane %v540_v35, 1  ;;  %v2648_v46 = vcombine.low %v558_v39, %v559_v43  ;;  %v3284_v35 = vld [vmem:[%s4538_s3 + $0x10] sm:$0xff]  }
  0x68   : > { %2980 = vmatprep.subr.bf16.mxu0 %v3273_v7  ;;  %3091 = vmatpush3.bf16.msra.mxu1 %v4177_v61  ;;  %v1593_v9 = vadd.f32 %v4165_v52, %v1577_v28  ;;  %vm4631_vm0 = vcmp.ge.s32.totalorder %v4060_v32, 1  ;;  %vm4632_vm13 = vcmp.ge.s32.totalorder %v3429_v13, 1  ;;  %v536_v5 = vor.u32 %v535_v54, %v531_v18  ;;  %v2683_v32 = vld [vmem:[%s3470_s10 + $0x60] ss:$8 sps:$4 sm:$0xff]  }
  0x69   : > { %vm4301_vm14 = vmand %vm4632_vm13, %vm4631_vm0  ;;  %3092 = vmatprep.subr.bf16.mxu1 %v3274_v23  ;;  %v1594_v8 = vadd.f32 %v4165_v52, %v1578_v59  ;;  %v1595_v61 = vadd.f32 %v4165_v52, %v1579_v62  ;;  %v1566_v10 = vunpack.c.l.bf16 %v2680_v53  ;;  %v543_v12 = vor.u32 %v542_v60, %v538_v22  ;;  %3079 = vmatmul.mubr.bf16.gmra.mrb[4].mxu1 %v2648_v46 }
  0x6a   : > { %v1596_v14 = vadd.f32 %v4165_v52, %v1580_v63  ;;  %v1609_v17 = vmax.f32 %v1593_v9, 0.0  ;;  %v1567_v20 = vunpack.c.h.bf16 %v2679_v40  ;;  %v1568_v7 = vunpack.c.l.bf16 %v2682_v33  ;;  %vm4635_vm15 = vmmov %vm4631_vm0  ;;  %v2684_v63 = vld [vmem:[%s3470_s10 + $0x64] sm:$0x1]  ;;  %v2686_v9 = vld [vmem:[%s3470_s10 + $0x6c] sm:$0x1] }
  0x6b   : > { %2981 = vmatpush3.bf16.msra.mxu0 %v3275_v41  ;;  %v1610_v25 = vmax.f32 %v1594_v8, 0.0  ;;  %v1611_v0 = vmax.f32 %v1595_v61, 0.0  ;;  %v1581_v15 = vmul.f32 %v4151_v49, %v1565_v42  ;;  %vm4322_vm5 = vmand %vm401_vm1, %vm4635_vm15  ;;  %v2647_v26 = vcombine.low %v536_v5, %v543_v12 }
  0x6c   : > { %2982 = vmatprep.subr.bf16.mxu0 %v3276_v44  ;;  %3093 = vmatpush3.bf16.msra.mxu1 %v3274_v23  ;;  %v1612_v27 = vmax.f32 %v1596_v14, 0.0  ;;  %v1685_v51 = vsel %vm4238_vm10, %v1609_v17, 0.0  ;;  %v1582_v1 = vmul.f32 %v4151_v49, %v1566_v10  ;;  %vm4638_vm2 = vmmov %vm4632_vm13  ;;  %v1583_v2 = vmul.f32 %v4151_v49, %v1567_v20 }
  0x6d   : > { %vm4333_vm6 = vmand %vm4638_vm2, %vm1632_vm11  ;;  %3094 = vmatprep.subr.bf16.mxu1 %v3277_v57  ;;  %v1686_v11 = vsel %vm4250_vm12, %v1610_v25, 0.0  ;;  %v1687_v38 = vsel %vm4262_vm3, %v1611_v0, 0.0  ;;  %v4341_v23 = vpack.c.bf16 %v1611_v0, %v1609_v17  ;;  %1467 = vmatprep.mubr.bf16.mxu0 %v2647_v26  ;;  %v1584_v41 = vmul.f32 %v4151_v49, %v1568_v7 }
  0x6e   : > { %vm4348_vm0 = vmand %vm401_vm1, %vm1632_vm11  ;;  %v1688_v47 = vsel %vm4275_vm4, %v1612_v27, 0.0  ;;  %v1701_v48 = vpack.c.bf16 %v1686_v11, %v1685_v51  ;;  %v1597_v18 = vadd.f32 %v4165_v52, %v1581_v15  ;;  %v1598_v39 = vadd.f32 %v4165_v52, %v1582_v1  ;;  %v2687_v15 = vld [vmem:[%s3470_s10 + $0x70] ss:$8 sps:$4 sm:$0xff]   ;;  %v2688_v1 = vld [vmem:[%s3470_s10 + $0x74] sm:$0x1] }
  0x6f   : > { %2983 = vmatpush3.bf16.msra.mxu0 %v3278_v58  ;;  %vm4360_vm13 = vmand %vm4301_vm14, %vm1651_vm9  ;;  %v1702_v50 = vpack.c.bf16 %v1688_v47, %v1687_v38  ;;  %v1599_v37 = vadd.f32 %v4165_v52, %v1583_v2  ;;  %vm1652_vm11 = vcmp.le.s32.totalorder %v4110_v29, 8  ;;  %v1600_v22 = vadd.f32 %v4165_v52, %v1584_v41  ;;  %v2690_v41 = vld [vmem:[%s3470_s10 + $0x7c] sm:$0x1] }
  0x70   : > { %2984 = vmatprep.subr.bf16.mxu0 %v3279_v6  ;;  %vm4645_vm1 = vmpackc.low %vm4040_vm7, %vm4018_vm8  ;;  %3095 = vmatpush3.bf16.msra.mxu1 %v3277_v57  ;;  %v1710_v56 = vshrl.u32 %v1701_v48, 16  ;;  %v1712_v4 = vshll.u32 %v1701_v48, 16  ;;  %v1613_v53 = vmax.f32 %v1597_v18, 0.0  ;;  %v1614_v58 = vmax.f32 %v1598_v39, 0.0 }
  0x71   : > { %2824 = vmatmul.mubr.msk.bf16.gmra.mrb[28].mxu0 %vm4645_vm1, %v4232_v34  ;;  %vm4377_vm14 = vmand %vm4322_vm5, %vm1651_vm9  ;;  %v1773_v34 = vrot.slane %v1701_v48, 1  ;;  %3096 = vmatprep.subr.bf16.mxu1 %v3280_v21  ;;  %v1717_v43 = vshrl.u32 %v1702_v50, 16  ;;  %v1719_v44 = vshll.u32 %v1702_v50, 16  ;;  %v1774_v28 = vrot.slane %v1702_v50, 1 }
  0x72   : > { %vm4386_vm8 = vmand %vm4333_vm6, %vm1652_vm11  ;;  %v1714_v57 = vrot.slane %v1712_v4, 1  ;;  %v1615_v59 = vmax.f32 %v1599_v37, 0.0  ;;  %v1616_v62 = vmax.f32 %v1600_v22, 0.0  ;;  %v1689_v46 = vsel %vm4360_vm13, %v1613_v53, 0.0 }
  0x73   : > { %2985 = vmatpush3.bf16.msra.mxu0 %v3281_v24  ;;  %vm4395_vm7 = vmand %vm4348_vm0, %vm1652_vm11  ;;  %v1721_v33 = vrot.slane %v1719_v44, 1  ;;  %v2741_v60 = vcombine.low %v1773_v34, %v1774_v28  ;;  %v1569_v42 = vunpack.c.l.bf16 %v2683_v32  ;;  %v1690_v3 = vsel %vm4377_vm14, %v1614_v58, 0.0 }
  0x74   : > { %3097 = vmatpush3.bf16.msra.mxu1 %v3280_v21  ;;  %v1715_v29 = vor.u32 %v1714_v57, %v1710_v56  ;;  %v1691_v5 = vsel %vm4386_vm8, %v1615_v59, 0.0  ;;  %v1692_v8 = vsel %vm4395_vm7, %v1616_v62, 0.0  ;;  %v1703_v10 = vpack.c.bf16 %v1690_v3, %v1689_v46  ;;  %vm2830_vm9 = vmpackc.low %vm4262_vm3, %vm4238_vm10  ;;  %3106 = vmatprep.subr.bf16.mxu0 %v3282_v55 }
  0x75   : > { %v1722_v61 = vor.u32 %v1721_v33, %v1717_v43  ;;  %3098 = vmatprep.mubr.bf16.mxu1 %v2741_v60  ;;  %v1704_v12 = vpack.c.bf16 %v1692_v8, %v1691_v5  ;;  %v1570_v6 = vunpack.c.l.bf16 %v2684_v63  ;;  %v1571_v14 = vunpack.c.h.bf16 %v2683_v32  ;;  %vm2833_vm15 = vmpackc.low %vm4386_vm8, %vm4360_vm13  ;;  %3130 = vmatprep.subr.bf16.mxu1 %v3282_v55 }
  0x76   : > { %v1572_v17 = vunpack.c.l.bf16 %v2686_v9  ;;  %v1585_v20 = vmul.f32 %v4151_v49, %v1569_v42  ;;  %v2834_v21 = vpack.c.bf16 %v1615_v59, %v1613_v53  ;;  %v1775_v25 = vrot.slane %v1703_v10, 1 }
  0x77   : > { %v2740_v24 = vcombine.low %v1715_v29, %v1722_v61  ;;  %v1776_v0 = vrot.slane %v1704_v12, 1  ;;  %v1724_v7 = vshrl.u32 %v1703_v10, 16  ;;  %v1726_v30 = vshll.u32 %v1703_v10, 16 }
  0x78   : > { %v1731_v26 = vshrl.u32 %v1704_v12, 16  ;;  %v1733_v27 = vshll.u32 %v1704_v12, 16  ;;  %v1586_v51 = vmul.f32 %v4151_v49, %v1570_v6  ;;  %v1587_v11 = vmul.f32 %v4151_v49, %v1571_v14 }
  0x79   : > { %2054 = vmatprep.mubr.bf16.mxu0 %v2740_v24  ;;  %v2744_v31 = vcombine.low %v1775_v25, %v1776_v0  ;;  %v1588_v38 = vmul.f32 %v4151_v49, %v1572_v17  ;;  %v1601_v2 = vadd.f32 %v4165_v52, %v1585_v20  ;;  %v1728_v13 = vrot.slane %v1726_v30, 1 }
  0x7a   : > { %2832 = vmatmul.mubr.msk.bf16.vlgmr.msra.gmra.mrb[32].mxu0 %vm2830_vm9, %v4341_v23  ;;  %v1735_v47 = vrot.slane %v1733_v27, 1  ;;  %v1602_v48 = vadd.f32 %v4165_v52, %v1586_v51  ;;  %v1573_v18 = vunpack.c.l.bf16 %v2687_v15  ;;  %v1603_v50 = vadd.f32 %v4165_v52, %v1587_v11 }
  0x7b   : > { %3099 = vmatmul.mubr.bf16.vlgmr.msra.gmra.mrb[0].mxu1 %v2744_v31  ;;  %v1604_v39 = vadd.f32 %v4165_v52, %v1588_v38  ;;  %v1617_v37 = vmax.f32 %v1601_v2, 0.0  ;;  %v1574_v56 = vunpack.c.l.bf16 %v2688_v1  ;;  %v1729_v4 = vor.u32 %v1728_v13, %v1724_v7  ;;  %3107 = vmatpush3.bf16.msra.mxu0 %v3282_v55 }
  0x7c   : > { %v1736_v34 = vor.u32 %v1735_v47, %v1731_v26  ;;  %v1618_v22 = vmax.f32 %v1602_v48, 0.0  ;;  %v1575_v32 = vunpack.c.h.bf16 %v2687_v15  ;;  %v1619_v43 = vmax.f32 %v1603_v50, 0.0  ;;  %3138 = vmatpush3.bf16.msra.mxu1 %v3282_v55  ;;  %3108 = vmatprep.subr.bf16.mxu0 %v3283_v36 }
  0x7d   : > { %v1620_v44 = vmax.f32 %v1604_v39, 0.0  ;;  %v1693_v23 = vsel %vm4238_vm10, %v1617_v37, 0.0  ;;  %v1576_v28 = vunpack.c.l.bf16 %v2690_v41  ;;  %v1589_v58 = vmul.f32 %v4151_v49, %v1573_v18  ;;  %3131 = vmatprep.subr.bf16.mxu1 %v3283_v36 }
  0x7e   : > { %v2743_v53 = vcombine.low %v1729_v4, %v1736_v34  ;;  %v1694_v57 = vsel %vm4250_vm12, %v1618_v22, 0.0  ;;  %v1590_v59 = vmul.f32 %v4151_v49, %v1574_v56  ;;  %v1695_v62 = vsel %vm4262_vm3, %v1619_v43, 0.0  ;;  %v3287_v56 = vld [vmem:[%s4538_s3 + $0x28] sm:$0xff]   ;;  %v3288_v4 = vld [vmem:[%s4538_s3 + $0x30] sm:$0xff]   ;;  %v3289_v34 = vld [vmem:[%s4538_s3 + $0x38] sm:$0xff]  }
  0x7f   : > { %v1696_v63 = vsel %vm4275_vm4, %v1620_v44, 0.0  ;;  %v1705_v33 = vpack.c.bf16 %v1694_v57, %v1693_v23  ;;  %v1591_v60 = vmul.f32 %v4151_v49, %v1575_v32  ;;  %v1592_v46 = vmul.f32 %v4151_v49, %v1576_v28  ;;  %3109 = vmatpush3.bf16.msra.mxu0 %v3283_v36 }
  0x80   : > { %2062 = vmatprep.mubr.bf16.mxu0 %v2743_v53  ;;  %v1706_v16 = vpack.c.bf16 %v1696_v63, %v1695_v62  ;;  %v1605_v9 = vadd.f32 %v4165_v52, %v1589_v58  ;;  %v1606_v42 = vadd.f32 %v4165_v52, %v1590_v59  ;;  %v2837_v1 = vpack.c.bf16 %v1619_v43, %v1617_v37  ;;  %v3286_v37 = vld [vmem:[%s4538_s3 + $0x20] sm:$0xff]  }
  0x81   : > { %v1777_v29 = vrot.slane %v1705_v33, 1  ;;  %v1607_v45 = vadd.f32 %v4165_v52, %v1591_v60  ;;  %v1738_v3 = vshrl.u32 %v1705_v33, 16  ;;  %v1740_v5 = vshll.u32 %v1705_v33, 16  ;;  %3139 = vmatpush3.bf16.msra.mxu1 %v3283_v36  ;;  %3110 = vmatprep.subr.bf16.mxu0 %v3284_v35 }
  0x82   : > { %v1778_v8 = vrot.slane %v1706_v16, 1  ;;  %2835 = vmatmul.mubr.msk.bf16.gmra.mrb[36].mxu0 %vm2833_vm15, %v2834_v21  ;;  %v1608_v61 = vadd.f32 %v4165_v52, %v1592_v46  ;;  %v1621_v10 = vmax.f32 %v1605_v9, 0.0  ;;  %v1622_v49 = vmax.f32 %v1606_v42, 0.0  ;;  %3132 = vmatprep.subr.bf16.mxu1 %v3284_v35 }
  0x83   : > { %v1623_v12 = vmax.f32 %v1607_v45, 0.0  ;;  %v1742_v6 = vrot.slane %v1740_v5, 1  ;;  %v1745_v14 = vshrl.u32 %v1706_v16, 16  ;;  %v1747_v17 = vshll.u32 %v1706_v16, 16  ;;  %3111 = vmatpush3.bf16.msra.mxu0 %v3284_v35 }
  0x84   : > { %v2747_v20 = vcombine.low %v1777_v29, %v1778_v8  ;;  %v1624_v24 = vmax.f32 %v1608_v61, 0.0  ;;  %v1697_v25 = vsel %vm4360_vm13, %v1621_v10, 0.0  ;;  %v1698_v0 = vsel %vm4377_vm14, %v1622_v49, 0.0  ;;  %3112 = vmatprep.subr.bf16.mxu0 %v3285_v19 }
  0x85   : > { %v1699_v7 = vsel %vm4386_vm8, %v1623_v12, 0.0  ;;  %v1707_v21 = vpack.c.bf16 %v1698_v0, %v1697_v25  ;;  %v1743_v15 = vor.u32 %v1742_v6, %v1738_v3  ;;  %v1749_v52 = vrot.slane %v1747_v17, 1  ;;  %3140 = vmatpush3.bf16.msra.mxu1 %v3284_v35 }
  0x86   : > { %3102 = vmatprep.mubr.bf16.mxu1 %v2747_v20  ;;  %v1700_v30 = vsel %vm4395_vm7, %v1624_v24, 0.0  ;;  %v2840_v39 = vpack.c.bf16 %v1623_v12, %v1621_v10  ;;  %3133 = vmatprep.subr.bf16.mxu1 %v3285_v19  ;;  %vm2349_vm10 = vcmask 1040384  }
  0x87   : > { %v1708_v26 = vpack.c.bf16 %v1700_v30, %v1699_v7  ;;  %v1779_v27 = vrot.slane %v1707_v21, 1  ;;  %v1750_v51 = vor.u32 %v1749_v52, %v1745_v14  ;;  %v1752_v31 = vshrl.u32 %v1707_v21, 16  ;;  %3113 = vmatpush3.bf16.msra.mxu0 %v3285_v19 }
  0x88   : > { %v1754_v11 = vshll.u32 %v1707_v21, 16  ;;  %3114 = vmatprep.subr.bf16.mxu0 %v3286_v37 }
  0x89   : > { %v1780_v38 = vrot.slane %v1708_v26, 1  ;;  %v2746_v2 = vcombine.low %v1743_v15, %v1750_v51  ;;  %v1759_v40 = vshrl.u32 %v1708_v26, 16  ;;  %v1761_v13 = vshll.u32 %v1708_v26, 16  ;;  %3141 = vmatpush3.bf16.msra.mxu1 %v3285_v19 }
  0x8a   : > { %v1756_v47 = vrot.slane %v1754_v11, 1  ;;  %3134 = vmatprep.subr.bf16.mxu1 %v3286_v37 }
  0x8b   : > { %v2750_v48 = vcombine.low %v1779_v27, %v1780_v38  ;;  %2070 = vmatprep.mubr.bf16.mxu0 %v2746_v2  ;;  %v1763_v41 = vrot.slane %v1761_v13, 1  ;;  %3115 = vmatpush3.bf16.msra.mxu0 %v3286_v37 }
  0x8c   : > { %2838 = vmatmul.mubr.msk.bf16.gmra.mrb[40].mxu0 %vm2830_vm9, %v2837_v1  ;;  %v1757_v54 = vor.u32 %v1756_v47, %v1752_v31  ;;  %3116 = vmatprep.subr.bf16.mxu0 %v3287_v56 }
  0x8d   : > { %3103 = vmatmul.mubr.bf16.gmra.mrb[4].mxu1 %v2750_v48  ;;  %v1764_v18 = vor.u32 %v1763_v41, %v1759_v40 }
  0x8e   : > { %3142 = vmatpush3.bf16.msra.mxu1 %v3286_v37 }
  0x8f   : > { %v2749_v50 = vcombine.low %v1757_v54, %v1764_v18  ;;  %3135 = vmatprep.subr.bf16.mxu1 %v3287_v56  ;;  %3117 = vmatpush3.bf16.msra.mxu0 %v3287_v56 }
  0x90   : > { %3118 = vmatprep.subr.bf16.mxu0 %v3288_v4 }
  0x91   : > { %2078 = vmatprep.mubr.bf16.mxu0 %v2749_v50 }
  0x92   : > { %3143 = vmatpush3.bf16.msra.mxu1 %v3287_v56 }
  0x93   : > { %3136 = vmatprep.subr.bf16.mxu1 %v3288_v4  ;;  %3119 = vmatpush3.bf16.msra.mxu0 %v3288_v4 }
  0x94   : > { %2841 = vmatmul.mubr.msk.bf16.gmra.mrb[44].mxu0 %vm2833_vm15, %v2840_v39  ;;  %3120 = vmatprep.subr.bf16.mxu0 %v3289_v34 }
  0x96   : > { %3144 = vmatpush3.bf16.msra.mxu1 %v3288_v4 }
  0x97   : > { %3137 = vmatprep.subr.bf16.mxu1 %v3289_v34  ;;  %3121 = vmatpush3.bf16.msra.mxu0 %v3289_v34 }
  0x9a   : > { %3145 = vmatpush3.bf16.msra.mxu1 %v3289_v34 }
  0xff   : > { %v2882_v22 = vpop.f32.mrb[0].mxu0 }
 0x100   : > { %v2883_v32 = vpop.f32.mrb[1].mxu0 }
 0x101   : > { %v2884_v43 = vadd.f32 %v2883_v32, %v2882_v22  ;;  %v2885_v44 = vpop.f32.mrb[2].mxu0 }
 0x102   : > { %v2886_v23 = vpop.f32.mrb[3].mxu0 }
 0x103   : > { %v2887_v28 = vadd.f32 %v2886_v23, %v2885_v44 }
 0x10b   : > { %v2888_v53 = vpop.f32.mrb[4].mxu0 }
 0x10c   : > { %v2889_v57 = vpop.f32.mrb[5].mxu0 }
 0x10d   : > { %v2890_v58 = vadd.f32 %v2889_v57, %v2888_v53  ;;  %v2891_v59 = vpop.f32.mrb[6].mxu0 }
 0x10e   : > { %v2892_v62 = vpop.f32.mrb[7].mxu0 }
 0x10f   : > { %v2893_v63 = vadd.f32 %v2892_v62, %v2891_v59 }
 0x114   : > { %v2894_v33 = vpop.f32.mrb[8].mxu0 }
 0x115   : > { %v2895_v60 = vpop.f32.mrb[9].mxu0 }
 0x116   : > { %v2896_v16 = vadd.f32 %v2895_v60, %v2894_v33  ;;  %v2897_v46 = vpop.f32.mrb[10].mxu0 }
 0x117   : > { %v2898_v9 = vpop.f32.mrb[11].mxu0 }
 0x118   : > { %v2899_v42 = vadd.f32 %v2898_v9, %v2897_v46 }
 0x11e   : > { %v2900_v29 = vpop.f32.mrb[12].mxu0 }
 0x11f   : > { %v2901_v45 = vpop.f32.mrb[13].mxu0 }
 0x120   : > { %v2902_v3 = vadd.f32 %v2901_v45, %v2900_v29  ;;  %v2903_v5 = vpop.f32.mrb[14].mxu0 }
 0x121   : > { %v2904_v8 = vpop.f32.mrb[15].mxu0 }
 0x122   : > { %v2905_v61 = vadd.f32 %v2904_v8, %v2903_v5 }
 0x129   : > { %v2934_v10 = vpop.f32.mrb[16].mxu0 }
 0x12a   : > { %v2935_v49 = vpop.f32.mrb[17].mxu0 }
 0x12b   : > { %v2936_v12 = vadd.f32 %v2935_v49, %v2934_v10  ;;  %v2937_v6 = vpop.f32.mrb[18].mxu0 }
 0x12c   : > { %v2938_v14 = vpop.f32.mrb[19].mxu0 }
 0x12d   : > { %v3149_v17 = vadd.f32 %v2936_v12, %v2884_v43  ;;  %v2939_v20 = vadd.f32 %v2938_v14, %v2937_v6 }
 0x12f   : > { %v3155_v24 = vadd.f32 %v2939_v20, %v2887_v28  ;;  %v2775_v28 = vld [vmem:[%s4537_s2] ss:$0 sm:$0xff] }
 0x131   : > { %v2940_v25 = vpop.f32.mrb[20].mxu0 }
 0x132   : > { %v2941_v0 = vpop.f32.mrb[21].mxu0 }
 0x133   : > { %v2942_v7 = vadd.f32 %v2941_v0, %v2940_v25  ;;  %v2943_v21 = vpop.f32.mrb[22].mxu0 }
 0x134   : > { %v2944_v15 = vpop.f32.mrb[23].mxu0 }
 0x135   : > { %v3146_v52 = vadd.f32 %v2942_v7, %v2890_v58  ;;  %v2945_v30 = vadd.f32 %v2944_v15, %v2943_v21 }
 0x137   : > { %v3152_v26 = vadd.f32 %v2945_v30, %v2893_v63 }
 0x139   : > { %v2946_v27 = vpop.f32.mrb[24].mxu0 }
 0x13a   : > { %v2947_v51 = vpop.f32.mrb[25].mxu0 }
 0x13b   : > { %v2948_v1 = vadd.f32 %v2947_v51, %v2946_v27  ;;  %v2949_v31 = vpop.f32.mrb[26].mxu0 }
 0x13c   : > { %v2950_v11 = vpop.f32.mrb[27].mxu0 }
 0x13d   : > { %v3161_v38 = vadd.f32 %v2948_v1, %v2896_v16  ;;  %v2951_v2 = vadd.f32 %v2950_v11, %v2949_v31 }
 0x13f   : > { %v3167_v40 = vadd.f32 %v2951_v2, %v2899_v42 }
 0x144   : > { %v2952_v13 = vpop.f32.mrb[28].mxu0 }
 0x145   : > { %v2953_v47 = vpop.f32.mrb[29].mxu0 }
 0x146   : > { %v2954_v48 = vadd.f32 %v2953_v47, %v2952_v13  ;;  %v2955_v41 = vpop.f32.mrb[30].mxu0 }
 0x147   : > { %v2956_v54 = vpop.f32.mrb[31].mxu0 }
 0x148   : > { %v3158_v18 = vadd.f32 %v2954_v48, %v2902_v3  ;;  %v2957_v50 = vadd.f32 %v2956_v54, %v2955_v41 }
 0x14a   : > { %v3164_v39 = vadd.f32 %v2957_v50, %v2905_v61 }
 0x14d   : > { %v2986_v55 = vpop.f32.mrb[32].mxu0 }
 0x14e   : > { %v3100_v36 = vpop.f32.mrb[0].mxu1  ;;  %v2987_v35 = vpop.f32.mrb[33].mxu0 }
 0x14f   : > { %v2988_v19 = vadd.f32 %v2987_v35, %v2986_v55  ;;  %v2121_v37 = vpop.f32.mrb[1].mxu1  ;;  %v2989_v56 = vpop.f32.mrb[34].mxu0 }
 0x150   : > { %v3101_v4 = vpop.f32.mrb[2].mxu1  ;;  %v2990_v34 = vpop.f32.mrb[35].mxu0 }
 0x151   : > { %v3150_v22 = vadd.f32 %v3149_v17, %v2988_v19  ;;  %v2991_v32 = vadd.f32 %v2990_v34, %v2989_v56  ;;  %v2124_v43 = vpop.f32.mrb[3].mxu1 }
 0x153   : > { %v3151_v44 = vadd.f32 %v3150_v22, %v2121_v37  ;;  %v3156_v23 = vadd.f32 %v3155_v24, %v2991_v32 }
 0x155   : > { %v3157_v53 = vadd.f32 %v3156_v23, %v2124_v43  ;;  %v2992_v57 = vpop.f32.mrb[36].mxu0  ;;  %v2167_v59 = vadd.f32 %v3151_v44, %v2775_v28 }
 0x156   : > { %v2993_v58 = vpop.f32.mrb[37].mxu0 }
 0x157   : > { %v2168_v62 = vadd.f32 %v3157_v53, %v2775_v28  ;;  %v2994_v63 = vadd.f32 %v2993_v58, %v2992_v57  ;;  %v2995_v33 = vpop.f32.mrb[38].mxu0 }
 0x158   : > { %v2996_v60 = vpop.f32.mrb[39].mxu0 }
 0x159   : > { %v3147_v16 = vadd.f32 %v3146_v52, %v2994_v63  ;;  %v2997_v46 = vadd.f32 %v2996_v60, %v2995_v33  ;;  %v2175_v9 = vpack.c.bf16 %v2168_v62, %v2167_v59 }
 0x15b   : > { %v3148_v42 = vadd.f32 %v3147_v16, %v3100_v36  ;;  %v3153_v29 = vadd.f32 %v3152_v26, %v2997_v46  ;;  %3122 = vmatprep.mubr.bf16.mxu0 %v2175_v9 }
 0x15d   : > { %v3154_v45 = vadd.f32 %v3153_v29, %v3101_v4  ;;  %v2169_v3 = vadd.f32 %v3148_v42, %v2775_v28 }
 0x15f   : > { %v2170_v5 = vadd.f32 %v3154_v45, %v2775_v28  ;;  %v2998_v8 = vpop.f32.mrb[40].mxu0 }
 0x160   : > { %v3104_v61 = vpop.f32.mrb[4].mxu1  ;;  %v2999_v10 = vpop.f32.mrb[41].mxu0 }
 0x161   : > { %v2137_v49 = vpop.f32.mrb[5].mxu1  ;;  %v2176_v12 = vpack.c.bf16 %v2170_v5, %v2169_v3  ;;  %v3000_v6 = vadd.f32 %v2999_v10, %v2998_v8  ;;  %v3001_v14 = vpop.f32.mrb[42].mxu0 }
 0x162   : > { %v3105_v17 = vpop.f32.mrb[6].mxu1  ;;  %v3002_v20 = vpop.f32.mrb[43].mxu0 }
 0x163   : > { %v2140_v24 = vpop.f32.mrb[7].mxu1  ;;  %v3162_v25 = vadd.f32 %v3161_v38, %v3000_v6  ;;  %v3003_v0 = vadd.f32 %v3002_v20, %v3001_v14  ;;  %3123 = vmatmul.mubr.bf16.vlgmr.msra.gmra.mrb[48].mxu0 %v2176_v12 }
 0x165   : > { %v3163_v7 = vadd.f32 %v3162_v25, %v2137_v49  ;;  %v3168_v21 = vadd.f32 %v3167_v40, %v3003_v0  ;;  %v2776_v40 = vld [vmem:[%s4539_s4] ss:$0 sm:$0xff] }
 0x167   : > { %v3169_v15 = vadd.f32 %v3168_v21, %v2140_v24  ;;  %v3004_v52 = vpop.f32.mrb[44].mxu0  ;;  %v2171_v51 = vadd.f32 %v3163_v7, %v2775_v28 }
 0x168   : > { %v3005_v30 = vpop.f32.mrb[45].mxu0 }
 0x169   : > { %v3006_v26 = vadd.f32 %v3005_v30, %v3004_v52  ;;  %v3007_v27 = vpop.f32.mrb[46].mxu0  ;;  %v2172_v1 = vadd.f32 %v3169_v15, %v2775_v28 }
 0x16a   : > { %v3008_v31 = vpop.f32.mrb[47].mxu0 }
 0x16b   : > { %v3159_v11 = vadd.f32 %v3158_v18, %v3006_v26  ;;  %v3009_v2 = vadd.f32 %v3008_v31, %v3007_v27  ;;  %v2177_v13 = vpack.c.bf16 %v2172_v1, %v2171_v51 }
 0x16d   : > { %v3160_v47 = vadd.f32 %v3159_v11, %v3104_v61  ;;  %v3165_v48 = vadd.f32 %v3164_v39, %v3009_v2  ;;  %3126 = vmatprep.mubr.bf16.mxu1 %v2177_v13 }
 0x16f   : > { %v3166_v38 = vadd.f32 %v3165_v48, %v3105_v17  ;;  %v2173_v41 = vadd.f32 %v3160_v47, %v2775_v28 }
 0x171   : > { %v2174_v54 = vadd.f32 %v3166_v38, %v2775_v28 }
 0x173   : > { %v2178_v50 = vpack.c.bf16 %v2174_v54, %v2173_v41 }
 0x175   : > { %3127 = vmatmul.mubr.bf16.vlgmr.msra.gmra.mrb[8].mxu1 %v2178_v50 }
 0x236   : > { %v3124_v55 = vpop.f32.mrb[48].mxu0 }
 0x237   : > { %v2284_v36 = vpop.f32.mrb[49].mxu0  ;;  %v2293_v19 = vadd.f32 %v3124_v55, %v2776_v40 }
 0x238   : > { %v2285_v35 = vadd.f32 %v2776_v40, %v2284_v36  ;;  %v3125_v18 = vpop.f32.mrb[50].mxu0 }
 0x239   : > { %v2296_v37 = vadd.f32 %v3125_v18, %v2776_v40  ;;  %v2287_v56 = vpop.f32.mrb[51].mxu0  ;;  %v2330_v44 = vmul.f32 %v2293_v19, %v2293_v19 }
 0x23a   : > { %v2288_v39 = vadd.f32 %v2776_v40, %v2287_v56  ;;  %v2328_v34 = vmul.f32 %v2285_v35, %v2285_v35 }
 0x23b   : > { %v2851_v4 = vpack.c.bf16 %v2296_v37, %v2293_v19  ;;  %v2331_v53 = vmul.f32 %v2296_v37, %v2296_v37 }
 0x23c   : > { %v2315_v22 = vadd.f32 %v2288_v39, %v2285_v35  ;;  %v2329_v32 = vmul.f32 %v2288_v39, %v2288_v39  ;;  %v2846_v43 = vpack.c.bf16 %v2288_v39, %v2285_v35 }
 0x23d   : > { %2863 = vst [vmem:[%s4504_s14 + $0x8] sm:$0xff] %v2851_v4  }
 0x23e   : > { %v2316_v23 = vadd.f32 %v2315_v22, %v2293_v19  ;;  %v2336_v28 = vadd.f32 %v2329_v32, %v2328_v34  ;;  %2847 = vst [vmem:[%s4504_s14] sm:$0xff] %v2846_v43  }
 0x240   : > { %v2337_v57 = vadd.f32 %v2336_v28, %v2330_v44  ;;  %v2317_v58 = vadd.f32 %v2316_v23, %v2296_v37 }
 0x242   : > { %v2338_v59 = vadd.f32 %v2337_v57, %v2331_v53 }
 0x244   : > { %v2401_v13 = vld [vmem:[%s4504_s14 + $0x8] sm:$0xff] (%p3386_p4)  }
 0x245   : > { %v2397_v2 = vld [vmem:[%s4504_s14] sm:$0xff] (%p3386_p4)   ;;  %2402 = vst [vmem:[%s2381_s22 + $0x8] sm:$0xff] (%p3386_p4), %v2401_v13  }
 0x246   : > { %2398 = vst [vmem:[%s2381_s22] sm:$0xff] (%p3386_p4), %v2397_v2  }
 0x248   : > { %v3128_v62 = vpop.f32.mrb[8].mxu1 }
 0x249   : > { %v2300_v63 = vpop.f32.mrb[9].mxu1  ;;  %v2309_v16 = vadd.f32 %v3128_v62, %v2776_v40 }
 0x24a   : > { %v2301_v33 = vadd.f32 %v2776_v40, %v2300_v63  ;;  %v3129_v60 = vpop.f32.mrb[10].mxu1 }
 0x24b   : > { %v2312_v46 = vadd.f32 %v3129_v60, %v2776_v40  ;;  %v2303_v9 = vpop.f32.mrb[11].mxu1  ;;  %v2334_v49 = vmul.f32 %v2309_v16, %v2309_v16 }
 0x24c   : > { %v2318_v42 = vadd.f32 %v2317_v58, %v2301_v33  ;;  %v2332_v29 = vmul.f32 %v2301_v33, %v2301_v33  ;;  %v2304_v45 = vadd.f32 %v2776_v40, %v2303_v9 }
 0x24d   : > { %v2861_v3 = vpack.c.bf16 %v2312_v46, %v2309_v16  ;;  %v2335_v14 = vmul.f32 %v2312_v46, %v2312_v46 }
 0x24e   : > { %v2339_v5 = vadd.f32 %v2338_v59, %v2332_v29  ;;  %v2319_v8 = vadd.f32 %v2318_v42, %v2304_v45  ;;  %v2333_v61 = vmul.f32 %v2304_v45, %v2304_v45  ;;  %v2856_v10 = vpack.c.bf16 %v2304_v45, %v2301_v33 }
 0x24f   : > { %2865 = vst [vmem:[%s4504_s14 + $0x18] sm:$0xff] %v2861_v3  }
 0x250   : > { %v2320_v12 = vadd.f32 %v2319_v8, %v2309_v16  ;;  %v2340_v6 = vadd.f32 %v2339_v5, %v2333_v61  ;;  %2864 = vst [vmem:[%s4504_s14 + $0x10] sm:$0xff] %v2856_v10  }
 0x252   : > { %v2321_v17 = vadd.f32 %v2320_v12, %v2312_v46  ;;  %v2341_v20 = vadd.f32 %v2340_v6, %v2334_v49 }
 0x254   : > { %v2322_v24 = vrot.slane %v2321_v17, 4  ;;  %v2342_v25 = vadd.f32 %v2341_v20, %v2335_v14 }
 0x256   : > { %v2323_v0 = vadd.f32 %v2322_v24, %v2321_v17  ;;  %v2343_v7 = vrot.slane %v2342_v25, 4  ;;  %v2409_v48 = vld [vmem:[%s4504_s14 + $0x18] sm:$0xff] (%p3386_p4)  }
 0x257   : > { %v2405_v47 = vld [vmem:[%s4504_s14 + $0x10] sm:$0xff] (%p3386_p4)   ;;  %2410 = vst [vmem:[%s2381_s22 + $0x28] sm:$0xff] (%p3386_p4), %v2409_v48  }
 0x258   : > { %v2324_v21 = vrot.slane %v2323_v0, 2  ;;  %v2344_v15 = vadd.f32 %v2343_v7, %v2342_v25  ;;  %2406 = vst [vmem:[%s2381_s22 + $0x20] sm:$0xff] (%p3386_p4), %v2405_v47  }
 0x25a   : > { %v2325_v52 = vadd.f32 %v2324_v21, %v2323_v0  ;;  %v2345_v30 = vrot.slane %v2344_v15, 2 }
 0x25c   : > { %v2326_v26 = vrot.slane %v2325_v52, 1  ;;  %v2346_v27 = vadd.f32 %v2345_v30, %v2344_v15 }
 0x25d   : > { %2378 = sbr.rel (!%p3386_p4) target bundleno = 612 (0x264), region = 52 }
 0x25e   : > { %v2347_v51 = vrot.slane %v2346_v27, 1  ;;  %v2327_v1 = vadd.f32 %v2326_v26, %v2325_v52 }
 0x260   : > { %v2348_v31 = vadd.f32 %v2347_v51, %v2346_v27 }
 0x262   : > { %v2350_v11 = vsel %vm2349_vm10, %v2327_v1, %v2348_v31 }
 0x263   : > { %2351 = vst [vmem:[%s291_s18] sm:$0x3] %v2350_v11 }
 0x264 PF: > { %p16_p8 = scmp.ge.s32.totalorder %s3376_s9, 4   ;;  %s4652_s27 = smov %s3310_s28 }
 0x265   : > { %s4653_s28 = smov %s3384_s12  ;;  %s4654_s29 = smov %s3376_s9 }
 0x266   :  { %18 = sbr.rel (!%p16_p8) target bundleno = 2 (0x2), region = 133 }

</bundles_post_ra>
